<compile_context>
chip_gen: v6e
topology: v6e:2x2x1
jax: 0.10.0
libtpu: 0.0.40
codegen_flags: <defaults>
</compile_context>

<pallas_src>
import numpy as np
import jax
import jax.numpy as jnp
from jax.experimental import pallas as pl
from jax.experimental.pallas import tpu as pltpu

EPS = 1e-10  # L2Norm eps


# ----------------------------------------------------------------------------
# Host-side weight "spreading" (tiny numpy loops, run once).
# Activations live as flat rows (H, W*C); each conv becomes one matmul:
#   Y[oy, ox*Cout + co] = LHS[oy, :] @ R[:, ox*Cout + co]
# where LHS is a lane-concat of row-shifted slabs of the (padded) flat input.
# ----------------------------------------------------------------------------
def _phase_row_taps(stride, pad, K):
    """For output row oy = stride*m + d: list over d of [(delta, ky), ...] so
    that input row m+delta contributes with kernel-row index ky."""
    taps = []
    for d in range(stride):
        tl = []
        for delta in range(-K, K + 1):
            ky = d - stride * delta + pad
            if 0 <= ky < K:
                tl.append((delta, ky))
        taps.append(tl)
    return taps


def conv1x1_spread(w, w_in, c_total, c0):
    """1x1 conv weight (Cin, Cout) -> spread RHS (w_in*Cin, w_in*c_total)."""
    cin, cout = w.shape
    R = np.zeros((w_in * cin, w_in * c_total), np.float32)
    for ox in range(w_in):
        R[ox * cin:(ox + 1) * cin, ox * c_total + c0:ox * c_total + c0 + cout] = w
    return R


def conv_kxk_spread(w_hwio, w_in, pad, c_total, c0):
    """Stride-1 KxK 'same' conv (HWIO) -> spread RHS (K*Wp*Cin, w_in*c_total).
    Matching LHS = lane-concat over dr of xpad_flat[dr:dr+H, :]."""
    K, _, cin, cout = w_hwio.shape
    Wp = w_in + 2 * pad
    R = np.zeros((K * Wp * cin, w_in * c_total), np.float32)
    for dr in range(K):
        for b in range(Wp):
            for ow in range(w_in):
                dc = b - ow
                if 0 <= dc < K:
                    r0 = dr * Wp * cin + b * cin
                    R[r0:r0 + cin,
                      ow * c_total + c0:ow * c_total + c0 + cout] = w_hwio[dr, dc]
    return R


def deconv_spread(w_dec, w_in, stride, c_total, c0):
    """ConvTranspose2d(k=4, stride, pad=(4-stride)//2), torch weight
    (Cin, Cout, 4, 4) -> per-row-phase spread RHS list + static tap info."""
    cin, cout, K, _ = w_dec.shape
    pad = (K - stride) // 2
    taps = _phase_row_taps(stride, pad, K)
    deltas = [d for tl in taps for (d, _) in tl]
    pad_lo, pad_hi = max(0, -min(deltas)), max(0, max(deltas))
    Wp = w_in + pad_lo + pad_hi
    w_out = w_in * stride
    rhs = []
    for d in range(stride):
        R = np.zeros((len(taps[d]) * Wp * cin, w_out * c_total), np.float32)
        for j, (_, ky) in enumerate(taps[d]):
            for b in range(Wp):
                ix = b - pad_lo
                for ox in range(w_out):
                    kx = ox - stride * ix + pad
                    if 0 <= kx < K:
                        r0 = j * Wp * cin + b * cin
                        R[r0:r0 + cin,
                          ox * c_total + c0:ox * c_total + c0 + cout] = \
                            w_dec[:, :, ky, kx]
        rhs.append(R)
    return rhs, taps, pad_lo, pad_hi


# ----------------------------------------------------------------------------
# Fused forward pass.
# ----------------------------------------------------------------------------
def neck_forward(inputs_nhwc, params, mask_c, dec_c):
    N = inputs_nhwc[0].shape[0]
    n_in = len(inputs_nhwc)
    branches = params["branch"]
    n_br = len(branches)
    c_total = n_br * dec_c
    h0, w0 = inputs_nhwc[0].shape[1:3]
    s0 = int(branches[0][3])
    H_out, W_out = h0 * s0, w0 * s0
    h_l, w_l, c_l = inputs_nhwc[-1].shape[1:4]
    K_att = int(params["atten_conv_w"].shape[0])
    pad_att = K_att // 2

    # ------------------ host-side constants (pre-spread weights) -------------
    R_att = conv_kxk_spread(np.asarray(params["atten_conv_w"]), w_l, pad_att,
                            mask_c, 0)
    b_att = np.tile(np.asarray(params["atten_conv_b"]), w_l)[None, :]
    wpred = np.asarray(params["atten_pred_w"]).reshape(mask_c, 1)
    R_pred = conv1x1_spread(wpred, w_l, 1, 0)
    b_pred = np.asarray(params["atten_pred_b"]).reshape(1, 1)
    S = np.zeros((W_out * dec_c, W_out), np.float32)          # channel-group sum
    for ox in range(W_out):
        S[ox * dec_c:(ox + 1) * dec_c, ox] = 1.0
    ST = np.ascontiguousarray(S.T)                            # group broadcast

    const = [jnp.asarray(R_att, jnp.bfloat16), jnp.asarray(b_att, jnp.float32),
             jnp.asarray(R_pred, jnp.float32), jnp.asarray(b_pred, jnp.float32),
             jnp.asarray(S, jnp.float32), jnp.asarray(ST, jnp.float32)]
    bstat = []
    for i, (w, b, l2w, s) in enumerate(branches):
        s = int(s)
        if i < n_in:
            hi, wi, cin_i = inputs_nhwc[i].shape[1:4]
        else:
            hi, wi, cin_i = h_l, w_l, mask_c
        assert hi * s == H_out and wi * s == W_out
        c0 = i * dec_c
        bias = np.tile(np.asarray(b), W_out)[None, :]
        P = np.zeros((W_out * dec_c, W_out * c_total), np.float32)
        l2 = np.asarray(l2w)
        for ox in range(W_out):
            for co in range(dec_c):
                P[ox * dec_c + co, ox * c_total + c0 + co] = l2[co]
        if s == 1:
            rhs = [conv1x1_spread(np.asarray(w).reshape(cin_i, dec_c), wi,
                                  dec_c, 0)]
            taps, pad_lo, pad_hi = [[(0, 0)]], 0, 0
        else:
            rhs, taps, pad_lo, pad_hi = deconv_spread(np.asarray(w), wi, s,
                                                      dec_c, 0)
        const += [jnp.asarray(bias, jnp.float32), jnp.asarray(P, jnp.float32)]
        const += [jnp.asarray(R, jnp.bfloat16) for R in rhs]
        bstat.append(dict(h=int(hi), w=int(wi), c=int(cin_i), s=s, taps=taps,
                          pad_lo=pad_lo, pad_hi=pad_hi, n_rhs=len(rhs)))

    x_flat = [x.reshape(N, x.shape[1], x.shape[2] * x.shape[3])
              for x in inputs_nhwc]
    n_const = len(const)

    # ------------------------------ kernel -----------------------------------
    def kernel(*refs):
        in_refs = refs[:n_in]
        cref = refs[n_in:n_in + n_const]
        out_ref, mask_ref = refs[n_in + n_const:]
        f32, bf16 = jnp.float32, jnp.bfloat16

        def pad_flat(x2d, h, w, c, lo, hi):
            if lo == 0 and hi == 0:
                return x2d
            zl = jnp.zeros((h, lo * c), f32)
            zr = jnp.zeros((h, hi * c), f32)
            x2d = jnp.concatenate([zl, x2d, zr], axis=1)
            wc = x2d.shape[1]
            zt = jnp.zeros((lo, wc), f32)
            zb = jnp.zeros((hi, wc), f32)
            return jnp.concatenate([zt, x2d, zb], axis=0)

        # --- attention head: 3x3 conv + bias + ReLU, then 1x1 prediction -----
        x_last = in_refs[-1][0]                               # (h_l, w_l*c_l)
        xlp = pad_flat(x_last, h_l, w_l, c_l, pad_att, pad_att)
        lhs_att = jnp.concatenate([xlp[d:d + h_l, :] for d in range(K_att)],
                                  axis=1)
        mf = jnp.dot(lhs_att.astype(bf16), cref[0][...],
                     preferred_element_type=f32)
        mf = jnp.maximum(mf + cref[1][...], 0.0)              # (h_l, w_l*mask_c)
        pred = jnp.dot(mf, cref[2][...], preferred_element_type=f32) + cref[3][...]
        mask_ref[0] = pred.astype(mask_ref.dtype)

        Sm, STm = cref[4][...], cref[5][...]

        # --- branches: deconv/1x1 as per-row-phase matmuls + fused L2Norm -----
        contribs = []
        idx = 6
        for i, st in enumerate(bstat):
            bias_r, P_r = cref[idx][...], cref[idx + 1][...]
            rhs_refs = cref[idx + 2: idx + 2 + st["n_rhs"]]
            idx += 2 + st["n_rhs"]
            src = in_refs[i][0] if i < n_in else mf
            sp = pad_flat(src, st["h"], st["w"], st["c"],
                          st["pad_lo"], st["pad_hi"])
            phases = []
            for d in range(st["s"]):
                slabs = [sp[dlt + st["pad_lo"]: dlt + st["pad_lo"] + st["h"], :]
                         for (dlt, _) in st["taps"][d]]
                lhs = slabs[0] if len(slabs) == 1 else jnp.concatenate(slabs,
                                                                       axis=1)
                y = jnp.dot(lhs.astype(bf16), rhs_refs[d][...],
                            preferred_element_type=f32) + bias_r  # (h, W*dec_c)
                ssq = jnp.dot(y * y, Sm, preferred_element_type=f32)
                inv = pl.reciprocal(jnp.sqrt(ssq) + EPS, approx=True)
                invr = jnp.dot(inv, STm, preferred_element_type=f32)
                # L2 scale folded into the placement matrix P (-> concat slots)
                phases.append(jnp.dot(y * invr, P_r, preferred_element_type=f32))
            contribs.append((st["s"], phases))

        # --- row-interleaved, lane-dense (W_out*c_total) output stores --------
        for oy in range(H_out):
            row = None
            for s_i, phases in contribs:
                r = phases[oy % s_i][oy // s_i: oy // s_i + 1, :]
                row = r if row is None else row + r
            out_ref[0, oy:oy + 1, :] = row.astype(out_ref.dtype)

    in_specs = ([pl.BlockSpec((1,) + x.shape[1:], lambda n: (n, 0, 0))
                 for x in x_flat]
                + [pl.BlockSpec(c.shape, lambda n: (0, 0)) for c in const])
    out_specs = (pl.BlockSpec((1, H_out, W_out * c_total), lambda n: (n, 0, 0)),
                 pl.BlockSpec((1, h_l, w_l), lambda n: (n, 0, 0)))
    out_shape = (jax.ShapeDtypeStruct((N, H_out, W_out * c_total), jnp.float32),
                 jax.ShapeDtypeStruct((N, h_l, w_l), jnp.float32))

    out_flat, mask_flat = pl.pallas_call(
        kernel, out_shape=out_shape, grid=(N,),
        in_specs=in_specs, out_specs=out_specs,
        compiler_params=pltpu.CompilerParams(
            dimension_semantics=("parallel",)),
    )(*(x_flat + const))

    out = out_flat.reshape(N, H_out, W_out, c_total)   # free row-major view
    atten_mask = mask_flat.reshape(N, h_l, w_l, 1)
    return (out,), (atten_mask,)


# ----------------------------------------------------------------------------
# Parameters (deterministic, synthetic; values rounded to bf16-representable).
# ----------------------------------------------------------------------------
def build_params(in_channels, up_strides, mask_c, dec_c, merge_mask_feat, key):
    keys = iter(jax.random.split(key, 64))

    def rnd(shape, scale):
        w = scale * jax.random.normal(next(keys), shape, jnp.float32)
        return w.astype(jnp.bfloat16).astype(jnp.float32)

    p = {"atten_conv_w": rnd((3, 3, in_channels[-1], mask_c), 0.1),   # HWIO
         "atten_conv_b": rnd((mask_c,), 0.01),
         "atten_pred_w": rnd((1, 1, mask_c, 1), 0.1),                 # HWIO
         "atten_pred_b": rnd((1,), 0.01),
         "branch": []}
    cins = list(in_channels) + ([mask_c] if merge_mask_feat else [])
    strides = list(up_strides) + ([up_strides[-1]] if merge_mask_feat else [])
    for c, s in zip(cins, strides):
        s = int(s)
        if s > 1:
            w = rnd((c, dec_c, 4, 4), 0.1)     # torch ConvTranspose2d layout
        else:
            w = rnd((1, 1, c, dec_c), 0.1)      # HWIO 1x1
        b = rnd((dec_c,), 0.01)
        l2w = jnp.full((dec_c,), 10.0, jnp.float32)   # L2Norm.init_weight(10)
        p["branch"].append((w, b, l2w, s))
    return p


# ----------------------------------------------------------------------------
# Pure-JAX reference (XLA convs) for correctness checking.
# ----------------------------------------------------------------------------
def _ref_conv(x, w_hwio, b, pad=0, lhs_dil=1):
    y = jax.lax.conv_general_dilated(
        x, w_hwio, window_strides=(1, 1),
        padding=[(pad, pad), (pad, pad)],
        lhs_dilation=(lhs_dil, lhs_dil),
        dimension_numbers=("NHWC", "HWIO", "NHWC"))
    return y + b.reshape(1, 1, 1, -1)


def _ref_l2norm(x, w):
    norm = jnp.sqrt(jnp.sum(x * x, axis=-1, keepdims=True)) + EPS
    return w.reshape(1, 1, 1, -1) * x / norm


def _deconv_weight_to_conv(w_dec):
    # torch ConvTranspose2d weight (Cin, Cout, kH, kW) -> flipped HWIO weight
    return jnp.transpose(jnp.asarray(w_dec)[:, :, ::-1, ::-1], (2, 3, 0, 1))


def neck_forward_ref(inputs, params):
    mask_feat = jax.nn.relu(_ref_conv(inputs[-1], params["atten_conv_w"],
                                      params["atten_conv_b"], pad=1))
    atten_mask = _ref_conv(mask_feat, params["atten_pred_w"],
                           params["atten_pred_b"])
    feats = list(inputs)
    if len(params["branch"]) > len(inputs):
        feats = feats + [mask_feat]
    outs = []
    for x, (w, b, l2w, s) in zip(feats, params["branch"]):
        if s > 1:
            p = (4 - s) // 2
            y = _ref_conv(x, _deconv_weight_to_conv(w), b, pad=4 - 1 - p,
                          lhs_dil=s)
        else:
            y = _ref_conv(x, w, b, pad=0)
        outs.append(_ref_l2norm(y, l2w))
    return jnp.concatenate(outs, axis=-1), atten_mask


# NOTE: MaskAttentionStackNeck.loss / gen_single_img_gt / gen_oriimg_size_masks
# are training-time numpy ground-truth generation and not part of the forward.

if __name__ == "__main__":
    key = jax.random.PRNGKey(0)
    k1, k2, kp = jax.random.split(key, 3)

    in_channels = [4, 8]
    up_strides = [1, 2]
    mask_feat_channels = 8
    deconv_feat_channel = 8
    merge_mask_feat = True

    # NHWC inputs (torch NCHW equivalents: [2,4,16,16] and [2,8,8,8]).
    x0 = jax.random.normal(k1, (2, 16, 16, 4), jnp.float32)
    x1 = jax.random.normal(k2, (2, 8, 8, 8), jnp.float32)

    params = build_params(in_channels, up_strides, mask_feat_channels,
                          deconv_feat_channel, merge_mask_feat, kp)

    (out,), (atten_mask,) = neck_forward([x0, x1], params,
                                         mask_feat_channels,
                                         deconv_feat_channel)
    out = jax.block_until_ready(out)
    atten_mask = jax.block_until_ready(atten_mask)

    assert out.shape == (2, 16, 16, 24), out.shape          # NCHW equiv (2,24,16,16)
    assert atten_mask.shape == (2, 8, 8, 1), atten_mask.shape  # NCHW equiv (2,1,8,8)

    out_ref, mask_ref = neck_forward_ref([x0, x1], params)
    # Kernel uses bf16 MXU operands (f32 accumulate) vs the f32 XLA reference,
    # so compare with a tolerance that still catches any structural error.
    np.testing.assert_allclose(np.asarray(out), np.asarray(out_ref),
                               atol=5e-2, rtol=5e-2)
    np.testing.assert_allclose(np.asarray(atten_mask), np.asarray(mask_ref),
                               atol=5e-2, rtol=5e-2)

    print("KERNEL_OK")
</pallas_src>

<mosaic_0001>
module attributes {stable_mosaic.version = 11 : i64} {
  func.func @kernel(%arg0: i32, %arg1: memref<1x16x64xf32, #tpu.memory_space<vmem>>, %arg2: memref<1x8x64xf32, #tpu.memory_space<vmem>>, %arg3: memref<240x64xbf16, #tpu.memory_space<vmem>>, %arg4: memref<1x64xf32, #tpu.memory_space<vmem>>, %arg5: memref<64x8xf32, #tpu.memory_space<vmem>>, %arg6: memref<1x1xf32, #tpu.memory_space<vmem>>, %arg7: memref<128x16xf32, #tpu.memory_space<vmem>>, %arg8: memref<16x128xf32, #tpu.memory_space<vmem>>, %arg9: memref<1x128xf32, #tpu.memory_space<vmem>>, %arg10: memref<128x384xf32, #tpu.memory_space<vmem>>, %arg11: memref<64x128xbf16, #tpu.memory_space<vmem>>, %arg12: memref<1x128xf32, #tpu.memory_space<vmem>>, %arg13: memref<128x384xf32, #tpu.memory_space<vmem>>, %arg14: memref<160x128xbf16, #tpu.memory_space<vmem>>, %arg15: memref<160x128xbf16, #tpu.memory_space<vmem>>, %arg16: memref<1x128xf32, #tpu.memory_space<vmem>>, %arg17: memref<128x384xf32, #tpu.memory_space<vmem>>, %arg18: memref<160x128xbf16, #tpu.memory_space<vmem>>, %arg19: memref<160x128xbf16, #tpu.memory_space<vmem>>, %arg20: memref<1x16x384xf32, #tpu.memory_space<vmem>>, %arg21: memref<1x8x8xf32, #tpu.memory_space<vmem>>) attributes {dimension_semantics = [#tpu.dimension_semantics<parallel>], iteration_bounds = array<i64: 2>, scalar_prefetch = 0 : i64, scratch_operands = 0 : i64, tpu.core_type = #tpu.core_type<tc>, window_params = [{transform_indices = @transform_0, window_bounds = array<i64: 1, 16, 64>}, {transform_indices = @transform_1, window_bounds = array<i64: 1, 8, 64>}, {pipeline_mode = #tpu.pipeline_mode<synchronous>, transform_indices = @transform_2, window_bounds = array<i64: 240, 64>}, {pipeline_mode = #tpu.pipeline_mode<synchronous>, transform_indices = @transform_3, window_bounds = array<i64: 1, 64>}, {pipeline_mode = #tpu.pipeline_mode<synchronous>, transform_indices = @transform_4, window_bounds = array<i64: 64, 8>}, {pipeline_mode = #tpu.pipeline_mode<synchronous>, transform_indices = @transform_5, window_bounds = array<i64: 1, 1>}, {pipeline_mode = #tpu.pipeline_mode<synchronous>, transform_indices = @transform_6, window_bounds = array<i64: 128, 16>}, {pipeline_mode = #tpu.pipeline_mode<synchronous>, transform_indices = @transform_7, window_bounds = array<i64: 16, 128>}, {pipeline_mode = #tpu.pipeline_mode<synchronous>, transform_indices = @transform_8, window_bounds = array<i64: 1, 128>}, {pipeline_mode = #tpu.pipeline_mode<synchronous>, transform_indices = @transform_9, window_bounds = array<i64: 128, 384>}, {pipeline_mode = #tpu.pipeline_mode<synchronous>, transform_indices = @transform_10, window_bounds = array<i64: 64, 128>}, {pipeline_mode = #tpu.pipeline_mode<synchronous>, transform_indices = @transform_11, window_bounds = array<i64: 1, 128>}, {pipeline_mode = #tpu.pipeline_mode<synchronous>, transform_indices = @transform_12, window_bounds = array<i64: 128, 384>}, {pipeline_mode = #tpu.pipeline_mode<synchronous>, transform_indices = @transform_13, window_bounds = array<i64: 160, 128>}, {pipeline_mode = #tpu.pipeline_mode<synchronous>, transform_indices = @transform_14, window_bounds = array<i64: 160, 128>}, {pipeline_mode = #tpu.pipeline_mode<synchronous>, transform_indices = @transform_15, window_bounds = array<i64: 1, 128>}, {pipeline_mode = #tpu.pipeline_mode<synchronous>, transform_indices = @transform_16, window_bounds = array<i64: 128, 384>}, {pipeline_mode = #tpu.pipeline_mode<synchronous>, transform_indices = @transform_17, window_bounds = array<i64: 160, 128>}, {pipeline_mode = #tpu.pipeline_mode<synchronous>, transform_indices = @transform_18, window_bounds = array<i64: 160, 128>}, {transform_indices = @transform_19, window_bounds = array<i64: 1, 16, 384>}, {transform_indices = @transform_20, window_bounds = array<i64: 1, 8, 8>}]} {
    %c0 = arith.constant 0 : index
    %c0_0 = arith.constant 0 : index
    %c0_1 = arith.constant 0 : index
    %0 = vector.load %arg2[%c0, %c0_0, %c0_1] : memref<1x8x64xf32, #tpu.memory_space<vmem>>, vector<1x8x64xf32>
    %1 = vector.shape_cast %0 : vector<1x8x64xf32> to vector<8x64xf32>
    %cst = arith.constant 0.000000e+00 : f32
    %2 = vector.broadcast %cst : f32 to vector<8x8xf32>
    %cst_2 = arith.constant 0.000000e+00 : f32
    %3 = vector.broadcast %cst_2 : f32 to vector<8x8xf32>
    %4 = tpu.concatenate %2, %1, %3 in 1 : vector<8x8xf32>, vector<8x64xf32>, vector<8x8xf32> -> vector<8x80xf32>
    %cst_3 = arith.constant 0.000000e+00 : f32
    %5 = vector.broadcast %cst_3 : f32 to vector<1x80xf32>
    %cst_4 = arith.constant 0.000000e+00 : f32
    %6 = vector.broadcast %cst_4 : f32 to vector<1x80xf32>
    %7 = tpu.concatenate %5, %4, %6 in 0 : vector<1x80xf32>, vector<8x80xf32>, vector<1x80xf32> -> vector<10x80xf32>
    %8 = vector.extract_strided_slice %7 {offsets = [0, 0], sizes = [8, 80], strides = [1, 1]} : vector<10x80xf32> to vector<8x80xf32>
    %9 = vector.extract_strided_slice %7 {offsets = [1, 0], sizes = [8, 80], strides = [1, 1]} : vector<10x80xf32> to vector<8x80xf32>
    %10 = vector.extract_strided_slice %7 {offsets = [2, 0], sizes = [8, 80], strides = [1, 1]} : vector<10x80xf32> to vector<8x80xf32>
    %11 = tpu.concatenate %8, %9, %10 in 1 : vector<8x80xf32>, vector<8x80xf32>, vector<8x80xf32> -> vector<8x240xf32>
    %12 = arith.truncf %11 : vector<8x240xf32> to vector<8x240xbf16>
    %c0_5 = arith.constant 0 : index
    %c0_6 = arith.constant 0 : index
    %13 = vector.load %arg3[%c0_5, %c0_6] : memref<240x64xbf16, #tpu.memory_space<vmem>>, vector<240x64xbf16>
    %cst_7 = arith.constant dense<0.000000e+00> : vector<8x64xf32>
    %14 = tpu.matmul %12, %13, %cst_7 {dimension_numbers = #tpu.dot_dimension_numbers<[1], [0], [0], [1], [0, 0, 1, 1], [], []>} : vector<8x240xbf16>, vector<240x64xbf16>, vector<8x64xf32> -> vector<8x64xf32>
    %c0_8 = arith.constant 0 : index
    %c0_9 = arith.constant 0 : index
    %15 = vector.load %arg4[%c0_8, %c0_9] : memref<1x64xf32, #tpu.memory_space<vmem>>, vector<1x64xf32>
    %16 = vector.broadcast %15 : vector<1x64xf32> to vector<8x64xf32>
    %17 = arith.addf %14, %16 : vector<8x64xf32>
    %cst_10 = arith.constant 0.000000e+00 : f32
    %18 = vector.broadcast %cst_10 : f32 to vector<8x64xf32>
    %19 = arith.maximumf %17, %18 : vector<8x64xf32>
    %c0_11 = arith.constant 0 : index
    %c0_12 = arith.constant 0 : index
    %20 = vector.load %arg5[%c0_11, %c0_12] : memref<64x8xf32, #tpu.memory_space<vmem>>, vector<64x8xf32>
    %cst_13 = arith.constant dense<0.000000e+00> : vector<8x8xf32>
    %21 = tpu.matmul %19, %20, %cst_13 {dimension_numbers = #tpu.dot_dimension_numbers<[1], [0], [0], [1], [0, 0, 1, 1], [], []>} : vector<8x64xf32>, vector<64x8xf32>, vector<8x8xf32> -> vector<8x8xf32>
    %c0_14 = arith.constant 0 : index
    %c0_15 = arith.constant 0 : index
    %22 = vector.load %arg6[%c0_14, %c0_15] : memref<1x1xf32, #tpu.memory_space<vmem>>, vector<1x1xf32>
    %23 = vector.broadcast %22 : vector<1x1xf32> to vector<8x8xf32>
    %24 = arith.addf %21, %23 : vector<8x8xf32>
    %c0_16 = arith.constant 0 : index
    %c0_17 = arith.constant 0 : index
    %c0_18 = arith.constant 0 : index
    %25 = vector.load %arg21[%c0_16, %c0_17, %c0_18] : memref<1x8x8xf32, #tpu.memory_space<vmem>>, vector<1x8x8xf32>
    %26 = vector.shape_cast %25 : vector<1x8x8xf32> to vector<8x8xf32>
    %27 = vector.shape_cast %24 : vector<8x8xf32> to vector<1x8x8xf32>
    tpu.vector_store %arg21[%c0_16, %c0_17, %c0_18], %27 {strides = array<i32>} : memref<1x8x8xf32, #tpu.memory_space<vmem>>, vector<1x8x8xf32>,
    %c0_19 = arith.constant 0 : index
    %c0_20 = arith.constant 0 : index
    %28 = vector.load %arg7[%c0_19, %c0_20] : memref<128x16xf32, #tpu.memory_space<vmem>>, vector<128x16xf32>
    %c0_21 = arith.constant 0 : index
    %c0_22 = arith.constant 0 : index
    %29 = vector.load %arg8[%c0_21, %c0_22] : memref<16x128xf32, #tpu.memory_space<vmem>>, vector<16x128xf32>
    %c0_23 = arith.constant 0 : index
    %c0_24 = arith.constant 0 : index
    %30 = vector.load %arg9[%c0_23, %c0_24] : memref<1x128xf32, #tpu.memory_space<vmem>>, vector<1x128xf32>
    %c0_25 = arith.constant 0 : index
    %c0_26 = arith.constant 0 : index
    %31 = vector.load %arg10[%c0_25, %c0_26] : memref<128x384xf32, #tpu.memory_space<vmem>>, vector<128x384xf32>
    %c0_27 = arith.constant 0 : index
    %c0_28 = arith.constant 0 : index
    %c0_29 = arith.constant 0 : index
    %32 = vector.load %arg1[%c0_27, %c0_28, %c0_29] : memref<1x16x64xf32, #tpu.memory_space<vmem>>, vector<1x16x64xf32>
    %33 = vector.shape_cast %32 : vector<1x16x64xf32> to vector<16x64xf32>
    %34 = arith.truncf %33 : vector<16x64xf32> to vector<16x64xbf16>
    %c0_30 = arith.constant 0 : index
    %c0_31 = arith.constant 0 : index
    %35 = vector.load %arg11[%c0_30, %c0_31] : memref<64x128xbf16, #tpu.memory_space<vmem>>, vector<64x128xbf16>
    %cst_32 = arith.constant dense<0.000000e+00> : vector<16x128xf32>
    %36 = tpu.matmul %34, %35, %cst_32 {dimension_numbers = #tpu.dot_dimension_numbers<[1], [0], [0], [1], [0, 0, 1, 1], [], []>} : vector<16x64xbf16>, vector<64x128xbf16>, vector<16x128xf32> -> vector<16x128xf32>
    %37 = vector.broadcast %30 : vector<1x128xf32> to vector<16x128xf32>
    %38 = arith.addf %36, %37 : vector<16x128xf32>
    %39 = arith.mulf %38, %38 : vector<16x128xf32>
    %cst_33 = arith.constant dense<0.000000e+00> : vector<16x16xf32>
    %40 = tpu.matmul %39, %28, %cst_33 {dimension_numbers = #tpu.dot_dimension_numbers<[1], [0], [0], [1], [0, 0, 1, 1], [], []>} : vector<16x128xf32>, vector<128x16xf32>, vector<16x16xf32> -> vector<16x16xf32>
    %41 = math.sqrt %40 : vector<16x16xf32>
    %cst_34 = arith.constant 1.000000e-10 : f32
    %42 = vector.broadcast %cst_34 : f32 to vector<16x16xf32>
    %43 = arith.addf %41, %42 : vector<16x16xf32>
    %44 = tpu.reciprocal %43 {approx = true} : vector<16x16xf32> -> vector<16x16xf32>
    %cst_35 = arith.constant dense<0.000000e+00> : vector<16x128xf32>
    %45 = tpu.matmul %44, %29, %cst_35 {dimension_numbers = #tpu.dot_dimension_numbers<[1], [0], [0], [1], [0, 0, 1, 1], [], []>} : vector<16x16xf32>, vector<16x128xf32>, vector<16x128xf32> -> vector<16x128xf32>
    %46 = arith.mulf %38, %45 : vector<16x128xf32>
    %cst_36 = arith.constant dense<0.000000e+00> : vector<16x384xf32>
    %47 = tpu.matmul %46, %31, %cst_36 {dimension_numbers = #tpu.dot_dimension_numbers<[1], [0], [0], [1], [0, 0, 1, 1], [], []>} : vector<16x128xf32>, vector<128x384xf32>, vector<16x384xf32> -> vector<16x384xf32>
    %c0_37 = arith.constant 0 : index
    %c0_38 = arith.constant 0 : index
    %48 = vector.load %arg12[%c0_37, %c0_38] : memref<1x128xf32, #tpu.memory_space<vmem>>, vector<1x128xf32>
    %c0_39 = arith.constant 0 : index
    %c0_40 = arith.constant 0 : index
    %49 = vector.load %arg13[%c0_39, %c0_40] : memref<128x384xf32, #tpu.memory_space<vmem>>, vector<128x384xf32>
    %c0_41 = arith.constant 0 : index
    %c0_42 = arith.constant 0 : index
    %c0_43 = arith.constant 0 : index
    %50 = vector.load %arg2[%c0_41, %c0_42, %c0_43] : memref<1x8x64xf32, #tpu.memory_space<vmem>>, vector<1x8x64xf32>
    %51 = vector.shape_cast %50 : vector<1x8x64xf32> to vector<8x64xf32>
    %cst_44 = arith.constant 0.000000e+00 : f32
    %52 = vector.broadcast %cst_44 : f32 to vector<8x8xf32>
    %cst_45 = arith.constant 0.000000e+00 : f32
    %53 = vector.broadcast %cst_45 : f32 to vector<8x8xf32>
    %54 = tpu.concatenate %52, %51, %53 in 1 : vector<8x8xf32>, vector<8x64xf32>, vector<8x8xf32> -> vector<8x80xf32>
    %cst_46 = arith.constant 0.000000e+00 : f32
    %55 = vector.broadcast %cst_46 : f32 to vector<1x80xf32>
    %cst_47 = arith.constant 0.000000e+00 : f32
    %56 = vector.broadcast %cst_47 : f32 to vector<1x80xf32>
    %57 = tpu.concatenate %55, %54, %56 in 0 : vector<1x80xf32>, vector<8x80xf32>, vector<1x80xf32> -> vector<10x80xf32>
    %58 = vector.extract_strided_slice %57 {offsets = [0, 0], sizes = [8, 80], strides = [1, 1]} : vector<10x80xf32> to vector<8x80xf32>
    %59 = vector.extract_strided_slice %57 {offsets = [1, 0], sizes = [8, 80], strides = [1, 1]} : vector<10x80xf32> to vector<8x80xf32>
    %60 = tpu.concatenate %58, %59 in 1 : vector<8x80xf32>, vector<8x80xf32> -> vector<8x160xf32>
    %61 = arith.truncf %60 : vector<8x160xf32> to vector<8x160xbf16>
    %c0_48 = arith.constant 0 : index
    %c0_49 = arith.constant 0 : index
    %62 = vector.load %arg14[%c0_48, %c0_49] : memref<160x128xbf16, #tpu.memory_space<vmem>>, vector<160x128xbf16>
    %cst_50 = arith.constant dense<0.000000e+00> : vector<8x128xf32>
    %63 = tpu.matmul %61, %62, %cst_50 {dimension_numbers = #tpu.dot_dimension_numbers<[1], [0], [0], [1], [0, 0, 1, 1], [], []>} : vector<8x160xbf16>, vector<160x128xbf16>, vector<8x128xf32> -> vector<8x128xf32>
    %64 = vector.broadcast %48 : vector<1x128xf32> to vector<8x128xf32>
    %65 = arith.addf %63, %64 : vector<8x128xf32>
    %66 = arith.mulf %65, %65 : vector<8x128xf32>
    %cst_51 = arith.constant dense<0.000000e+00> : vector<8x16xf32>
    %67 = tpu.matmul %66, %28, %cst_51 {dimension_numbers = #tpu.dot_dimension_numbers<[1], [0], [0], [1], [0, 0, 1, 1], [], []>} : vector<8x128xf32>, vector<128x16xf32>, vector<8x16xf32> -> vector<8x16xf32>
    %68 = math.sqrt %67 : vector<8x16xf32>
    %cst_52 = arith.constant 1.000000e-10 : f32
    %69 = vector.broadcast %cst_52 : f32 to vector<8x16xf32>
    %70 = arith.addf %68, %69 : vector<8x16xf32>
    %71 = tpu.reciprocal %70 {approx = true} : vector<8x16xf32> -> vector<8x16xf32>
    %cst_53 = arith.constant dense<0.000000e+00> : vector<8x128xf32>
    %72 = tpu.matmul %71, %29, %cst_53 {dimension_numbers = #tpu.dot_dimension_numbers<[1], [0], [0], [1], [0, 0, 1, 1], [], []>} : vector<8x16xf32>, vector<16x128xf32>, vector<8x128xf32> -> vector<8x128xf32>
    %73 = arith.mulf %65, %72 : vector<8x128xf32>
    %cst_54 = arith.constant dense<0.000000e+00> : vector<8x384xf32>
    %74 = tpu.matmul %73, %49, %cst_54 {dimension_numbers = #tpu.dot_dimension_numbers<[1], [0], [0], [1], [0, 0, 1, 1], [], []>} : vector<8x128xf32>, vector<128x384xf32>, vector<8x384xf32> -> vector<8x384xf32>
    %75 = vector.extract_strided_slice %57 {offsets = [1, 0], sizes = [8, 80], strides = [1, 1]} : vector<10x80xf32> to vector<8x80xf32>
    %76 = vector.extract_strided_slice %57 {offsets = [2, 0], sizes = [8, 80], strides = [1, 1]} : vector<10x80xf32> to vector<8x80xf32>
    %77 = tpu.concatenate %75, %76 in 1 : vector<8x80xf32>, vector<8x80xf32> -> vector<8x160xf32>
    %78 = arith.truncf %77 : vector<8x160xf32> to vector<8x160xbf16>
    %c0_55 = arith.constant 0 : index
    %c0_56 = arith.constant 0 : index
    %79 = vector.load %arg15[%c0_55, %c0_56] : memref<160x128xbf16, #tpu.memory_space<vmem>>, vector<160x128xbf16>
    %cst_57 = arith.constant dense<0.000000e+00> : vector<8x128xf32>
    %80 = tpu.matmul %78, %79, %cst_57 {dimension_numbers = #tpu.dot_dimension_numbers<[1], [0], [0], [1], [0, 0, 1, 1], [], []>} : vector<8x160xbf16>, vector<160x128xbf16>, vector<8x128xf32> -> vector<8x128xf32>
    %81 = vector.broadcast %48 : vector<1x128xf32> to vector<8x128xf32>
    %82 = arith.addf %80, %81 : vector<8x128xf32>
    %83 = arith.mulf %82, %82 : vector<8x128xf32>
    %cst_58 = arith.constant dense<0.000000e+00> : vector<8x16xf32>
    %84 = tpu.matmul %83, %28, %cst_58 {dimension_numbers = #tpu.dot_dimension_numbers<[1], [0], [0], [1], [0, 0, 1, 1], [], []>} : vector<8x128xf32>, vector<128x16xf32>, vector<8x16xf32> -> vector<8x16xf32>
    %85 = math.sqrt %84 : vector<8x16xf32>
    %cst_59 = arith.constant 1.000000e-10 : f32
    %86 = vector.broadcast %cst_59 : f32 to vector<8x16xf32>
    %87 = arith.addf %85, %86 : vector<8x16xf32>
    %88 = tpu.reciprocal %87 {approx = true} : vector<8x16xf32> -> vector<8x16xf32>
    %cst_60 = arith.constant dense<0.000000e+00> : vector<8x128xf32>
    %89 = tpu.matmul %88, %29, %cst_60 {dimension_numbers = #tpu.dot_dimension_numbers<[1], [0], [0], [1], [0, 0, 1, 1], [], []>} : vector<8x16xf32>, vector<16x128xf32>, vector<8x128xf32> -> vector<8x128xf32>
    %90 = arith.mulf %82, %89 : vector<8x128xf32>
    %cst_61 = arith.constant dense<0.000000e+00> : vector<8x384xf32>
    %91 = tpu.matmul %90, %49, %cst_61 {dimension_numbers = #tpu.dot_dimension_numbers<[1], [0], [0], [1], [0, 0, 1, 1], [], []>} : vector<8x128xf32>, vector<128x384xf32>, vector<8x384xf32> -> vector<8x384xf32>
    %c0_62 = arith.constant 0 : index
    %c0_63 = arith.constant 0 : index
    %92 = vector.load %arg16[%c0_62, %c0_63] : memref<1x128xf32, #tpu.memory_space<vmem>>, vector<1x128xf32>
    %c0_64 = arith.constant 0 : index
    %c0_65 = arith.constant 0 : index
    %93 = vector.load %arg17[%c0_64, %c0_65] : memref<128x384xf32, #tpu.memory_space<vmem>>, vector<128x384xf32>
    %cst_66 = arith.constant 0.000000e+00 : f32
    %94 = vector.broadcast %cst_66 : f32 to vector<8x8xf32>
    %cst_67 = arith.constant 0.000000e+00 : f32
    %95 = vector.broadcast %cst_67 : f32 to vector<8x8xf32>
    %96 = tpu.concatenate %94, %19, %95 in 1 : vector<8x8xf32>, vector<8x64xf32>, vector<8x8xf32> -> vector<8x80xf32>
    %cst_68 = arith.constant 0.000000e+00 : f32
    %97 = vector.broadcast %cst_68 : f32 to vector<1x80xf32>
    %cst_69 = arith.constant 0.000000e+00 : f32
    %98 = vector.broadcast %cst_69 : f32 to vector<1x80xf32>
    %99 = tpu.concatenate %97, %96, %98 in 0 : vector<1x80xf32>, vector<8x80xf32>, vector<1x80xf32> -> vector<10x80xf32>
    %100 = vector.extract_strided_slice %99 {offsets = [0, 0], sizes = [8, 80], strides = [1, 1]} : vector<10x80xf32> to vector<8x80xf32>
    %101 = vector.extract_strided_slice %99 {offsets = [1, 0], sizes = [8, 80], strides = [1, 1]} : vector<10x80xf32> to vector<8x80xf32>
    %102 = tpu.concatenate %100, %101 in 1 : vector<8x80xf32>, vector<8x80xf32> -> vector<8x160xf32>
    %103 = arith.truncf %102 : vector<8x160xf32> to vector<8x160xbf16>
    %c0_70 = arith.constant 0 : index
    %c0_71 = arith.constant 0 : index
    %104 = vector.load %arg18[%c0_70, %c0_71] : memref<160x128xbf16, #tpu.memory_space<vmem>>, vector<160x128xbf16>
    %cst_72 = arith.constant dense<0.000000e+00> : vector<8x128xf32>
    %105 = tpu.matmul %103, %104, %cst_72 {dimension_numbers = #tpu.dot_dimension_numbers<[1], [0], [0], [1], [0, 0, 1, 1], [], []>} : vector<8x160xbf16>, vector<160x128xbf16>, vector<8x128xf32> -> vector<8x128xf32>
    %106 = vector.broadcast %92 : vector<1x128xf32> to vector<8x128xf32>
    %107 = arith.addf %105, %106 : vector<8x128xf32>
    %108 = arith.mulf %107, %107 : vector<8x128xf32>
    %cst_73 = arith.constant dense<0.000000e+00> : vector<8x16xf32>
    %109 = tpu.matmul %108, %28, %cst_73 {dimension_numbers = #tpu.dot_dimension_numbers<[1], [0], [0], [1], [0, 0, 1, 1], [], []>} : vector<8x128xf32>, vector<128x16xf32>, vector<8x16xf32> -> vector<8x16xf32>
    %110 = math.sqrt %109 : vector<8x16xf32>
    %cst_74 = arith.constant 1.000000e-10 : f32
    %111 = vector.broadcast %cst_74 : f32 to vector<8x16xf32>
    %112 = arith.addf %110, %111 : vector<8x16xf32>
    %113 = tpu.reciprocal %112 {approx = true} : vector<8x16xf32> -> vector<8x16xf32>
    %cst_75 = arith.constant dense<0.000000e+00> : vector<8x128xf32>
    %114 = tpu.matmul %113, %29, %cst_75 {dimension_numbers = #tpu.dot_dimension_numbers<[1], [0], [0], [1], [0, 0, 1, 1], [], []>} : vector<8x16xf32>, vector<16x128xf32>, vector<8x128xf32> -> vector<8x128xf32>
    %115 = arith.mulf %107, %114 : vector<8x128xf32>
    %cst_76 = arith.constant dense<0.000000e+00> : vector<8x384xf32>
    %116 = tpu.matmul %115, %93, %cst_76 {dimension_numbers = #tpu.dot_dimension_numbers<[1], [0], [0], [1], [0, 0, 1, 1], [], []>} : vector<8x128xf32>, vector<128x384xf32>, vector<8x384xf32> -> vector<8x384xf32>
    %117 = vector.extract_strided_slice %99 {offsets = [1, 0], sizes = [8, 80], strides = [1, 1]} : vector<10x80xf32> to vector<8x80xf32>
    %118 = vector.extract_strided_slice %99 {offsets = [2, 0], sizes = [8, 80], strides = [1, 1]} : vector<10x80xf32> to vector<8x80xf32>
    %119 = tpu.concatenate %117, %118 in 1 : vector<8x80xf32>, vector<8x80xf32> -> vector<8x160xf32>
    %120 = arith.truncf %119 : vector<8x160xf32> to vector<8x160xbf16>
    %c0_77 = arith.constant 0 : index
    %c0_78 = arith.constant 0 : index
    %121 = vector.load %arg19[%c0_77, %c0_78] : memref<160x128xbf16, #tpu.memory_space<vmem>>, vector<160x128xbf16>
    %cst_79 = arith.constant dense<0.000000e+00> : vector<8x128xf32>
    %122 = tpu.matmul %120, %121, %cst_79 {dimension_numbers = #tpu.dot_dimension_numbers<[1], [0], [0], [1], [0, 0, 1, 1], [], []>} : vector<8x160xbf16>, vector<160x128xbf16>, vector<8x128xf32> -> vector<8x128xf32>
    %123 = vector.broadcast %92 : vector<1x128xf32> to vector<8x128xf32>
    %124 = arith.addf %122, %123 : vector<8x128xf32>
    %125 = arith.mulf %124, %124 : vector<8x128xf32>
    %cst_80 = arith.constant dense<0.000000e+00> : vector<8x16xf32>
    %126 = tpu.matmul %125, %28, %cst_80 {dimension_numbers = #tpu.dot_dimension_numbers<[1], [0], [0], [1], [0, 0, 1, 1], [], []>} : vector<8x128xf32>, vector<128x16xf32>, vector<8x16xf32> -> vector<8x16xf32>
    %127 = math.sqrt %126 : vector<8x16xf32>
    %cst_81 = arith.constant 1.000000e-10 : f32
    %128 = vector.broadcast %cst_81 : f32 to vector<8x16xf32>
    %129 = arith.addf %127, %128 : vector<8x16xf32>
    %130 = tpu.reciprocal %129 {approx = true} : vector<8x16xf32> -> vector<8x16xf32>
    %cst_82 = arith.constant dense<0.000000e+00> : vector<8x128xf32>
    %131 = tpu.matmul %130, %29, %cst_82 {dimension_numbers = #tpu.dot_dimension_numbers<[1], [0], [0], [1], [0, 0, 1, 1], [], []>} : vector<8x16xf32>, vector<16x128xf32>, vector<8x128xf32> -> vector<8x128xf32>
    %132 = arith.mulf %124, %131 : vector<8x128xf32>
    %cst_83 = arith.constant dense<0.000000e+00> : vector<8x384xf32>
    %133 = tpu.matmul %132, %93, %cst_83 {dimension_numbers = #tpu.dot_dimension_numbers<[1], [0], [0], [1], [0, 0, 1, 1], [], []>} : vector<8x128xf32>, vector<128x384xf32>, vector<8x384xf32> -> vector<8x384xf32>
    %134 = vector.extract_strided_slice %47 {offsets = [0, 0], sizes = [1, 384], strides = [1, 1]} : vector<16x384xf32> to vector<1x384xf32>
    %135 = vector.extract_strided_slice %74 {offsets = [0, 0], sizes = [1, 384], strides = [1, 1]} : vector<8x384xf32> to vector<1x384xf32>
    %136 = arith.addf %134, %135 : vector<1x384xf32>
    %137 = vector.extract_strided_slice %116 {offsets = [0, 0], sizes = [1, 384], strides = [1, 1]} : vector<8x384xf32> to vector<1x384xf32>
    %138 = arith.addf %136, %137 : vector<1x384xf32>
    %c0_84 = arith.constant 0 : index
    %c0_85 = arith.constant 0 : index
    %c0_86 = arith.constant 0 : index
    %139 = vector.load %arg20[%c0_84, %c0_85, %c0_86] : memref<1x16x384xf32, #tpu.memory_space<vmem>>, vector<1x1x384xf32>
    %140 = vector.shape_cast %139 : vector<1x1x384xf32> to vector<1x384xf32>
    %141 = vector.shape_cast %138 : vector<1x384xf32> to vector<1x1x384xf32>
    tpu.vector_store %arg20[%c0_84, %c0_85, %c0_86], %141 {strides = array<i32>} : memref<1x16x384xf32, #tpu.memory_space<vmem>>, vector<1x1x384xf32>,
    %142 = vector.extract_strided_slice %47 {offsets = [1, 0], sizes = [1, 384], strides = [1, 1]} : vector<16x384xf32> to vector<1x384xf32>
    %143 = vector.extract_strided_slice %91 {offsets = [0, 0], sizes = [1, 384], strides = [1, 1]} : vector<8x384xf32> to vector<1x384xf32>
    %144 = arith.addf %142, %143 : vector<1x384xf32>
    %145 = vector.extract_strided_slice %133 {offsets = [0, 0], sizes = [1, 384], strides = [1, 1]} : vector<8x384xf32> to vector<1x384xf32>
    %146 = arith.addf %144, %145 : vector<1x384xf32>
    %c0_87 = arith.constant 0 : index
    %c1 = arith.constant 1 : index
    %c0_88 = arith.constant 0 : index
    %147 = vector.load %arg20[%c0_87, %c1, %c0_88] : memref<1x16x384xf32, #tpu.memory_space<vmem>>, vector<1x1x384xf32>
    %148 = vector.shape_cast %147 : vector<1x1x384xf32> to vector<1x384xf32>
    %149 = vector.shape_cast %146 : vector<1x384xf32> to vector<1x1x384xf32>
    tpu.vector_store %arg20[%c0_87, %c1, %c0_88], %149 {strides = array<i32>} : memref<1x16x384xf32, #tpu.memory_space<vmem>>, vector<1x1x384xf32>,
    %150 = vector.extract_strided_slice %47 {offsets = [2, 0], sizes = [1, 384], strides = [1, 1]} : vector<16x384xf32> to vector<1x384xf32>
    %151 = vector.extract_strided_slice %74 {offsets = [1, 0], sizes = [1, 384], strides = [1, 1]} : vector<8x384xf32> to vector<1x384xf32>
    %152 = arith.addf %150, %151 : vector<1x384xf32>
    %153 = vector.extract_strided_slice %116 {offsets = [1, 0], sizes = [1, 384], strides = [1, 1]} : vector<8x384xf32> to vector<1x384xf32>
    %154 = arith.addf %152, %153 : vector<1x384xf32>
    %c0_89 = arith.constant 0 : index
    %c2 = arith.constant 2 : index
    %c0_90 = arith.constant 0 : index
    %155 = vector.load %arg20[%c0_89, %c2, %c0_90] : memref<1x16x384xf32, #tpu.memory_space<vmem>>, vector<1x1x384xf32>
    %156 = vector.shape_cast %155 : vector<1x1x384xf32> to vector<1x384xf32>
    %157 = vector.shape_cast %154 : vector<1x384xf32> to vector<1x1x384xf32>
    tpu.vector_store %arg20[%c0_89, %c2, %c0_90], %157 {strides = array<i32>} : memref<1x16x384xf32, #tpu.memory_space<vmem>>, vector<1x1x384xf32>,
    %158 = vector.extract_strided_slice %47 {offsets = [3, 0], sizes = [1, 384], strides = [1, 1]} : vector<16x384xf32> to vector<1x384xf32>
    %159 = vector.extract_strided_slice %91 {offsets = [1, 0], sizes = [1, 384], strides = [1, 1]} : vector<8x384xf32> to vector<1x384xf32>
    %160 = arith.addf %158, %159 : vector<1x384xf32>
    %161 = vector.extract_strided_slice %133 {offsets = [1, 0], sizes = [1, 384], strides = [1, 1]} : vector<8x384xf32> to vector<1x384xf32>
    %162 = arith.addf %160, %161 : vector<1x384xf32>
    %c0_91 = arith.constant 0 : index
    %c3 = arith.constant 3 : index
    %c0_92 = arith.constant 0 : index
    %163 = vector.load %arg20[%c0_91, %c3, %c0_92] : memref<1x16x384xf32, #tpu.memory_space<vmem>>, vector<1x1x384xf32>
    %164 = vector.shape_cast %163 : vector<1x1x384xf32> to vector<1x384xf32>
    %165 = vector.shape_cast %162 : vector<1x384xf32> to vector<1x1x384xf32>
    tpu.vector_store %arg20[%c0_91, %c3, %c0_92], %165 {strides = array<i32>} : memref<1x16x384xf32, #tpu.memory_space<vmem>>, vector<1x1x384xf32>,
    %166 = vector.extract_strided_slice %47 {offsets = [4, 0], sizes = [1, 384], strides = [1, 1]} : vector<16x384xf32> to vector<1x384xf32>
    %167 = vector.extract_strided_slice %74 {offsets = [2, 0], sizes = [1, 384], strides = [1, 1]} : vector<8x384xf32> to vector<1x384xf32>
    %168 = arith.addf %166, %167 : vector<1x384xf32>
    %169 = vector.extract_strided_slice %116 {offsets = [2, 0], sizes = [1, 384], strides = [1, 1]} : vector<8x384xf32> to vector<1x384xf32>
    %170 = arith.addf %168, %169 : vector<1x384xf32>
    %c0_93 = arith.constant 0 : index
    %c4 = arith.constant 4 : index
    %c0_94 = arith.constant 0 : index
    %171 = vector.load %arg20[%c0_93, %c4, %c0_94] : memref<1x16x384xf32, #tpu.memory_space<vmem>>, vector<1x1x384xf32>
    %172 = vector.shape_cast %171 : vector<1x1x384xf32> to vector<1x384xf32>
    %173 = vector.shape_cast %170 : vector<1x384xf32> to vector<1x1x384xf32>
    tpu.vector_store %arg20[%c0_93, %c4, %c0_94], %173 {strides = array<i32>} : memref<1x16x384xf32, #tpu.memory_space<vmem>>, vector<1x1x384xf32>,
    %174 = vector.extract_strided_slice %47 {offsets = [5, 0], sizes = [1, 384], strides = [1, 1]} : vector<16x384xf32> to vector<1x384xf32>
    %175 = vector.extract_strided_slice %91 {offsets = [2, 0], sizes = [1, 384], strides = [1, 1]} : vector<8x384xf32> to vector<1x384xf32>
    %176 = arith.addf %174, %175 : vector<1x384xf32>
    %177 = vector.extract_strided_slice %133 {offsets = [2, 0], sizes = [1, 384], strides = [1, 1]} : vector<8x384xf32> to vector<1x384xf32>
    %178 = arith.addf %176, %177 : vector<1x384xf32>
    %c0_95 = arith.constant 0 : index
    %c5 = arith.constant 5 : index
    %c0_96 = arith.constant 0 : index
    %179 = vector.load %arg20[%c0_95, %c5, %c0_96] : memref<1x16x384xf32, #tpu.memory_space<vmem>>, vector<1x1x384xf32>
    %180 = vector.shape_cast %179 : vector<1x1x384xf32> to vector<1x384xf32>
    %181 = vector.shape_cast %178 : vector<1x384xf32> to vector<1x1x384xf32>
    tpu.vector_store %arg20[%c0_95, %c5, %c0_96], %181 {strides = array<i32>} : memref<1x16x384xf32, #tpu.memory_space<vmem>>, vector<1x1x384xf32>,
    %182 = vector.extract_strided_slice %47 {offsets = [6, 0], sizes = [1, 384], strides = [1, 1]} : vector<16x384xf32> to vector<1x384xf32>
    %183 = vector.extract_strided_slice %74 {offsets = [3, 0], sizes = [1, 384], strides = [1, 1]} : vector<8x384xf32> to vector<1x384xf32>
    %184 = arith.addf %182, %183 : vector<1x384xf32>
    %185 = vector.extract_strided_slice %116 {offsets = [3, 0], sizes = [1, 384], strides = [1, 1]} : vector<8x384xf32> to vector<1x384xf32>
    %186 = arith.addf %184, %185 : vector<1x384xf32>
    %c0_97 = arith.constant 0 : index
    %c6 = arith.constant 6 : index
    %c0_98 = arith.constant 0 : index
    %187 = vector.load %arg20[%c0_97, %c6, %c0_98] : memref<1x16x384xf32, #tpu.memory_space<vmem>>, vector<1x1x384xf32>
    %188 = vector.shape_cast %187 : vector<1x1x384xf32> to vector<1x384xf32>
    %189 = vector.shape_cast %186 : vector<1x384xf32> to vector<1x1x384xf32>
    tpu.vector_store %arg20[%c0_97, %c6, %c0_98], %189 {strides = array<i32>} : memref<1x16x384xf32, #tpu.memory_space<vmem>>, vector<1x1x384xf32>,
    %190 = vector.extract_strided_slice %47 {offsets = [7, 0], sizes = [1, 384], strides = [1, 1]} : vector<16x384xf32> to vector<1x384xf32>
    %191 = vector.extract_strided_slice %91 {offsets = [3, 0], sizes = [1, 384], strides = [1, 1]} : vector<8x384xf32> to vector<1x384xf32>
    %192 = arith.addf %190, %191 : vector<1x384xf32>
    %193 = vector.extract_strided_slice %133 {offsets = [3, 0], sizes = [1, 384], strides = [1, 1]} : vector<8x384xf32> to vector<1x384xf32>
    %194 = arith.addf %192, %193 : vector<1x384xf32>
    %c0_99 = arith.constant 0 : index
    %c7 = arith.constant 7 : index
    %c0_100 = arith.constant 0 : index
    %195 = vector.load %arg20[%c0_99, %c7, %c0_100] : memref<1x16x384xf32, #tpu.memory_space<vmem>>, vector<1x1x384xf32>
    %196 = vector.shape_cast %195 : vector<1x1x384xf32> to vector<1x384xf32>
    %197 = vector.shape_cast %194 : vector<1x384xf32> to vector<1x1x384xf32>
    tpu.vector_store %arg20[%c0_99, %c7, %c0_100], %197 {strides = array<i32>} : memref<1x16x384xf32, #tpu.memory_space<vmem>>, vector<1x1x384xf32>,
    %198 = vector.extract_strided_slice %47 {offsets = [8, 0], sizes = [1, 384], strides = [1, 1]} : vector<16x384xf32> to vector<1x384xf32>
    %199 = vector.extract_strided_slice %74 {offsets = [4, 0], sizes = [1, 384], strides = [1, 1]} : vector<8x384xf32> to vector<1x384xf32>
    %200 = arith.addf %198, %199 : vector<1x384xf32>
    %201 = vector.extract_strided_slice %116 {offsets = [4, 0], sizes = [1, 384], strides = [1, 1]} : vector<8x384xf32> to vector<1x384xf32>
    %202 = arith.addf %200, %201 : vector<1x384xf32>
    %c0_101 = arith.constant 0 : index
    %c8 = arith.constant 8 : index
    %c0_102 = arith.constant 0 : index
    %203 = vector.load %arg20[%c0_101, %c8, %c0_102] : memref<1x16x384xf32, #tpu.memory_space<vmem>>, vector<1x1x384xf32>
    %204 = vector.shape_cast %203 : vector<1x1x384xf32> to vector<1x384xf32>
    %205 = vector.shape_cast %202 : vector<1x384xf32> to vector<1x1x384xf32>
    tpu.vector_store %arg20[%c0_101, %c8, %c0_102], %205 {strides = array<i32>} : memref<1x16x384xf32, #tpu.memory_space<vmem>>, vector<1x1x384xf32>,
    %206 = vector.extract_strided_slice %47 {offsets = [9, 0], sizes = [1, 384], strides = [1, 1]} : vector<16x384xf32> to vector<1x384xf32>
    %207 = vector.extract_strided_slice %91 {offsets = [4, 0], sizes = [1, 384], strides = [1, 1]} : vector<8x384xf32> to vector<1x384xf32>
    %208 = arith.addf %206, %207 : vector<1x384xf32>
    %209 = vector.extract_strided_slice %133 {offsets = [4, 0], sizes = [1, 384], strides = [1, 1]} : vector<8x384xf32> to vector<1x384xf32>
    %210 = arith.addf %208, %209 : vector<1x384xf32>
    %c0_103 = arith.constant 0 : index
    %c9 = arith.constant 9 : index
    %c0_104 = arith.constant 0 : index
    %211 = vector.load %arg20[%c0_103, %c9, %c0_104] : memref<1x16x384xf32, #tpu.memory_space<vmem>>, vector<1x1x384xf32>
    %212 = vector.shape_cast %211 : vector<1x1x384xf32> to vector<1x384xf32>
    %213 = vector.shape_cast %210 : vector<1x384xf32> to vector<1x1x384xf32>
    tpu.vector_store %arg20[%c0_103, %c9, %c0_104], %213 {strides = array<i32>} : memref<1x16x384xf32, #tpu.memory_space<vmem>>, vector<1x1x384xf32>,
    %214 = vector.extract_strided_slice %47 {offsets = [10, 0], sizes = [1, 384], strides = [1, 1]} : vector<16x384xf32> to vector<1x384xf32>
    %215 = vector.extract_strided_slice %74 {offsets = [5, 0], sizes = [1, 384], strides = [1, 1]} : vector<8x384xf32> to vector<1x384xf32>
    %216 = arith.addf %214, %215 : vector<1x384xf32>
    %217 = vector.extract_strided_slice %116 {offsets = [5, 0], sizes = [1, 384], strides = [1, 1]} : vector<8x384xf32> to vector<1x384xf32>
    %218 = arith.addf %216, %217 : vector<1x384xf32>
    %c0_105 = arith.constant 0 : index
    %c10 = arith.constant 10 : index
    %c0_106 = arith.constant 0 : index
    %219 = vector.load %arg20[%c0_105, %c10, %c0_106] : memref<1x16x384xf32, #tpu.memory_space<vmem>>, vector<1x1x384xf32>
    %220 = vector.shape_cast %219 : vector<1x1x384xf32> to vector<1x384xf32>
    %221 = vector.shape_cast %218 : vector<1x384xf32> to vector<1x1x384xf32>
    tpu.vector_store %arg20[%c0_105, %c10, %c0_106], %221 {strides = array<i32>} : memref<1x16x384xf32, #tpu.memory_space<vmem>>, vector<1x1x384xf32>,
    %222 = vector.extract_strided_slice %47 {offsets = [11, 0], sizes = [1, 384], strides = [1, 1]} : vector<16x384xf32> to vector<1x384xf32>
    %223 = vector.extract_strided_slice %91 {offsets = [5, 0], sizes = [1, 384], strides = [1, 1]} : vector<8x384xf32> to vector<1x384xf32>
    %224 = arith.addf %222, %223 : vector<1x384xf32>
    %225 = vector.extract_strided_slice %133 {offsets = [5, 0], sizes = [1, 384], strides = [1, 1]} : vector<8x384xf32> to vector<1x384xf32>
    %226 = arith.addf %224, %225 : vector<1x384xf32>
    %c0_107 = arith.constant 0 : index
    %c11 = arith.constant 11 : index
    %c0_108 = arith.constant 0 : index
    %227 = vector.load %arg20[%c0_107, %c11, %c0_108] : memref<1x16x384xf32, #tpu.memory_space<vmem>>, vector<1x1x384xf32>
    %228 = vector.shape_cast %227 : vector<1x1x384xf32> to vector<1x384xf32>
    %229 = vector.shape_cast %226 : vector<1x384xf32> to vector<1x1x384xf32>
    tpu.vector_store %arg20[%c0_107, %c11, %c0_108], %229 {strides = array<i32>} : memref<1x16x384xf32, #tpu.memory_space<vmem>>, vector<1x1x384xf32>,
    %230 = vector.extract_strided_slice %47 {offsets = [12, 0], sizes = [1, 384], strides = [1, 1]} : vector<16x384xf32> to vector<1x384xf32>
    %231 = vector.extract_strided_slice %74 {offsets = [6, 0], sizes = [1, 384], strides = [1, 1]} : vector<8x384xf32> to vector<1x384xf32>
    %232 = arith.addf %230, %231 : vector<1x384xf32>
    %233 = vector.extract_strided_slice %116 {offsets = [6, 0], sizes = [1, 384], strides = [1, 1]} : vector<8x384xf32> to vector<1x384xf32>
    %234 = arith.addf %232, %233 : vector<1x384xf32>
    %c0_109 = arith.constant 0 : index
    %c12 = arith.constant 12 : index
    %c0_110 = arith.constant 0 : index
    %235 = vector.load %arg20[%c0_109, %c12, %c0_110] : memref<1x16x384xf32, #tpu.memory_space<vmem>>, vector<1x1x384xf32>
    %236 = vector.shape_cast %235 : vector<1x1x384xf32> to vector<1x384xf32>
    %237 = vector.shape_cast %234 : vector<1x384xf32> to vector<1x1x384xf32>
    tpu.vector_store %arg20[%c0_109, %c12, %c0_110], %237 {strides = array<i32>} : memref<1x16x384xf32, #tpu.memory_space<vmem>>, vector<1x1x384xf32>,
    %238 = vector.extract_strided_slice %47 {offsets = [13, 0], sizes = [1, 384], strides = [1, 1]} : vector<16x384xf32> to vector<1x384xf32>
    %239 = vector.extract_strided_slice %91 {offsets = [6, 0], sizes = [1, 384], strides = [1, 1]} : vector<8x384xf32> to vector<1x384xf32>
    %240 = arith.addf %238, %239 : vector<1x384xf32>
    %241 = vector.extract_strided_slice %133 {offsets = [6, 0], sizes = [1, 384], strides = [1, 1]} : vector<8x384xf32> to vector<1x384xf32>
    %242 = arith.addf %240, %241 : vector<1x384xf32>
    %c0_111 = arith.constant 0 : index
    %c13 = arith.constant 13 : index
    %c0_112 = arith.constant 0 : index
    %243 = vector.load %arg20[%c0_111, %c13, %c0_112] : memref<1x16x384xf32, #tpu.memory_space<vmem>>, vector<1x1x384xf32>
    %244 = vector.shape_cast %243 : vector<1x1x384xf32> to vector<1x384xf32>
    %245 = vector.shape_cast %242 : vector<1x384xf32> to vector<1x1x384xf32>
    tpu.vector_store %arg20[%c0_111, %c13, %c0_112], %245 {strides = array<i32>} : memref<1x16x384xf32, #tpu.memory_space<vmem>>, vector<1x1x384xf32>,
    %246 = vector.extract_strided_slice %47 {offsets = [14, 0], sizes = [1, 384], strides = [1, 1]} : vector<16x384xf32> to vector<1x384xf32>
    %247 = vector.extract_strided_slice %74 {offsets = [7, 0], sizes = [1, 384], strides = [1, 1]} : vector<8x384xf32> to vector<1x384xf32>
    %248 = arith.addf %246, %247 : vector<1x384xf32>
    %249 = vector.extract_strided_slice %116 {offsets = [7, 0], sizes = [1, 384], strides = [1, 1]} : vector<8x384xf32> to vector<1x384xf32>
    %250 = arith.addf %248, %249 : vector<1x384xf32>
    %c0_113 = arith.constant 0 : index
    %c14 = arith.constant 14 : index
    %c0_114 = arith.constant 0 : index
    %251 = vector.load %arg20[%c0_113, %c14, %c0_114] : memref<1x16x384xf32, #tpu.memory_space<vmem>>, vector<1x1x384xf32>
    %252 = vector.shape_cast %251 : vector<1x1x384xf32> to vector<1x384xf32>
    %253 = vector.shape_cast %250 : vector<1x384xf32> to vector<1x1x384xf32>
    tpu.vector_store %arg20[%c0_113, %c14, %c0_114], %253 {strides = array<i32>} : memref<1x16x384xf32, #tpu.memory_space<vmem>>, vector<1x1x384xf32>,
    %254 = vector.extract_strided_slice %47 {offsets = [15, 0], sizes = [1, 384], strides = [1, 1]} : vector<16x384xf32> to vector<1x384xf32>
    %255 = vector.extract_strided_slice %91 {offsets = [7, 0], sizes = [1, 384], strides = [1, 1]} : vector<8x384xf32> to vector<1x384xf32>
    %256 = arith.addf %254, %255 : vector<1x384xf32>
    %257 = vector.extract_strided_slice %133 {offsets = [7, 0], sizes = [1, 384], strides = [1, 1]} : vector<8x384xf32> to vector<1x384xf32>
    %258 = arith.addf %256, %257 : vector<1x384xf32>
    %c0_115 = arith.constant 0 : index
    %c15 = arith.constant 15 : index
    %c0_116 = arith.constant 0 : index
    %259 = vector.load %arg20[%c0_115, %c15, %c0_116] : memref<1x16x384xf32, #tpu.memory_space<vmem>>, vector<1x1x384xf32>
    %260 = vector.shape_cast %259 : vector<1x1x384xf32> to vector<1x384xf32>
    %261 = vector.shape_cast %258 : vector<1x384xf32> to vector<1x1x384xf32>
    tpu.vector_store %arg20[%c0_115, %c15, %c0_116], %261 {strides = array<i32>} : memref<1x16x384xf32, #tpu.memory_space<vmem>>, vector<1x1x384xf32>,
    return
  }
  func.func @transform_0(%arg0: i32) -> (i32, i32, i32) {
    %c0_i32 = arith.constant 0 : i32
    %c0_i32_0 = arith.constant 0 : i32
    %c0_i32_1 = arith.constant 0 : i32
    return %arg0, %c0_i32, %c0_i32_0 : i32, i32, i32
  }
  func.func @transform_1(%arg0: i32) -> (i32, i32, i32) {
    %c0_i32 = arith.constant 0 : i32
    %c0_i32_0 = arith.constant 0 : i32
    %c0_i32_1 = arith.constant 0 : i32
    return %arg0, %c0_i32, %c0_i32_0 : i32, i32, i32
  }
  func.func @transform_2(%arg0: i32) -> (i32, i32) {
    %c0_i32 = arith.constant 0 : i32
    %c0_i32_0 = arith.constant 0 : i32
    %c0_i32_1 = arith.constant 0 : i32
    return %c0_i32, %c0_i32_0 : i32, i32
  }
  func.func @transform_3(%arg0: i32) -> (i32, i32) {
    %c0_i32 = arith.constant 0 : i32
    %c0_i32_0 = arith.constant 0 : i32
    %c0_i32_1 = arith.constant 0 : i32
    return %c0_i32, %c0_i32_0 : i32, i32
  }
  func.func @transform_4(%arg0: i32) -> (i32, i32) {
    %c0_i32 = arith.constant 0 : i32
    %c0_i32_0 = arith.constant 0 : i32
    %c0_i32_1 = arith.constant 0 : i32
    return %c0_i32, %c0_i32_0 : i32, i32
  }
  func.func @transform_5(%arg0: i32) -> (i32, i32) {
    %c0_i32 = arith.constant 0 : i32
    %c0_i32_0 = arith.constant 0 : i32
    %c0_i32_1 = arith.constant 0 : i32
    return %c0_i32, %c0_i32_0 : i32, i32
  }
  func.func @transform_6(%arg0: i32) -> (i32, i32) {
    %c0_i32 = arith.constant 0 : i32
    %c0_i32_0 = arith.constant 0 : i32
    %c0_i32_1 = arith.constant 0 : i32
    return %c0_i32, %c0_i32_0 : i32, i32
  }
  func.func @transform_7(%arg0: i32) -> (i32, i32) {
    %c0_i32 = arith.constant 0 : i32
    %c0_i32_0 = arith.constant 0 : i32
    %c0_i32_1 = arith.constant 0 : i32
    return %c0_i32, %c0_i32_0 : i32, i32
  }
  func.func @transform_8(%arg0: i32) -> (i32, i32) {
    %c0_i32 = arith.constant 0 : i32
    %c0_i32_0 = arith.constant 0 : i32
    %c0_i32_1 = arith.constant 0 : i32
    return %c0_i32, %c0_i32_0 : i32, i32
  }
  func.func @transform_9(%arg0: i32) -> (i32, i32) {
    %c0_i32 = arith.constant 0 : i32
    %c0_i32_0 = arith.constant 0 : i32
    %c0_i32_1 = arith.constant 0 : i32
    return %c0_i32, %c0_i32_0 : i32, i32
  }
  func.func @transform_10(%arg0: i32) -> (i32, i32) {
    %c0_i32 = arith.constant 0 : i32
    %c0_i32_0 = arith.constant 0 : i32
    %c0_i32_1 = arith.constant 0 : i32
    return %c0_i32, %c0_i32_0 : i32, i32
  }
  func.func @transform_11(%arg0: i32) -> (i32, i32) {
    %c0_i32 = arith.constant 0 : i32
    %c0_i32_0 = arith.constant 0 : i32
    %c0_i32_1 = arith.constant 0 : i32
    return %c0_i32, %c0_i32_0 : i32, i32
  }
  func.func @transform_12(%arg0: i32) -> (i32, i32) {
    %c0_i32 = arith.constant 0 : i32
    %c0_i32_0 = arith.constant 0 : i32
    %c0_i32_1 = arith.constant 0 : i32
    return %c0_i32, %c0_i32_0 : i32, i32
  }
  func.func @transform_13(%arg0: i32) -> (i32, i32) {
    %c0_i32 = arith.constant 0 : i32
    %c0_i32_0 = arith.constant 0 : i32
    %c0_i32_1 = arith.constant 0 : i32
    return %c0_i32, %c0_i32_0 : i32, i32
  }
  func.func @transform_14(%arg0: i32) -> (i32, i32) {
    %c0_i32 = arith.constant 0 : i32
    %c0_i32_0 = arith.constant 0 : i32
    %c0_i32_1 = arith.constant 0 : i32
    return %c0_i32, %c0_i32_0 : i32, i32
  }
  func.func @transform_15(%arg0: i32) -> (i32, i32) {
    %c0_i32 = arith.constant 0 : i32
    %c0_i32_0 = arith.constant 0 : i32
    %c0_i32_1 = arith.constant 0 : i32
    return %c0_i32, %c0_i32_0 : i32, i32
  }
  func.func @transform_16(%arg0: i32) -> (i32, i32) {
    %c0_i32 = arith.constant 0 : i32
    %c0_i32_0 = arith.constant 0 : i32
    %c0_i32_1 = arith.constant 0 : i32
    return %c0_i32, %c0_i32_0 : i32, i32
  }
  func.func @transform_17(%arg0: i32) -> (i32, i32) {
    %c0_i32 = arith.constant 0 : i32
    %c0_i32_0 = arith.constant 0 : i32
    %c0_i32_1 = arith.constant 0 : i32
    return %c0_i32, %c0_i32_0 : i32, i32
  }
  func.func @transform_18(%arg0: i32) -> (i32, i32) {
    %c0_i32 = arith.constant 0 : i32
    %c0_i32_0 = arith.constant 0 : i32
    %c0_i32_1 = arith.constant 0 : i32
    return %c0_i32, %c0_i32_0 : i32, i32
  }
  func.func @transform_19(%arg0: i32) -> (i32, i32, i32) {
    %c0_i32 = arith.constant 0 : i32
    %c0_i32_0 = arith.constant 0 : i32
    %c0_i32_1 = arith.constant 0 : i32
    return %arg0, %c0_i32, %c0_i32_0 : i32, i32, i32
  }
  func.func @transform_20(%arg0: i32) -> (i32, i32, i32) {
    %c0_i32 = arith.constant 0 : i32
    %c0_i32_0 = arith.constant 0 : i32
    %c0_i32_1 = arith.constant 0 : i32
    return %arg0, %c0_i32, %c0_i32_0 : i32, i32, i32
  }
}

</mosaic_0001>

<bundles_post_ra>
// kernel: tpu_custom_call.1
= control target key start
LH: loop header
LB: loop body
LE: loop exit
PB: predicated region body
PF: predicated region fallthrough
CT: control target
= control target key end

     0   :  { %s7975_s0 = inlined_call_operand.vmem [shape: f32[2,16,64], index: 0, kind: input, shape index: {}]   ;;  %s7976_s1 = inlined_call_operand.hbm [shape: f32[2,8,64], index: 1, kind: input, shape index: {}]   ;;  %s7977_s2 = inlined_call_operand.vmem [shape: bf16[240,64], index: 2, kind: input, shape index: {}]   ;;  %s7978_s3 = inlined_call_operand.hbm [shape: f32[1,64], index: 3, kind: input, shape index: {}]   ;;  %s7979_s4 = inlined_call_operand.vmem [shape: f32[64,8], index: 4, kind: input, shape index: {}]   ;;  %s7980_s5 = inlined_call_operand.<no memory space> [shape: f32[1,1], index: 5, kind: input, shape index: {}]   ;;  %s7981_s6 = inlined_call_operand.vmem [shape: f32[128,16], index: 6, kind: input, shape index: {}]   ;;  %s7982_s7 = inlined_call_operand.hbm [shape: f32[16,128], index: 7, kind: input, shape index: {}]   ;;  %s7983_s8 = inlined_call_operand.hbm [shape: f32[1,128], index: 8, kind: input, shape index: {}]   ;;  %s7984_s9 = inlined_call_operand.vmem [shape: f32[128,384], index: 9, kind: input, shape index: {}]   ;;  %s7985_s10 = inlined_call_operand.hbm [shape: bf16[64,128], index: 10, kind: input, shape index: {}]   ;;  %s7986_s11 = inlined_call_operand.hbm [shape: f32[1,128], index: 11, kind: input, shape index: {}]   ;;  %s7987_s12 = inlined_call_operand.hbm [shape: f32[128,384], index: 12, kind: input, shape index: {}]   ;;  %s7988_s13 = inlined_call_operand.hbm [shape: bf16[160,128], index: 13, kind: input, shape index: {}]   ;;  %s7989_s14 = inlined_call_operand.hbm [shape: bf16[160,128], index: 14, kind: input, shape index: {}]   ;;  %s7990_s15 = inlined_call_operand.vmem [shape: f32[1,128], index: 15, kind: input, shape index: {}]   ;;  %s7991_s16 = inlined_call_operand.hbm [shape: f32[128,384], index: 16, kind: input, shape index: {}]   ;;  %s7992_s17 = inlined_call_operand.hbm [shape: bf16[160,128], index: 17, kind: input, shape index: {}]   ;;  %s7993_s18 = inlined_call_operand.hbm [shape: bf16[160,128], index: 18, kind: input, shape index: {}]   ;;  %s7994_s19 = inlined_call_operand.hbm [shape: f32[2,16,384], index: 19, kind: output, shape index: {0}]   ;;  %s7995_s20 = inlined_call_operand.hbm [shape: f32[2,8,8], index: 20, kind: output, shape index: {1}]  }
   0x1   :  { %8076 = sst [smem:[#allocation67_spill]] %s7975_s0  ;;  %v26_v0 = vstv %s7980_s5 }
   0x2   :  { %8077 = sst [smem:[#allocation68_spill]] %s7976_s1  ;;  %27 = vst [vmem:[#allocation2] sm:$0x1] %v26_v0 }
   0x3   :  { %8078 = sst [smem:[#allocation69_spill]] %s7977_s2 }
   0x4   :  { %8079 = sst [smem:[#allocation70_spill]] %s7978_s3 }
   0x5   :  { %8080 = sst [smem:[#allocation71_spill]] %s7979_s4 }
   0x6   :  { %8081 = sst [smem:[#allocation72_spill]] %s7981_s6 }
   0x7   :  { %8082 = sst [smem:[#allocation73_spill]] %s7982_s7 }
   0x8   :  { %8083 = sst [smem:[#allocation74_spill]] %s7983_s8 }
   0x9   :  { %8084 = sst [smem:[#allocation75_spill]] %s7985_s10 }
   0xa   :  { %8085 = sst [smem:[#allocation76_spill]] %s7986_s11 }
   0xb   :  { %8086 = sst [smem:[#allocation77_spill]] %s7987_s12 }
   0xc   :  { %8087 = sst [smem:[#allocation78_spill]] %s7988_s13 }
   0xd   :  { %8088 = sst [smem:[#allocation79_spill]] %s7989_s14 }
   0xe   :  { %8089 = sst [smem:[#allocation80_spill]] %s7991_s16 }
   0xf   :  { %8090 = sst [smem:[#allocation81_spill]] %s7994_s19 }
  0x10   :  { %8091 = sst [smem:[#allocation82_spill]] %s7995_s20 }
  0x11   :  { %28 = vsyncpa [#allocation4], 0 }
  0x12   :  { %30 = vsyncpa [#allocation4 + $0x1], 0 }
  0x13   :  { %31 = vsyncpa [#allocation7], 0 }
  0x14   :  { %32 = vsyncpa [#allocation10], 0 }
  0x15   :  { %33 = vsyncpa [#allocation13], 0 }
  0x16   :  { %34 = vsyncpa [#allocation16], 0 }
  0x17   :  { %35 = vsyncpa [#allocation19], 0 }
  0x18   :  { %36 = vsyncpa [#allocation22], 0 }
  0x19   :  { %37 = vsyncpa [#allocation5], 0 }
  0x1a   :  { %39 = vsyncpa [#allocation5 + $0x1], 0 }
  0x1b   :  { %40 = vsyncpa [#allocation25], 0 }
  0x1c   :  { %42 = vsyncpa [#allocation25 + $0x1], 0  ;;  %s6116_s23 = smov 0   ;;  %s6118_s24 = smov 0  }
  0x1d   :  { %s6120_s2 = smov 0   ;;  %s6122_s5 = smov 0  }
  0x1e LB: > { %s5979_s25 = smov [#allocation6]   ;;  %s6137_s26 = sadd.s32 4294967295, %s5977_s5   ;;  %s5977_s5 = sphi %s6122_s5, %s8258_s5   ;;  %s5973_s2 = sphi %s6120_s2, %s8257_s2   ;;  %s5969_s24 = sphi %s6118_s24, %s8256_s24   ;;  %s5965_s23 = sphi %s6116_s23, %s8255_s23  }
  0x1f   : > { %s530_s3 = sshll.u32 %s5979_s25, 4  ;;  %p4516_p0 = scmp.ge.s32.totalorder %s5977_s5, 1  ;;  %s531_s3 = int_to_ptr.vmem [resolvable:$true] %s530_s3 }
  0x20   : > { %p8001_p1 = scmp.eq.s32.totalorder %s6137_s26, 0  ;;  %p514_p2 = scmp.lt.s32.totalorder %s5977_s5, 3 }
  0x21   : > { %s5980_s28 = smov [#allocation9]   ;;  %s5981_s29 = smov [#allocation12]  }
  0x22   : > { %p6142_p3 = pnand %p4516_p0, %p514_p2  ;;  %s563_s4 = sshll.u32 %s5980_s28, 4  ;;  %s564_s4 = int_to_ptr.vmem [resolvable:$true] %s563_s4 }
  0x23   : > { %s590_s30 = sshll.u32 %s5981_s29, 4  ;;  %s5556_s1 = scalar_lea.vmem %s531_s3, 16  ;;  %s6155_s30 = int_to_ptr.vmem [resolvable:$true] %s590_s30 }
  0x24   : > { %s8092_s27 = scalar_select %p6142_p3, 1, 0 }
  0x25   : > { %p5315_p5 = pneg %p6142_p3  ;;  %p5557_p8 = scmp.ne.s32.totalorder %s531_s3, %s5556_s1 }
  0x26   : > { %s5563_s22 = scalar_lea.vmem %s531_s3, 32  ;;  %p5564_p11 = scmp.lt.s32.totalorder %s531_s3, %s531_s3 }
  0x27   : > { %p6151_p6 = pnand %p5315_p5, %p8001_p1  ;;  %p5565_p12 = scmp.lt.s32.totalorder %s5563_s22, %s5556_s1 }
  0x29   : > { %p6159_p7 = pneg %p6151_p6  ;;  %p5566_p13 = por %p5565_p12, %p5564_p11 }
  0x2b   : > { %p5559_p9 = pnand %p5557_p8, %p6159_p7 }
  0x2d   : > { %p5560_p10 = pneg %p5559_p9 }
  0x2f   : > { %p5567_p0 = pnand %p5566_p13, %p5560_p10 }
  0x31   : > { %5570 = shalt.err (!%p5567_p0)
}
  0x32   : > { %s8095_s29 = sld [smem:[#allocation70_spill]]  ;;  %s5582_s19 = scalar_lea.vmem %s564_s4, 16 }
  0x33   : > { %p5583_p2 = scmp.ne.s32.totalorder %s564_s4, %s5582_s19  ;;  %s5589_s20 = scalar_lea.vmem %s564_s4, 32 }
  0x34   : > { %p5590_p8 = scmp.lt.s32.totalorder %s564_s4, %s564_s4  ;;  %p5591_p9 = scmp.lt.s32.totalorder %s5589_s20, %s5582_s19 }
  0x35   : > { %p5585_p5 = pnand %p5583_p2, %p6159_p7 }
  0x36   : > { %p5592_p1 = por %p5591_p9, %p5590_p8 }
  0x37   : > { %p5586_p4 = pneg %p5585_p5 }
  0x38   : > { %5318 = dma.hbm_to_vmem [thread:$0]  (!%p6151_p6), %s8095_s29, 16, %s531_s3, [#allocation7]  }
  0x39   : > { %p5593_p3 = pnand %p5592_p1, %p5586_p4 }
  0x3b   : > { %5596 = shalt.err (!%p5593_p3)
}
  0x3c   : > { %s8096_s8 = sld [smem:[#allocation74_spill]]  ;;  %s5608_s3 = scalar_lea.vmem %s6155_s30, 16 }
  0x3d   : > { %p5609_p10 = scmp.ne.s32.totalorder %s6155_s30, %s5608_s3  ;;  %s5615_s19 = scalar_lea.vmem %s6155_s30, 32 }
  0x3e   : > { %p5616_p1 = scmp.lt.s32.totalorder %s6155_s30, %s6155_s30  ;;  %p5617_p3 = scmp.lt.s32.totalorder %s5615_s19, %s5608_s3 }
  0x3f   : > { %p5611_p11 = pnand %p5609_p10, %p6159_p7 }
  0x40   : > { %p5618_p4 = por %p5617_p3, %p5616_p1 }
  0x41   : > { %p5612_p12 = pneg %p5611_p11 }
  0x42   : > { %5324 = dma.hbm_to_vmem [thread:$0]  (!%p6151_p6), %s8096_s8, 16, %s564_s4, [#allocation10]  }
  0x43   : > { %p5619_p13 = pnand %p5618_p4, %p5612_p12 }
  0x45   : > { %5622 = shalt.err (!%p5619_p13)
}
  0x46   : > { %s8097_s11 = sld [smem:[#allocation76_spill]]  ;;  %s5982_s4 = smov [#allocation15]  }
  0x47   : > { %s613_s28 = sshll.u32 %s5982_s4, 4  ;;  %s614_s28 = int_to_ptr.vmem [resolvable:$true] %s613_s28 }
  0x48   : > { %s5634_s29 = scalar_lea.vmem %s614_s28, 1280  ;;  %p5642_p8 = scmp.lt.s32.totalorder %s614_s28, %s614_s28 }
  0x49   : > { %p5635_p0 = scmp.ne.s32.totalorder %s614_s28, %s5634_s29  ;;  %p5643_p9 = scmp.lt.s32.totalorder %s5634_s29, %s5634_s29 }
  0x4b   : > { %p5637_p2 = pnand %p5635_p0, %p6159_p7  ;;  %p5644_p10 = por %p5643_p9, %p5642_p8 }
  0x4c   : > { %5330 = dma.hbm_to_vmem [thread:$0]  (!%p6151_p6), %s8097_s11, 16, %s6155_s30, [#allocation13]  }
  0x4d   : > { %p5638_p5 = pneg %p5637_p2 }
  0x4f   : > { %p5645_p11 = pnand %p5644_p10, %p5638_p5 }
  0x51   : > { %5648 = shalt.err (!%p5645_p11)
}
  0x52   : > { %s8003_s1 = smov 64   ;;  %s8005_s22 = smov 4  }
  0x53   : > { %s8098_s13 = sld [smem:[#allocation78_spill]]  ;;  %s5985_s19 = smov [#allocation18]  }
  0x54   : > { %s642_s20 = sshll.u32 %s5985_s19, 4  ;;  %s5986_s25 = smov [#allocation8]   ;;  %s643_s20 = int_to_ptr.vmem [resolvable:$true] %s642_s20 }
  0x55   : > { %s549_s4 = sshll.u32 %s5986_s25, 4  ;;  %s5660_s29 = scalar_lea.vmem %s643_s20, 6144  ;;  %s550_s4 = int_to_ptr.vmem [resolvable:$true] %s549_s4 }
  0x56   : > { %p5661_p12 = scmp.ne.s32.totalorder %s643_s20, %s5660_s29  ;;  %p5668_p4 = scmp.lt.s32.totalorder %s643_s20, %s643_s20 }
  0x57   : > { %p5669_p13 = scmp.lt.s32.totalorder %s5660_s29, %s5660_s29 }
  0x58   : > { %p5663_p1 = pnand %p5661_p12, %p6159_p7 }
  0x59   : > { %5336 = dma.hbm_to_vmem [thread:$0]  (!%p6151_p6), %s8098_s13, 1280, %s614_s28, [#allocation16], %s8003_s1, %s8003_s1, %s8005_s22  }
  0x5a   : > { %p5664_p3 = pneg %p5663_p1  ;;  %p5670_p0 = por %p5669_p13, %p5668_p4 }
  0x5c   : > { %p5671_p2 = pnand %p5670_p0, %p5664_p3 }
  0x5e   : > { %5674 = shalt.err (!%p5671_p2)
}
  0x5f   : > { %s8007_s8 = smov 384   ;;  %s8008_s28 = smov 24  }
  0x60   : > { %s8099_s16 = sld [smem:[#allocation80_spill]]  ;;  %s5686_s19 = scalar_lea.vmem %s550_s4, 256 }
  0x61   : > { %p5687_p5 = scmp.ne.s32.totalorder %s550_s4, %s5686_s19  ;;  %p5694_p10 = scmp.lt.s32.totalorder %s550_s4, %s550_s4 }
  0x62   : > { %p5695_p11 = scmp.lt.s32.totalorder %s5686_s19, %s5686_s19 }
  0x63   : > { %p5689_p8 = pnand %p5687_p5, %p6159_p7 }
  0x64   : > { %p5696_p12 = por %p5695_p11, %p5694_p10 }
  0x65   : > { %p5690_p9 = pneg %p5689_p8 }
  0x66   : > { %5342 = dma.hbm_to_vmem [thread:$0]  (!%p6151_p6), %s8099_s16, 6144, %s643_s20, [#allocation19], %s8007_s8, %s8007_s8, %s8008_s28  }
  0x67   : > { %p5697_p1 = pnand %p5696_p12, %p5690_p9 }
  0x69   : > { %5700 = shalt.err (!%p5697_p1)
}
  0x6a   : > { %s5989_s25 = smov 128   ;;  %s5990_s29 = smov 8  }
  0x6b   : > { %s8100_s7 = sld [smem:[#allocation73_spill]]  ;;  %s5991_s20 = smov [#allocation11]  }
  0x6c   : > { %s576_s30 = sshll.u32 %s5991_s20, 4  ;;  %s5992_s3 = smov [#allocation14]   ;;  %s577_s30 = int_to_ptr.vmem [resolvable:$true] %s576_s30 }
  0x6d   : > { %s600_s8 = sshll.u32 %s5992_s3, 4  ;;  %s5712_s28 = scalar_lea.vmem %s577_s30, 512  ;;  %s601_s8 = int_to_ptr.vmem [resolvable:$true] %s600_s8 }
  0x6e   : > { %p5713_p3 = scmp.ne.s32.totalorder %s577_s30, %s5712_s28  ;;  %p5720_p0 = scmp.lt.s32.totalorder %s577_s30, %s577_s30 }
  0x6f   : > { %p5721_p2 = scmp.lt.s32.totalorder %s5712_s28, %s5712_s28 }
  0x70   : > { %p5715_p4 = pnand %p5713_p3, %p6159_p7 }
  0x71   : > { %5321 = dma.hbm_to_vmem [thread:$0]  (!%p6151_p6), %s8100_s7, 256, %s550_s4, [#allocation7], %s5989_s25, %s5989_s25, %s5990_s29  }
  0x72   : > { %p5716_p13 = pneg %p5715_p4  ;;  %p5722_p5 = por %p5721_p2, %p5720_p0 }
  0x74   : > { %p5723_p8 = pnand %p5722_p5, %p5716_p13 }
  0x76   : > { %5726 = shalt.err (!%p5723_p8)
}
  0x77   : > { %s8101_s1 = smov 4   ;;  %s8102_s22 = smov 64  }
  0x78   : > { %s8103_s10 = sld [smem:[#allocation75_spill]]  ;;  %s5738_s25 = scalar_lea.vmem %s601_s8, 6144 }
  0x79   : > { %p5739_p9 = scmp.ne.s32.totalorder %s601_s8, %s5738_s25  ;;  %p5746_p12 = scmp.lt.s32.totalorder %s601_s8, %s601_s8 }
  0x7a   : > { %p5747_p1 = scmp.lt.s32.totalorder %s5738_s25, %s5738_s25 }
  0x7b   : > { %p5741_p10 = pnand %p5739_p9, %p6159_p7 }
  0x7c   : > { %p5748_p3 = por %p5747_p1, %p5746_p12 }
  0x7d   : > { %p5742_p11 = pneg %p5741_p10 }
  0x7e   : > { %5327 = dma.hbm_to_vmem [thread:$0]  (!%p6151_p6), %s8103_s10, 512, %s577_s30, [#allocation10], %s8102_s22, %s8102_s22, %s8101_s1  }
  0x7f   : > { %p5749_p4 = pnand %p5748_p3, %p5742_p11 }
  0x81   : > { %5752 = shalt.err (!%p5749_p4)
}
  0x82   : > { %s8104_s28 = smov 24   ;;  %s8105_s29 = smov 384  }
  0x83   : > { %s8106_s12 = sld [smem:[#allocation77_spill]]  ;;  %s5993_s30 = smov [#allocation17]  }
  0x84   : > { %s626_s4 = sshll.u32 %s5993_s30, 4  ;;  %s5994_s19 = smov [#allocation20]   ;;  %s627_s4 = int_to_ptr.vmem [resolvable:$true] %s626_s4 }
  0x85   : > { %s655_s7 = sshll.u32 %s5994_s19, 4  ;;  %s5764_s25 = scalar_lea.vmem %s627_s4, 1280  ;;  %s656_s7 = int_to_ptr.vmem [resolvable:$true] %s655_s7 }
  0x86   : > { %p5765_p13 = scmp.ne.s32.totalorder %s627_s4, %s5764_s25  ;;  %p5772_p5 = scmp.lt.s32.totalorder %s627_s4, %s627_s4 }
  0x87   : > { %p5773_p8 = scmp.lt.s32.totalorder %s5764_s25, %s5764_s25 }
  0x88   : > { %p5767_p0 = pnand %p5765_p13, %p6159_p7 }
  0x89   : > { %5333 = dma.hbm_to_vmem [thread:$0]  (!%p6151_p6), %s8106_s12, 6144, %s601_s8, [#allocation13], %s8105_s29, %s8105_s29, %s8104_s28  }
  0x8a   : > { %p5768_p2 = pneg %p5767_p0  ;;  %p5774_p9 = por %p5773_p8, %p5772_p5 }
  0x8c   : > { %p5775_p10 = pnand %p5774_p9, %p5768_p2 }
  0x8e   : > { %5778 = shalt.err (!%p5775_p10)
}
  0x8f   : > { %s8107_s14 = sld [smem:[#allocation79_spill]]  ;;  %s5790_s29 = scalar_lea.vmem %s656_s7, 1280 }
  0x90   : > { %p5791_p11 = scmp.ne.s32.totalorder %s656_s7, %s5790_s29  ;;  %p5798_p3 = scmp.lt.s32.totalorder %s656_s7, %s656_s7 }
  0x91   : > { %p5799_p4 = scmp.lt.s32.totalorder %s5790_s29, %s5790_s29 }
  0x92   : > { %p5793_p12 = pnand %p5791_p11, %p6159_p7 }
  0x93   : > { %p5800_p13 = por %p5799_p4, %p5798_p3 }
  0x94   : > { %p5794_p1 = pneg %p5793_p12 }
  0x95   : > { %5339 = dma.hbm_to_vmem [thread:$0]  (!%p6151_p6), %s8107_s14, 1280, %s627_s4, [#allocation16], %s8102_s22, %s8102_s22, %s8101_s1  }
  0x96   : > { %p5801_p0 = pnand %p5800_p13, %p5794_p1 }
  0x98   : > { %5804 = shalt.err (!%p5801_p0)
}
  0x99   : > { %5345 = dma.hbm_to_vmem [thread:$0]  (!%p6151_p6), %s7992_s17, 1280, %s656_s7, [#allocation19], %s8102_s22, %s8102_s22, %s8101_s1  }
  0x9a   : > { %s5995_s30 = smov [#allocation21]  }
  0x9b   : > { %s668_s4 = sshll.u32 %s5995_s30, 4  ;;  %s669_s4 = int_to_ptr.vmem [resolvable:$true] %s668_s4 }
  0x9c   : > { %s5816_s19 = scalar_lea.vmem %s669_s4, 1280  ;;  %p5824_p9 = scmp.lt.s32.totalorder %s669_s4, %s669_s4 }
  0x9d   : > { %p5817_p2 = scmp.ne.s32.totalorder %s669_s4, %s5816_s19  ;;  %p5825_p10 = scmp.lt.s32.totalorder %s5816_s19, %s5816_s19 }
  0x9f   : > { %p5819_p5 = pnand %p5817_p2, %p6159_p7  ;;  %p5826_p11 = por %p5825_p10, %p5824_p9 }
  0xa1   : > { %p5820_p8 = pneg %p5819_p5 }
  0xa3   : > { %p5827_p12 = pnand %p5826_p11, %p5820_p8 }
  0xa5   : > { %5830 = shalt.err (!%p5827_p12)
}
  0xa6   : > { %5348 = dma.hbm_to_vmem [thread:$0]  (!%p6151_p6), %s7993_s18, 1280, %s669_s4, [#allocation22], %s8102_s22, %s8102_s22, %s8101_s1  }
  0xa7   : > { %s4515_s0 = sadd.s32 4294967294, %s5977_s5   ;;  %s6269_s21 = sadd.s32 1, %s5977_s5  }
  0xa8   : > { %s81_s8 = sadd.s32 1, %s5973_s2  ;;  %s78_s28 = ssub.s32 %s5977_s5, %s6269_s21 }
  0xa9   : > { %p88_p7 = scmp.ne.s32.totalorder %s5973_s2, %s5969_s24  ;;  %p79_p1 = scmp.eq.s32.totalorder %s78_s28, 0 }
  0xaa   : > { %p89_p3 = scmp.eq.s32.totalorder %s5977_s5, 0  ;;  %p94_p4 = scmp.ne.s32.totalorder %s5969_s24, %s5965_s23 }
  0xab   : > { %p475_p13 = scmp.eq.s32.totalorder %s6137_s26, 1  ;;  %p8108_p2 = scmp.eq.s32.totalorder %s6137_s26, 0 }
  0xac   : > { %s6281_s29 = scalar_select %p79_p1, %s5973_s2, %s81_s8  }
  0xad   : > { %p90_p0 = por %p89_p3, %p88_p7  ;;  %p6285_p5 = por %p8108_p2, %p94_p4 }
  0xae   : > { %p6289_p6 = por %p475_p13, %p88_p7  ;;  %p481_p8 = scmp.eq.s32.totalorder %s4515_s0, 1 }
  0xaf   : > { %s8109_s20 = scalar_select %p6285_p5, 1, 0 }
  0xb0   : > { %s8110_s1 = scalar_select %p6289_p6, 1, 0 }
  0xb1   : > { %p5371_p9 = scmp.lt.s32.totalorder %s5977_s5, 2  ;;  %s690_s22 = sand.u32 1, %s5973_s2  }
  0xb2   : > { %p6295_p10 = por %p481_p8, %p94_p4  ;;  %s4529_s30 = sshll.u32 %s690_s22, 3 }
  0xb3   : > { %s4530_s4 = sshll.u32 %s5977_s5, 7  ;;  %s8112_s7 = sld [smem:[#allocation68_spill]] }
  0xb4   : > { %s8111_s3 = scalar_select %p6295_p10, 1, 0 }
  0xb5   : > { %s694_s28 = scalar_lea.vmem [#allocation3], %s4529_s30  ;;  %p6305_p11 = pnand %p5371_p9, %p90_p0 }
  0xb6   : > { %s701_s10 = sshll.u32 %s694_s28, 4  ;;  %s691_s11 = scalar_lea.sflag [#allocation4], %s690_s22  ;;  %s702_s10 = int_to_ptr.vmem [resolvable:$true] %s701_s10 }
  0xb7   : > { %p5833_p7 = pneg %p6305_p11 }
  0xb9   : > { %s6303_s8 = scalar_lea.hbm %s8112_s7, %s4530_s4  ;;  %s5836_s25 = scalar_lea.hbm %s8112_s7, 256 }
  0xba   : > { %s5831_s12 = scalar_lea.hbm %s6303_s8, 128  ;;  %p5837_p4 = scmp.lt.s32.totalorder %s6303_s8, %s8112_s7 }
  0xbb   : > { %p5832_p12 = scmp.ne.s32.totalorder %s6303_s8, %s5831_s12  ;;  %p5838_p13 = scmp.lt.s32.totalorder %s5836_s25, %s5831_s12 }
  0xbd   : > { %p5834_p1 = pnand %p5833_p7, %p5832_p12  ;;  %p5839_p0 = por %p5838_p13, %p5837_p4 }
  0xbf   : > { %p5835_p3 = pneg %p5834_p1 }
  0xc1   : > { %p5840_p2 = pnand %p5839_p0, %p5835_p3 }
  0xc3   : > { %5843 = shalt.err (!%p5840_p2)
}
  0xc4   : > { %s5844_s28 = scalar_lea.vmem %s702_s10, 128  ;;  %s5996_s22 = smov [#allocation3]  }
  0xc5   : > { %p5845_p8 = scmp.ne.s32.totalorder %s702_s10, %s5844_s28  ;;  %s5849_s14 = sshll.u32 %s5996_s22, 4  ;;  %s5850_s14 = int_to_ptr.vmem [resolvable:$false] %s5849_s14 }
  0xc6   : > { %s5851_s16 = scalar_lea.vmem %s5850_s14, 256  ;;  %p5852_p12 = scmp.lt.s32.totalorder %s702_s10, %s5850_s14 }
  0xc7   : > { %p5847_p9 = pnand %p5845_p8, %p5833_p7  ;;  %p5853_p1 = scmp.lt.s32.totalorder %s5851_s16, %s5844_s28 }
  0xc9   : > { %p5848_p10 = pneg %p5847_p9  ;;  %p5854_p6 = por %p5853_p1, %p5852_p12 }
  0xcb   : > { %p5855_p5 = pnand %p5854_p6, %p5848_p10 }
  0xcd   : > { %5858 = shalt.err (!%p5855_p5)
}
  0xce   : > { %5352 = dma.hbm_to_vmem [thread:$0]  (!%p6305_p11), %s6303_s8, 128, %s702_s10, %s691_s11  }
  0xcf   : > { %p8114_p3 = scmp.ne.s32.totalorder %s8092_s27, 0 }
  0xd1   : > { %710 = sbr.rel (%p8114_p3) target bundleno = 4195 (0x1063), region = 96 }
  0xd6   : > { %s6326_s12 = sand.u32 1, %s5969_s24   ;;  %p8115_p6 = scmp.ne.s32.totalorder %s8109_s20, 0 }
  0xd7   : > { %s4532_s13 = sshll.u32 %s6326_s12, 3  ;;  %s713_s14 = scalar_lea.sflag [#allocation4], %s6326_s12 }
  0xd8   : > { %s716_s16 = scalar_lea.vmem [#allocation3], %s4532_s13 }
  0xd9   : > { %5928 = dma.done.wait (%p8115_p6), %s713_s14, 128  }
  0xda   : > { %5930 = vsyncadd (%p8115_p6), %s713_s14, 4294967168  ;;  %p8116_p5 = scmp.eq.s32.totalorder %s6137_s26, 0 }
  0xdc   : > { %5932 = dma.done.wait (%p8116_p5), [#allocation7], 272   ;;  %p8117_p10 = pmov %p8116_p5 }
  0xdd   : > { %p8118_p11 = pmov %p8116_p5 }
  0xde   : > { %5934 = vsyncadd (%p8117_p10), [#allocation7], 4294967024 }
  0xdf   : > { %5936 = dma.done.wait (%p8118_p11), [#allocation10], 528   ;;  %p8119_p7 = pmov %p8116_p5 }
  0xe0   : > { %p8120_p4 = pmov %p8116_p5 }
  0xe1   : > { %5938 = vsyncadd (%p8119_p7), [#allocation10], 4294966768 }
  0xe2   : > { %5940 = dma.done.wait (%p8120_p4), [#allocation13], 6160   ;;  %p8121_p13 = pmov %p8120_p4 }
  0xe3   : > { %p8122_p0 = pmov %p8120_p4 }
  0xe4   : > { %5942 = vsyncadd (%p8121_p13), [#allocation13], 4294961136 }
  0xe5   : > { %5944 = dma.done.wait (%p8122_p0), [#allocation16], 2560   ;;  %p8123_p2 = pmov %p8122_p0 }
  0xe6   : > { %p8124_p8 = pmov %p8122_p0 }
  0xe7   : > { %5946 = vsyncadd (%p8123_p2), [#allocation16], 4294964736 }
  0xe8   : > { %5948 = dma.done.wait (%p8124_p8), [#allocation19], 7424   ;;  %p8125_p9 = pmov %p8122_p0 }
  0xe9   : > { %p8126_p12 = pmov %p8122_p0 }
  0xea   : > { %5950 = vsyncadd (%p8125_p9), [#allocation19], 4294959872 }
  0xeb   : > { %5952 = dma.done.wait (%p8126_p12), [#allocation22], 1280   ;;  %p8127_p1 = pmov %p8122_p0 }
  0xec   : > { %v8011_v1 = vmov 0   ;;  %v6363_v2 = vld [vmem:[%s716_s16] sm:$0xff]  ;;  %s5998_s10 = smov 8   ;;  %s8128_s20 = sld [smem:[#allocation69_spill]]  ;;  %vm838_vm0 = vcmask 64512   ;;  %vm840_vm1 = vcmask 588800  }
  0xed   : > { %5954 = vsyncadd (%p8127_p1), [#allocation22], 4294966016  ;;  %1001 = vmatprep.subr.bf16.mxu0 %v8011_v1  ;;  %5442 = vset.pattern.permute.xlu1 %v8011_v1  ;;  %s8129_s28 = sld [smem:[#allocation71_spill]]  ;;  %v8013_v21 = vmov 0.0   ;;  %vm845_vm2 = vcmask 1040384   ;;  %vm857_vm3 = vcmask 1045504  }
  0xee   : > { %5443 = vset.pattern.permute.xlu0 %v8011_v1  ;;  %4847 = vmatprep.subr.mxu1 %v8013_v21  ;;  %vm850_vm4 = vcmask 1046528   ;;  %s6000_s19 = smov 32   ;;  %s6001_s25 = smov 80   ;;  %vm864_vm5 = vcmask 654336   ;;  %vm866_vm6 = vcmask 261120   ;;  %vm997_vm7 = vcmask 916480  }
  0xef   : > { %835 = vrot.lane.b32.xlu0 %v6363_v2, %s5998_s10  ;;  %vm6002_vm8 = vmmov 0   ;;  %v4547_v54 = vld [vmem:[#allocation6] ss:$0 sm:$0xff]  ;;  %p827_p3 = scmp.lt.s32.totalorder %s6137_s26, 1  ;;  %vm1060_vm9 = vcmask 523264   ;;  %v5459_v58 = vld [vmem:[#allocation11 + $0x18] sm:$0xff]  }
  0xf0   : > { %4863 = vmatprep.mubr.msk.f32.mxu1 %vm6002_vm8, %v8013_v21  ;;  %v5460_v62 = vld [vmem:[#allocation11 + $0x10] sm:$0xff]   ;;  %v5461_v63 = vld [vmem:[#allocation11 + $0x8] sm:$0xff]   ;;  %s8130_s30 = sld [smem:[#allocation67_spill]]  ;;  %v5462_v0 = vld [vmem:[#allocation11] sm:$0xff]   ;;  %vm1382_vm14 = vcmask 130048   ;;  %s4267_s27 = scalar_lea.sflag [#allocation25], %s6326_s12 }
  0xf1   : > { %s828_s8 = scalar_select %p827_p3, %s6137_s26, 1 }
  0xf2   : > { %v5444_v3 = vld [vmem:[%s8128_s20 + $0x38] sm:$0xff]   ;;  %v5445_v4 = vld [vmem:[%s8128_s20 + $0x30] sm:$0xff]   ;;  %v5446_v5 = vld [vmem:[%s8128_s20 + $0x28] sm:$0xff]   ;;  %s8131_s6 = sld [smem:[#allocation72_spill]]  ;;  %p8242_p5 = scmp.ne.s32.totalorder %s8110_s1, 0 }
  0xf3   : > { %1002 = vmatpush1.bf16.msra.mxu0 %v5444_v3  ;;  %v5447_v6 = vld [vmem:[%s8128_s20 + $0x20] sm:$0xff]   ;;  %v5448_v7 = vld [vmem:[%s8128_s20 + $0x18] sm:$0xff]   ;;  %v5449_v8 = vld [vmem:[%s8128_s20 + $0x10] sm:$0xff]   ;;  %s4644_s0 = sshll.u32 %s828_s8, 4  ;;  %s8241_s16 = sld [smem:[#allocation82_spill]] }
  0xf4   : > { %1003 = vmatprep.subr.bf16.mxu0 %v8011_v1  ;;  %v5450_v9 = vld [vmem:[%s8128_s20 + $0x8] sm:$0xff]   ;;  %v5451_v10 = vld [vmem:[%s8128_s20] sm:$0xff]   ;;  %v5452_v11 = vld [vmem:[%s8128_s20 + $0x70] sm:$0xff]  }
  0xf5   : > { %v5453_v12 = vld [vmem:[%s8128_s20 + $0x68] sm:$0xff]   ;;  %v5454_v13 = vld [vmem:[%s8128_s20 + $0x60] sm:$0xff]   ;;  %v5455_v14 = vld [vmem:[%s8128_s20 + $0x58] sm:$0xff]  }
  0xf6   : > { %v5456_v15 = vld [vmem:[%s8128_s20 + $0x50] sm:$0xff]   ;;  %v5457_v16 = vld [vmem:[%s8128_s20 + $0x48] sm:$0xff]   ;;  %v5458_v17 = vld [vmem:[%s8128_s20 + $0x40] sm:$0xff]   ;;  %s831_s22 = scalar_lea.vmem %s8130_s30, %s4644_s0  ;;  %s6004_s0 = smov [#allocation24]  }
  0xf7   : > { %1004 = vmatpush1.bf16.msra.mxu0 %v5445_v4  ;;  %v1049_v19 = vld [vmem:[%s8129_s28 + $0x38] sm:$0xff]  ;;  %v1048_v22 = vld [vmem:[%s8129_s28 + $0x30] sm:$0xff]  ;;  %v1047_v27 = vld [vmem:[%s8129_s28 + $0x28] sm:$0xff]  ;;  %s5863_s4 = sshll.u32 %s6004_s0, 4  ;;  %s5864_s4 = int_to_ptr.vmem [resolvable:$false] %s5863_s4 }
  0xf8   : > { %1005 = vmatprep.subr.bf16.mxu0 %v8011_v1  ;;  %4848 = vmatpush3.msra.mxu1 %v1049_v19  ;;  %v1046_v28 = vld [vmem:[%s8129_s28 + $0x20] sm:$0xff]  ;;  %v1045_v35 = vld [vmem:[%s8129_s28 + $0x18] sm:$0xff]  ;;  %v1044_v36 = vld [vmem:[%s8129_s28 + $0x10] sm:$0xff] }
  0xf9   : > { %4849 = vmatprep.subr.mxu1 %v8013_v21  ;;  %v1043_v51 = vld [vmem:[%s8129_s28 + $0x8] sm:$0xff]  ;;  %v1042_v53 = vld [vmem:[%s8129_s28] sm:$0xff]  ;;  %v6499_v4 = vld [vmem:[%s8131_s6 + $0x78] sm:$0xff] }
  0xfa   : > { %4850 = vmatpush3.msra.mxu1 %v1048_v22  ;;  %v1203_v3 = vld [vmem:[%s831_s22 + $0x8] sm:$0xff] }
  0xfb   : > { %1006 = vmatpush1.bf16.msra.mxu0 %v5446_v5  ;;  %4851 = vmatprep.subr.mxu1 %v8013_v21  ;;  %v6598_v19 = vld [vmem:[%s8131_s6 + $0x8] sm:$0xff] }
  0xfc   : > { %1007 = vmatprep.subr.bf16.mxu0 %v8011_v1  ;;  %4852 = vmatpush3.msra.mxu1 %v1047_v27 }
  0xfd   : > { %4853 = vmatprep.subr.mxu1 %v8013_v21 }
  0xfe   : > { %4854 = vmatpush3.msra.mxu1 %v1046_v28 }
  0xff   : > { %1008 = vmatpush1.bf16.msra.mxu0 %v5447_v6  ;;  %4855 = vmatprep.subr.mxu1 %v8013_v21  ;;  %v6505_v6 = vld [vmem:[%s8131_s6 + $0x70] sm:$0xff] }
 0x100   : > { %1009 = vmatprep.subr.bf16.mxu0 %v8011_v1  ;;  %4856 = vmatpush3.msra.mxu1 %v1045_v35  ;;  %v4566_v35 = vld [vmem:[#allocation9] ss:$0 sm:$0xff] }
 0x101   : > { %4857 = vmatprep.subr.mxu1 %v8013_v21 }
 0x102   : > { %4858 = vmatpush3.msra.mxu1 %v1044_v36 }
 0x103   : > { %1010 = vmatpush1.bf16.msra.mxu0 %v5448_v7  ;;  %4859 = vmatprep.subr.mxu1 %v8013_v21  ;;  %v6512_v7 = vld [vmem:[%s8131_s6 + $0x68] sm:$0xff] }
 0x104   : > { %1011 = vmatprep.subr.bf16.mxu0 %v8011_v1  ;;  %4860 = vmatpush3.msra.mxu1 %v1043_v51  ;;  %v6645_v51 = vld [vmem:[#allocation8] sm:$0xff] }
 0x105   : > { %4861 = vmatprep.subr.mxu1 %v8013_v21 }
 0x106   : > { %4862 = vmatpush3.msra.mxu1 %v1042_v53  ;;  %v1199_v53 = vld [vmem:[%s7984_s9 + $0x168] sm:$0xff] }
 0x107   : > { %1012 = vmatpush1.bf16.msra.mxu0 %v5449_v8  ;;  %4866 = vmatprep.subr.bf16.mxu1 %v8013_v21  ;;  %v6519_v8 = vld [vmem:[%s8131_s6 + $0x60] sm:$0xff] }
 0x108   : > { %1013 = vmatprep.subr.bf16.mxu0 %v8011_v1 }
 0x10b   : > { %1014 = vmatpush1.bf16.msra.mxu0 %v5450_v9  ;;  %v6528_v9 = vld [vmem:[%s8131_s6 + $0x58] sm:$0xff] }
 0x10c   : > { %1015 = vmatprep.subr.bf16.mxu0 %v8011_v1 }
 0x10f   : > { %1016 = vmatpush1.bf16.msra.mxu0 %v5451_v10  ;;  %v6535_v10 = vld [vmem:[%s8131_s6 + $0x50] sm:$0xff] }
 0x110   : > { %1019 = vmatprep.subr.bf16.mxu0 %v8011_v1 }
 0x113   : > { %1020 = vmatpush2.bf16.msra.mxu0 %v5452_v11  ;;  %v6540_v11 = vld [vmem:[%s8131_s6 + $0x48] sm:$0xff] }
 0x114   : > { %1021 = vmatprep.subr.bf16.mxu0 %v8011_v1 }
 0x117   : > { %1022 = vmatpush2.bf16.msra.mxu0 %v5453_v12  ;;  %v6547_v12 = vld [vmem:[%s8131_s6 + $0x40] sm:$0xff] }
 0x118   : > { %1023 = vmatprep.subr.bf16.mxu0 %v8011_v1 }
 0x11b   : > { %1024 = vmatpush2.bf16.msra.mxu0 %v5454_v13  ;;  %v6554_v13 = vld [vmem:[%s8131_s6 + $0x38] sm:$0xff] }
 0x11c   : > { %1025 = vmatprep.subr.bf16.mxu0 %v8011_v1 }
 0x11f   : > { %1026 = vmatpush2.bf16.msra.mxu0 %v5455_v14  ;;  %v6561_v14 = vld [vmem:[%s8131_s6 + $0x30] sm:$0xff] }
 0x120   : > { %1027 = vmatprep.subr.bf16.mxu0 %v8011_v1 }
 0x123   : > { %1028 = vmatpush2.bf16.msra.mxu0 %v5456_v15  ;;  %v6568_v15 = vld [vmem:[%s8131_s6 + $0x28] sm:$0xff] }
 0x124   : > { %1029 = vmatprep.subr.bf16.mxu0 %v8011_v1 }
 0x127   : > { %1030 = vmatpush2.bf16.msra.mxu0 %v5457_v16  ;;  %v6575_v16 = vld [vmem:[%s8131_s6 + $0x20] sm:$0xff] }
 0x128   : > { %1031 = vmatprep.subr.bf16.mxu0 %v8011_v1 }
 0x12b   : > { %1032 = vmatpush2.bf16.msra.mxu0 %v5458_v17  ;;  %v6584_v17 = vld [vmem:[%s8131_s6 + $0x18] sm:$0xff] }
 0x161   : > { %v836_v18 = vpop.permute.xlu0 %835 }
 0x162   : > { %v839_v20 = vsel %vm838_vm0, 0.0, %v836_v18  ;;  %v6591_v18 = vld [vmem:[%s8131_s6 + $0x10] sm:$0xff] }
 0x163   : > { %v841_v23 = vsel %vm840_vm1, %v839_v20, 0.0  ;;  %v6605_v20 = vld [vmem:[%s8131_s6] sm:$0xff] }
 0x164   : > { %v843_v24 = vrot.slane %v841_v23, 7 }
 0x166   : > { %v846_v25 = vsel %vm845_vm2, 0.0, %v843_v24  ;;  %v847_v26 = vsel %vm845_vm2, %v843_v24, 0.0 }
 0x167   : > { %v851_v29 = vrot.slane %v846_v25, 1  ;;  %v852_v30 = vrot.slane %v847_v26, 1  ;;  %v859_v31 = vrot.slane %v847_v26, 2  ;;  %v858_v32 = vrot.slane %v846_v25, 2 }
 0x169   : > { %v860_v33 = vsel %vm857_vm3, %v858_v32, %v859_v31  ;;  %v853_v34 = vsel %vm850_vm4, %v851_v29, %v852_v30  ;;  %v4564_v32 = vld [vmem:[#allocation2] ss:$0 sm:$0xff] }
 0x16a   : > { %861 = vrot.lane.b32.xlu1 %v860_v33, %s6000_s19  ;;  %854 = vrot.lane.b32.xlu0 %v853_v34, %s6001_s25  ;;  %s5263_s19 = smul.u32 48, %s6326_s12 }
 0x16c   : > { %s7686_s30 = scalar_lea.vmem [#allocation23], %s5263_s19  ;;  %s5865_s19 = scalar_lea.vmem %s5864_s4, 256 }
 0x16e   : > { %1669 = vrot.lane.b32.xlu1 %v6363_v2, %s5998_s10  ;;  %v1202_v2 = vld [vmem:[%s831_s22] sm:$0xff]  ;;  %s4641_s22 = sshll.u32 %s6137_s26, 7 }
 0x16f   : > { %v1204_v5 = vpack.c.bf16 %v1203_v3, %v1202_v2  ;;  %v1182_v2 = vld [vmem:[%s7984_s9 + $0xe0] sm:$0xff]  ;;  %v1181_v3 = vld [vmem:[%s7984_s9 + $0xd8] sm:$0xff]  ;;  %s4294_s11 = scalar_lea.hbm %s8241_s16, %s4641_s22 }
 0x1dc   : > { %v862_v37 = vpop.permute.xlu1 %861  ;;  %v855_v38 = vpop.permute.xlu0 %854 }
 0x1dd   : > { %v865_v39 = vsel %vm864_vm5, %v846_v25, %v855_v38  ;;  %v867_v40 = vsel %vm866_vm6, %v855_v38, %v862_v37 }
 0x1de   : > { %v868_v41 = vpack.c.bf16 %v865_v39, %v865_v39  ;;  %v869_v42 = vpack.c.bf16 %v867_v40, %v867_v40 }
 0x1e0   : > { %4563 = vmatprep.mubr.msk.bf16.mxu0 %vm997_vm7, %v869_v42  ;;  %v1670_v43 = vpop.permute.xlu1 %1669 }
 0x1e1   : > { %1034 = vmatmul.mubr.bf16.vlgmr.msra.gmra.mxu0 %v868_v41  ;;  %v1672_v44 = vsel %vm838_vm0, 0.0, %v1670_v43 }
 0x1e2   : > { %v1673_v45 = vsel %vm840_vm1, %v1672_v44, 0.0 }
 0x1e3   : > { %v1675_v46 = vrot.slane %v1673_v45, 7 }
 0x1e5   : > { %v6464_v47 = vsel %vm845_vm2, %v1675_v46, 0.0  ;;  %v6469_v49 = vsel %vm845_vm2, 0.0, %v1675_v46 }
 0x1e6   : > { %v1682_v48 = vrot.slane %v6464_v47, 1  ;;  %v1681_v50 = vrot.slane %v6469_v49, 1 }
 0x1e8   : > { %2114 = vrot.lane.b32.xlu1 %v1682_v48, %s6001_s25  ;;  %v1683_v52 = vsel %vm850_vm4, %v1681_v50, %v1682_v48  ;;  %v6643_v50 = vld [vmem:[#allocation8 + $0x8] sm:$0xff] }
 0x1e9   : > { %1684 = vrot.lane.b32.xlu0 %v1683_v52, %s6001_s25  ;;  %4913 = vmatprep.subr.mxu0 %v6643_v50  ;;  %v1200_v52 = vld [vmem:[%s7984_s9 + $0x170] sm:$0xff] }
 0x1ea   : > { %4914 = vmatpush3.msra.mxu0 %v6643_v50 }
 0x1eb   : > { %4915 = vmatprep.subr.mxu0 %v6645_v51 }
 0x1ec   : > { %4916 = vmatpush3.msra.mxu0 %v6645_v51 }
 0x25a   : > { %v6633_v44 = vpop.permute.xlu1 %2114 }
 0x25b   : > { %v6609_v22 = vpop.permute.xlu0 %1684 }
 0x2a1   : > { %v1035_v55 = vpop.f32.mrf.mxu0 }
 0x2a2   : > { %v1036_v56 = vadd.f32 %v4547_v54, %v1035_v55  ;;  %v1197_v54 = vld [vmem:[%s7984_s9 + $0x158] sm:$0xff] }
 0x2a3   : > { %v1037_v57 = vpop.f32.mrf.mxu0  ;;  %v6663_v55 = vld [vmem:[%s7984_s9 + $0x178] sm:$0xff] }
 0x2a4   : > { %v1041_v59 = vmax.f32 %v1036_v56, 0.0  ;;  %v1196_v56 = vld [vmem:[%s7984_s9 + $0x150] sm:$0xff]  ;;  %4920 = vmatprep.subr.mxu0 %v6663_v55  ;;  %v1194_v57 = vld [vmem:[%s7984_s9 + $0x140] sm:$0xff] }
 0x2a5   : > { %v1038_v60 = vpop.f32.mrf.mxu0 }
 0x2a6   : > { %2602 = vrot.lane.b32.xlu0 %v1041_v59, %s5998_s10  ;;  %4864 = vmatmul.mubr.msk.f32.vlgmr.msra.gmra.mxu1 %vm1060_vm9, %v1041_v59  ;;  %v1191_v59 = vld [vmem:[%s7984_s9 + $0x128] sm:$0xff]  ;;  %v1190_v60 = vld [vmem:[%s7984_s9 + $0x120] sm:$0xff] }
 0x2a7   : > { %4867 = vmatpush3.bf16.msra.mxu1 %v5459_v58  ;;  %v1039_v61 = vpop.f32.mrf.mxu0  ;;  %4874 = vmatprep.mubr.msk.bf16.mxu1 %vm6002_vm8, %v8013_v21  ;;  %v1193_v58 = vld [vmem:[%s7984_s9 + $0x138] sm:$0xff] }
 0x2a8   : > { %4868 = vmatprep.subr.bf16.mxu1 %v8013_v21  ;;  %v1188_v61 = vld [vmem:[%s7984_s9 + $0x110] sm:$0xff] }
 0x2ab   : > { %4869 = vmatpush3.bf16.msra.mxu1 %v5460_v62  ;;  %v1187_v62 = vld [vmem:[%s7984_s9 + $0x108] sm:$0xff] }
 0x2ac   : > { %4870 = vmatprep.subr.bf16.mxu1 %v8013_v21 }
 0x2af   : > { %4871 = vmatpush3.bf16.msra.mxu1 %v5461_v63  ;;  %v1185_v63 = vld [vmem:[%s7984_s9 + $0xf8] sm:$0xff] }
 0x2b0   : > { %4872 = vmatprep.subr.bf16.mxu1 %v8013_v21 }
 0x2b3   : > { %4873 = vmatpush3.bf16.msra.mxu1 %v5462_v0  ;;  %v1184_v0 = vld [vmem:[%s7984_s9 + $0xf0] sm:$0xff] }
 0x2b4   : > { %4878 = vmatprep.subr.mxu1 %v6499_v4 }
 0x2b6   : > { %4875 = vmatmul.mubr.msk.bf16.vlgmr.msra.gmra.mxu1 %vm1060_vm9, %v1204_v5  ;;  %v1179_v5 = vld [vmem:[%s7984_s9 + $0xc8] sm:$0xff] }
 0x2b7   : > { %4879 = vmatpush3.msra.mxu1 %v6499_v4 }
 0x2b8   : > { %4880 = vmatprep.subr.mxu1 %v6505_v6 }
 0x2b9   : > { %4881 = vmatpush3.msra.mxu1 %v6505_v6 }
 0x2ba   : > { %4882 = vmatprep.subr.mxu1 %v6512_v7 }
 0x2bb   : > { %4883 = vmatpush3.msra.mxu1 %v6512_v7 }
 0x2bc   : > { %4884 = vmatprep.subr.mxu1 %v6519_v8 }
 0x2bd   : > { %4885 = vmatpush3.msra.mxu1 %v6519_v8 }
 0x2be   : > { %4886 = vmatprep.subr.mxu1 %v6528_v9 }
 0x2bf   : > { %4887 = vmatpush3.msra.mxu1 %v6528_v9 }
 0x2c0   : > { %4888 = vmatprep.subr.mxu1 %v6535_v10 }
 0x2c1   : > { %4889 = vmatpush3.msra.mxu1 %v6535_v10 }
 0x2c2   : > { %4890 = vmatprep.subr.mxu1 %v6540_v11 }
 0x2c3   : > { %4891 = vmatpush3.msra.mxu1 %v6540_v11 }
 0x2c4   : > { %4892 = vmatprep.subr.mxu1 %v6547_v12 }
 0x2c5   : > { %4893 = vmatpush3.msra.mxu1 %v6547_v12 }
 0x2c6   : > { %4894 = vmatprep.subr.mxu1 %v6554_v13 }
 0x2c7   : > { %4895 = vmatpush3.msra.mxu1 %v6554_v13 }
 0x2c8   : > { %4896 = vmatprep.subr.mxu1 %v6561_v14 }
 0x2c9   : > { %4897 = vmatpush3.msra.mxu1 %v6561_v14 }
 0x2ca   : > { %4898 = vmatprep.subr.mxu1 %v6568_v15 }
 0x2cb   : > { %4899 = vmatpush3.msra.mxu1 %v6568_v15 }
 0x2cc   : > { %4900 = vmatprep.subr.mxu1 %v6575_v16 }
 0x2cd   : > { %4901 = vmatpush3.msra.mxu1 %v6575_v16 }
 0x2ce   : > { %4902 = vmatprep.subr.mxu1 %v6584_v17 }
 0x2cf   : > { %4903 = vmatpush3.msra.mxu1 %v6584_v17 }
 0x2d0   : > { %4904 = vmatprep.subr.mxu1 %v6591_v18 }
 0x2d1   : > { %4905 = vmatpush3.msra.mxu1 %v6591_v18 }
 0x2d2   : > { %4906 = vmatprep.subr.mxu1 %v6598_v19 }
 0x2d3   : > { %4907 = vmatpush3.msra.mxu1 %v6598_v19 }
 0x2d4   : > { %4908 = vmatprep.subr.mxu1 %v6605_v20 }
 0x2d5   : > { %4909 = vmatpush3.msra.mxu1 %v6605_v20 }
 0x2d6   : > { %1466 = vmatprep.subr.mxu1 %v1200_v52 }
 0x318   : > { %v2603_v23 = vpop.permute.xlu0 %2602 }
 0x319   : > { %v2605_v24 = vsel %vm838_vm0, 0.0, %v2603_v23  ;;  %v1178_v23 = vld [vmem:[%s7984_s9 + $0xc0] sm:$0xff] }
 0x31a   : > { %v2606_v25 = vsel %vm840_vm1, %v2605_v24, 0.0  ;;  %v1176_v24 = vld [vmem:[%s7984_s9 + $0xb0] sm:$0xff] }
 0x31b   : > { %v2608_v26 = vrot.slane %v2606_v25, 7  ;;  %v1175_v25 = vld [vmem:[%s7984_s9 + $0xa8] sm:$0xff] }
 0x31d   : > { %v6614_v27 = vsel %vm845_vm2, 0.0, %v2608_v26  ;;  %v6617_v28 = vsel %vm845_vm2, %v2608_v26, 0.0  ;;  %v1173_v26 = vld [vmem:[%s7984_s9 + $0x98] sm:$0xff] }
 0x31e   : > { %8132 = vst [vmem:[#allocation35_spill] sm:$0xff] %v6614_v27  ;;  %8133 = vst [vmem:[#allocation36_spill] sm:$0xff] %v6617_v28  ;;  %v2614_v29 = vrot.slane %v6614_v27, 1  ;;  %v2615_v30 = vrot.slane %v6617_v28, 1  ;;  %v7011_v28 = vld [vmem:[#allocation14 + $0x60] sm:$0xff]  ;;  %v7014_v27 = vld [vmem:[#allocation14 + $0x50] sm:$0xff] }
 0x31f   : > { %8152 = vst [vmem:[#allocation55_spill] sm:$0xff] %v7011_v28  ;;  %8153 = vst [vmem:[#allocation56_spill] sm:$0xff] %v7014_v27 }
 0x320   : > { %3047 = vrot.lane.b32.xlu0 %v2615_v30, %s6001_s25  ;;  %v2616_v31 = vsel %vm850_vm4, %v2614_v29, %v2615_v30  ;;  %v1172_v29 = vld [vmem:[%s7984_s9 + $0x90] sm:$0xff]  ;;  %v1170_v30 = vld [vmem:[%s7984_s9 + $0x80] sm:$0xff] }
 0x321   : > { %2617 = vrot.lane.b32.xlu1 %v2616_v31, %s6001_s25  ;;  %s6639_s25 = scalar_lea.vmem [#allocation24], %s4532_s13  ;;  %v1169_v31 = vld [vmem:[%s7984_s9 + $0x78] sm:$0xff] }
 0x322   : > { %s4296_s10 = sshll.u32 %s6639_s25, 4  ;;  %s4297_s10 = int_to_ptr.vmem [resolvable:$true] %s4296_s10 }
 0x323   : > { %s5859_s8 = scalar_lea.vmem %s4297_s10, 128  ;;  %p5866_p7 = scmp.lt.s32.totalorder %s4297_s10, %s5864_s4 }
 0x324   : > { %p5860_p6 = scmp.ne.s32.totalorder %s4297_s10, %s5859_s8  ;;  %p5867_p4 = scmp.lt.s32.totalorder %s5865_s19, %s5859_s8 }
 0x325   : > { %1057 = vperm.xlu1 %5442, %v4564_v32   ;;  %v1167_v32 = vld [vmem:[%s7984_s9 + $0x68] sm:$0xff] }
 0x326   : > { %p5861_p10 = pnand %p5860_p6, %p8242_p5  ;;  %p5868_p13 = por %p5867_p4, %p5866_p7 }
 0x328   : > { %p5862_p11 = pneg %p5861_p10 }
 0x32a   : > { %p5869_p0 = pnand %p5868_p13, %p5862_p11 }
 0x366   : > { %v1130_v33 = vpop.f32.mrf.mxu1 }
 0x368   : > { %v4865_v34 = vpop.f32.mrf.mxu1 }
 0x369   : > { %v1164_v34 = vld [vmem:[%s7984_s9 + $0x50] sm:$0xff] }
 0x376   : > { %v1280_v36 = vpop.f32.mrf.mxu1 }
 0x377   : > { %v6624_v37 = vadd.f32 %v4566_v35, %v1280_v36  ;;  %v1161_v36 = vld [vmem:[%s7984_s9 + $0x38] sm:$0xff] }
 0x378   : > { %v4876_v38 = vpop.f32.mrf.mxu1 }
 0x379   : > { %v1287_v39 = vmul.f32 %v6624_v37, %v6624_v37  ;;  %v1160_v38 = vld [vmem:[%s7984_s9 + $0x30] sm:$0xff] }
 0x37a   : > { %v1283_v40 = vpop.f32.mrf.mxu1 }
 0x37b   : > { %v6628_v41 = vadd.f32 %v4566_v35, %v1283_v40  ;;  %4910 = vmatprep.mubr.f32.mxu1 %v1287_v39  ;;  %v1163_v35 = vld [vmem:[%s7984_s9 + $0x48] sm:$0xff] }
 0x37c   : > { %v4877_v42 = vpop.f32.mrf.mxu1 }
 0x37d   : > { %v1288_v43 = vmul.f32 %v6628_v41, %v6628_v41 }
 0x37f   : > { %4911 = vmatmul.mubr.f32.vlgmr.msra.gmra.mxu1 %v1288_v43 }
 0x380   : > { %1530 = vmatprep.mubr.f32.mxu1 %v8013_v21  ;;  %1467 = vmatpush1.msra.mxu1 %v1199_v53 }
 0x381   : > { %1468 = vmatprep.subr.mxu1 %v1197_v54 }
 0x382   : > { %1469 = vmatpush1.msra.mxu1 %v1196_v56 }
 0x383   : > { %1470 = vmatprep.subr.mxu1 %v1194_v57 }
 0x384   : > { %1471 = vmatpush1.msra.mxu1 %v1193_v58 }
 0x385   : > { %1472 = vmatprep.subr.mxu1 %v1191_v59 }
 0x386   : > { %1473 = vmatpush1.msra.mxu1 %v1190_v60 }
 0x387   : > { %1474 = vmatprep.subr.mxu1 %v1188_v61 }
 0x388   : > { %1475 = vmatpush1.msra.mxu1 %v1187_v62 }
 0x389   : > { %1476 = vmatprep.subr.mxu1 %v1185_v63  ;;  %v1198_v63 = vld [vmem:[%s7984_s9 + $0x160] sm:$0xff] }
 0x38a   : > { %1477 = vmatpush1.msra.mxu1 %v1184_v0  ;;  %v1195_v0 = vld [vmem:[%s7984_s9 + $0x148] sm:$0xff] }
 0x38b   : > { %1478 = vmatprep.subr.mxu1 %v1182_v2  ;;  %v1192_v2 = vld [vmem:[%s7984_s9 + $0x130] sm:$0xff] }
 0x38c   : > { %1479 = vmatpush1.msra.mxu1 %v1181_v3  ;;  %v1189_v3 = vld [vmem:[%s7984_s9 + $0x118] sm:$0xff] }
 0x38d   : > { %1480 = vmatprep.subr.mxu1 %v1179_v5  ;;  %v1183_v5 = vld [vmem:[%s7984_s9 + $0xe8] sm:$0xff] }
 0x38e   : > { %1481 = vmatpush1.msra.mxu1 %v1178_v23  ;;  %v1180_v23 = vld [vmem:[%s7984_s9 + $0xd0] sm:$0xff] }
 0x38f   : > { %1482 = vmatprep.subr.mxu1 %v1176_v24  ;;  %v1177_v24 = vld [vmem:[%s7984_s9 + $0xb8] sm:$0xff] }
 0x390   : > { %1483 = vmatpush1.msra.mxu1 %v1175_v25  ;;  %v1174_v25 = vld [vmem:[%s7984_s9 + $0xa0] sm:$0xff] }
 0x391   : > { %1484 = vmatprep.subr.mxu1 %v1173_v26  ;;  %v1171_v26 = vld [vmem:[%s7984_s9 + $0x88] sm:$0xff] }
 0x392   : > { %1485 = vmatpush1.msra.mxu1 %v1172_v29  ;;  %v1168_v29 = vld [vmem:[%s7984_s9 + $0x70] sm:$0xff] }
 0x393   : > { %v6635_v45 = vpop.permute.xlu1 %2617  ;;  %1486 = vmatprep.subr.mxu1 %v1170_v30  ;;  %v1165_v30 = vld [vmem:[%s7984_s9 + $0x58] sm:$0xff] }
 0x394   : > { %8134 = vst [vmem:[#allocation37_spill] sm:$0xff] %v6635_v45  ;;  %1487 = vmatpush1.msra.mxu1 %v1169_v31  ;;  %v1158_v31 = vld [vmem:[%s7984_s9 + $0x20] sm:$0xff]  ;;  %v7017_v45 = vld [vmem:[#allocation14 + $0x48] sm:$0xff] }
 0x395   : > { %1488 = vmatprep.subr.mxu1 %v1167_v32  ;;  %v1162_v32 = vld [vmem:[%s7984_s9 + $0x40] sm:$0xff]  ;;  %8154 = vst [vmem:[#allocation57_spill] sm:$0xff] %v7017_v45 }
 0x3a0   : > { %v1058_v46 = vpop.permute.xlu1 %1057 }
 0x3a1   : > { %v1131_v48 = vadd.f32 %v1130_v33, %v1058_v46  ;;  %v1166_v33 = vld [vmem:[%s7984_s9 + $0x60] sm:$0xff] }
 0x3a2   : > { %1489 = vmatpush1.msra.mxu1 %v1166_v33  ;;  %v1157_v33 = vld [vmem:[%s7984_s9 + $0x18] sm:$0xff] }
 0x3a3   : > { %1134 = vst.msk [vmem:[%s6639_s25] sm:$0xff] %vm838_vm0, %v1131_v48  ;;  %1490 = vmatprep.subr.mxu1 %v1164_v34  ;;  %v1155_v34 = vld [vmem:[%s7984_s9 + $0x8] sm:$0xff] }
 0x3a4   : > { %1491 = vmatpush1.msra.mxu1 %v1163_v35  ;;  %v1159_v35 = vld [vmem:[%s7984_s9 + $0x28] sm:$0xff] }
 0x3a5   : > { %1492 = vmatprep.subr.mxu1 %v1161_v36  ;;  %v1154_v36 = vld [vmem:[%s7984_s9] sm:$0xff] }
 0x3a6   : > { %1493 = vmatpush1.msra.mxu1 %v1160_v38  ;;  %v1156_v38 = vld [vmem:[%s7984_s9 + $0x10] sm:$0xff] }
 0x3a7   : > { %1494 = vmatprep.subr.mxu1 %v1158_v31  ;;  %v6893_v31 = vld [vmem:[#allocation14 + $0x148] sm:$0xff] }
 0x3a8   : > { %1495 = vmatpush1.msra.mxu1 %v1157_v33  ;;  %v6901_v33 = vld [vmem:[#allocation14 + $0x118] sm:$0xff] }
 0x3a9   : > { %1496 = vmatprep.subr.mxu1 %v1155_v34  ;;  %v6905_v34 = vld [vmem:[#allocation14 + $0x100] sm:$0xff] }
 0x3aa   : > { %1497 = vmatpush1.msra.mxu1 %v1154_v36  ;;  %v6913_v36 = vld [vmem:[#allocation14 + $0xd0] sm:$0xff] }
 0x3ab   : > { %1779 = vmatprep.subr.bf16.mxu1 %v8011_v1 }
 0x43f   : > { %v4912_v39 = vpop.f32.mrf.mxu1 }
 0x440   : > { %5503 = vrsqrt.f32 %v4912_v39  ;;  %vm1373_vm10 = vcmp.eq.f32.partialorder %v4912_v39, inf  ;;  %v1376_v48 = vand.u32 2147483648, %v4912_v39  ;;  %vm1375_vm11 = vcmp.eq.f32.partialorder %v4912_v39, 0.0 }
 0x441   : > { %v1355_v40 = vpop.f32.mrf.mxu1 }
 0x442   : > { %5505 = vrsqrt.f32 %v1355_v40  ;;  %vm1366_vm12 = vcmp.eq.f32.partialorder %v1355_v40, inf  ;;  %v1369_v56 = vand.u32 2147483648, %v1355_v40  ;;  %vm1368_vm13 = vcmp.eq.f32.partialorder %v1355_v40, 0.0 }
 0x44d   : > { %v5504_v42 = vpop.eup %5503 }
 0x44e   : > { %v1372_v43 = vmul.f32 %v5504_v42, %v4912_v39  ;;  %v5463_v42 = vld [vmem:[#allocation15 + $0x38] sm:$0xff]  }
 0x44f   : > { %v5506_v46 = vpop.eup %5505 }
 0x450   : > { %v1374_v52 = vsel %vm1373_vm10, %v4912_v39, %v1372_v43  ;;  %v1365_v53 = vmul.f32 %v5506_v46, %v1355_v40 }
 0x451   : > { %v1377_v54 = vsel %vm1375_vm11, %v1376_v48, %v1374_v52  ;;  %v1689_v48 = vpack.c.bf16 %v6609_v22, %v6609_v22  ;;  %v5464_v52 = vld [vmem:[#allocation15 + $0x30] sm:$0xff]  }
 0x452   : > { %v1367_v57 = vsel %vm1366_vm12, %v1355_v40, %v1365_v53  ;;  %v1379_v58 = vadd.f32 1e-10, %v1377_v54  ;;  %v5467_v53 = vld [vmem:[#allocation15 + $0x18] sm:$0xff]   ;;  %v5468_v54 = vld [vmem:[#allocation15 + $0x10] sm:$0xff]  }
 0x453   : > { %v1370_v59 = vsel %vm1368_vm13, %v1369_v56, %v1367_v57  ;;  %v5469_v56 = vld [vmem:[#allocation15 + $0x8] sm:$0xff]   ;;  %v5470_v57 = vld [vmem:[#allocation15] sm:$0xff]  }
 0x454   : > { %v1378_v60 = vadd.f32 1e-10, %v1370_v59  ;;  %v5472_v59 = vld [vmem:[#allocation15 + $0x40] sm:$0xff]  }
 0x456   : > { %5507 = vrcp.f32 %v1378_v60  ;;  %v6855_v60 = vsel %vm864_vm5, %v6469_v49, %v6609_v22  ;;  %v6870_v49 = vld [vmem:[#allocation12] ss:$0 sm:$0xff] }
 0x457   : > { %5509 = vrcp.f32 %v1379_v58  ;;  %v5471_v58 = vld [vmem:[#allocation15 + $0x48] sm:$0xff]  }
 0x463   : > { %v5508_v61 = vpop.eup %5507 }
 0x464   : > { %v5510_v62 = vpop.eup %5509  ;;  %4917 = vmatprep.mubr.msk.f32.mxu0 %vm1382_vm14, %v5508_v61  ;;  %v1688_v61 = vpack.c.bf16 %v6855_v60, %v6855_v60 }
 0x465   : > { %4918 = vmatmul.mubr.msk.f32.vlgmr.msra.gmra.mxu0 %vm1382_vm14, %v5510_v62 }
 0x466   : > { %4921 = vmatpush3.msra.mxu0 %v6663_v55  ;;  %v1186_v55 = vld [vmem:[%s7984_s9 + $0x100] sm:$0xff] }
 0x467   : > { %4922 = vmatprep.subr.mxu0 %v1198_v63 }
 0x468   : > { %4923 = vmatpush3.msra.mxu0 %v1198_v63 }
 0x469   : > { %4924 = vmatprep.subr.mxu0 %v1195_v0 }
 0x46a   : > { %4925 = vmatpush3.msra.mxu0 %v1195_v0 }
 0x46b   : > { %4926 = vmatprep.subr.mxu0 %v1192_v2 }
 0x46c   : > { %4927 = vmatpush3.msra.mxu0 %v1192_v2 }
 0x46d   : > { %4928 = vmatprep.subr.mxu0 %v1189_v3 }
 0x46e   : > { %4929 = vmatpush3.msra.mxu0 %v1189_v3 }
 0x46f   : > { %4930 = vmatprep.subr.mxu0 %v1186_v55 }
 0x470   : > { %4931 = vmatpush3.msra.mxu0 %v1186_v55 }
 0x471   : > { %4932 = vmatprep.subr.mxu0 %v1183_v5 }
 0x472   : > { %4933 = vmatpush3.msra.mxu0 %v1183_v5 }
 0x473   : > { %4934 = vmatprep.subr.mxu0 %v1180_v23 }
 0x474   : > { %4935 = vmatpush3.msra.mxu0 %v1180_v23 }
 0x475   : > { %4936 = vmatprep.subr.mxu0 %v1177_v24 }
 0x476   : > { %4937 = vmatpush3.msra.mxu0 %v1177_v24 }
 0x477   : > { %4938 = vmatprep.subr.mxu0 %v1174_v25 }
 0x478   : > { %4939 = vmatpush3.msra.mxu0 %v1174_v25 }
 0x479   : > { %4940 = vmatprep.subr.mxu0 %v1171_v26 }
 0x47a   : > { %4941 = vmatpush3.msra.mxu0 %v1171_v26  ;;  %v6882_v26 = vld [vmem:[#allocation14 + $0x170] sm:$0xff] }
 0x47b   : > { %4942 = vmatprep.subr.mxu0 %v1168_v29 }
 0x47c   : > { %4943 = vmatpush3.msra.mxu0 %v1168_v29  ;;  %v6885_v29 = vld [vmem:[#allocation14 + $0x178] sm:$0xff] }
 0x47d   : > { %4944 = vmatprep.subr.mxu0 %v1165_v30 }
 0x47e   : > { %4945 = vmatpush3.msra.mxu0 %v1165_v30  ;;  %v6889_v30 = vld [vmem:[#allocation14 + $0x160] sm:$0xff] }
 0x47f   : > { %4946 = vmatprep.subr.mxu0 %v1162_v32 }
 0x480   : > { %4947 = vmatpush3.msra.mxu0 %v1162_v32  ;;  %v6897_v32 = vld [vmem:[#allocation14 + $0x130] sm:$0xff] }
 0x481   : > { %4948 = vmatprep.subr.mxu0 %v1159_v35 }
 0x482   : > { %4949 = vmatpush3.msra.mxu0 %v1159_v35  ;;  %v6909_v35 = vld [vmem:[#allocation14 + $0xe8] sm:$0xff] }
 0x483   : > { %4950 = vmatprep.subr.mxu0 %v1156_v38 }
 0x484   : > { %4951 = vmatpush3.msra.mxu0 %v1156_v38  ;;  %v6917_v38 = vld [vmem:[#allocation14 + $0xb8] sm:$0xff] }
 0x485   : > { %4955 = vmatprep.subr.mxu0 %v8013_v21 }
 0x525   : > { %v4919_v39 = vpop.f32.mrf.mxu0 }
 0x526   : > { %v1465_v46 = vmul.f32 %v4919_v39, %v6628_v41  ;;  %v5466_v41 = vld [vmem:[#allocation15 + $0x20] sm:$0xff]  }
 0x527   : > { %v1455_v40 = vpop.f32.mrf.mxu0  ;;  %v6921_v39 = vld [vmem:[#allocation14 + $0xa0] sm:$0xff] }
 0x528   : > { %v1464_v43 = vmul.f32 %v1455_v40, %v6624_v37  ;;  %v5465_v37 = vld [vmem:[#allocation15 + $0x28] sm:$0xff]  }
 0x529   : > { %v6925_v40 = vld [vmem:[#allocation14 + $0x88] sm:$0xff] }
 0x52a   : > { %1531 = vmatmul.mubr.f32.vlgmr.msra.gmra.mxu1 %v1464_v43  ;;  %4952 = vmatprep.mubr.f32.mxu0 %v1464_v43  ;;  %v6933_v43 = vld [vmem:[#allocation14 + $0x58] sm:$0xff] }
 0x52b   : > { %1780 = vmatpush1.bf16.msra.mxu1 %v5463_v42  ;;  %4953 = vmatmul.mubr.f32.vlgmr.msra.gmra.mxu0 %v1465_v46  ;;  %v6929_v42 = vld [vmem:[#allocation14 + $0x70] sm:$0xff] }
 0x52c   : > { %1536 = vmatprep.mubr.f32.mxu1 %v8013_v21  ;;  %1781 = vmatprep.subr.bf16.mxu1 %v8011_v1 }
 0x52d   : > { %4956 = vmatpush3.msra.mxu0 %v6499_v4  ;;  %4987 = vmatprep.mubr.msk.f32.mxu0 %vm6002_vm8, %v8013_v21 }
 0x52e   : > { %1537 = vmatmul.mubr.f32.gmra.mxu1 %v1465_v46  ;;  %4957 = vmatprep.subr.mxu0 %v8013_v21  ;;  %v6937_v46 = vld [vmem:[#allocation14 + $0x40] sm:$0xff] }
 0x52f   : > { %1782 = vmatpush1.bf16.msra.mxu1 %v5464_v52  ;;  %4585 = vmatprep.mubr.msk.bf16.mxu1 %vm866_vm6, %v1689_v48 }
 0x530   : > { %1783 = vmatprep.subr.bf16.mxu1 %v8011_v1  ;;  %4958 = vmatpush3.msra.mxu0 %v6505_v6 }
 0x531   : > { %4959 = vmatprep.subr.mxu0 %v8013_v21 }
 0x532   : > { %4960 = vmatpush3.msra.mxu0 %v6512_v7 }
 0x533   : > { %1784 = vmatpush1.bf16.msra.mxu1 %v5465_v37  ;;  %4961 = vmatprep.subr.mxu0 %v8013_v21 }
 0x534   : > { %1785 = vmatprep.subr.bf16.mxu1 %v8011_v1  ;;  %4962 = vmatpush3.msra.mxu0 %v6519_v8 }
 0x535   : > { %4963 = vmatprep.subr.mxu0 %v8013_v21 }
 0x536   : > { %4964 = vmatpush3.msra.mxu0 %v6528_v9 }
 0x537   : > { %1786 = vmatpush1.bf16.msra.mxu1 %v5466_v41  ;;  %4965 = vmatprep.subr.mxu0 %v8013_v21 }
 0x538   : > { %1787 = vmatprep.subr.bf16.mxu1 %v8011_v1  ;;  %4966 = vmatpush3.msra.mxu0 %v6535_v10 }
 0x539   : > { %4967 = vmatprep.subr.mxu0 %v8013_v21 }
 0x53a   : > { %4968 = vmatpush3.msra.mxu0 %v6540_v11 }
 0x53b   : > { %1788 = vmatpush1.bf16.msra.mxu1 %v5467_v53  ;;  %4969 = vmatprep.subr.mxu0 %v8013_v21 }
 0x53c   : > { %1789 = vmatprep.subr.bf16.mxu1 %v8011_v1  ;;  %4970 = vmatpush3.msra.mxu0 %v6547_v12 }
 0x53d   : > { %4971 = vmatprep.subr.mxu0 %v8013_v21 }
 0x53e   : > { %4972 = vmatpush3.msra.mxu0 %v6554_v13 }
 0x53f   : > { %1790 = vmatpush1.bf16.msra.mxu1 %v5468_v54  ;;  %4973 = vmatprep.subr.mxu0 %v8013_v21 }
 0x540   : > { %1791 = vmatprep.subr.bf16.mxu1 %v8011_v1  ;;  %4974 = vmatpush3.msra.mxu0 %v6561_v14 }
 0x541   : > { %4975 = vmatprep.subr.mxu0 %v8013_v21 }
 0x542   : > { %4976 = vmatpush3.msra.mxu0 %v6568_v15 }
 0x543   : > { %1792 = vmatpush1.bf16.msra.mxu1 %v5469_v56  ;;  %4977 = vmatprep.subr.mxu0 %v8013_v21 }
 0x544   : > { %1793 = vmatprep.subr.bf16.mxu1 %v8011_v1  ;;  %4978 = vmatpush3.msra.mxu0 %v6575_v16 }
 0x545   : > { %4979 = vmatprep.subr.mxu0 %v8013_v21 }
 0x546   : > { %4980 = vmatpush3.msra.mxu0 %v6584_v17 }
 0x547   : > { %1794 = vmatpush1.bf16.msra.mxu1 %v5470_v57  ;;  %4981 = vmatprep.subr.mxu0 %v8013_v21 }
 0x548   : > { %1807 = vmatprep.subr.bf16.mxu1 %v8011_v1  ;;  %4982 = vmatpush3.msra.mxu0 %v6591_v18 }
 0x549   : > { %4983 = vmatprep.subr.mxu0 %v8013_v21 }
 0x54a   : > { %4984 = vmatpush3.msra.mxu0 %v6598_v19 }
 0x54b   : > { %1808 = vmatpush2.bf16.msra.mxu1 %v5471_v58  ;;  %4985 = vmatprep.subr.mxu0 %v8013_v21 }
 0x54c   : > { %1809 = vmatprep.subr.bf16.mxu1 %v8011_v1  ;;  %4986 = vmatpush3.msra.mxu0 %v6605_v20  ;;  %v6987_v1 = vld [vmem:[#allocation14 + $0xc0] sm:$0xff] }
 0x54d   : > { %4990 = vmatprep.subr.mxu0 %v8013_v21  ;;  %8144 = vst [vmem:[#allocation47_spill] sm:$0xff] %v6987_v1 }
 0x54f   : > { %1810 = vmatpush2.bf16.msra.mxu1 %v5472_v59 }
 0x550   : > { %4997 = vmatprep.subr.mxu1 %v8013_v21 }
 0x552   : > { %1812 = vmatmul.mubr.bf16.vlgmr.msra.gmra.mxu1 %v1688_v61  ;;  %v6945_v61 = vld [vmem:[#allocation14 + $0x168] sm:$0xff] }
 0x553   : > { %5029 = vmatprep.mubr.msk.f32.mxu1 %vm6002_vm8, %v8013_v21  ;;  %4998 = vmatpush3.msra.mxu1 %v6885_v29 }
 0x554   : > { %4999 = vmatprep.subr.mxu1 %v8013_v21 }
 0x555   : > { %5000 = vmatpush3.msra.mxu1 %v6889_v30 }
 0x556   : > { %5001 = vmatprep.subr.mxu1 %v8013_v21 }
 0x557   : > { %5002 = vmatpush3.msra.mxu1 %v6893_v31 }
 0x558   : > { %5003 = vmatprep.subr.mxu1 %v8013_v21 }
 0x559   : > { %5004 = vmatpush3.msra.mxu1 %v6897_v32 }
 0x55a   : > { %5005 = vmatprep.subr.mxu1 %v8013_v21 }
 0x55b   : > { %5006 = vmatpush3.msra.mxu1 %v6901_v33 }
 0x55c   : > { %5007 = vmatprep.subr.mxu1 %v8013_v21 }
 0x55d   : > { %5008 = vmatpush3.msra.mxu1 %v6905_v34 }
 0x55e   : > { %5009 = vmatprep.subr.mxu1 %v8013_v21 }
 0x55f   : > { %5010 = vmatpush3.msra.mxu1 %v6909_v35 }
 0x560   : > { %5011 = vmatprep.subr.mxu1 %v8013_v21 }
 0x561   : > { %5012 = vmatpush3.msra.mxu1 %v6913_v36 }
 0x562   : > { %5013 = vmatprep.subr.mxu1 %v8013_v21 }
 0x563   : > { %5014 = vmatpush3.msra.mxu1 %v6917_v38 }
 0x564   : > { %5015 = vmatprep.subr.mxu1 %v8013_v21 }
 0x565   : > { %5016 = vmatpush3.msra.mxu1 %v6921_v39 }
 0x566   : > { %5017 = vmatprep.subr.mxu1 %v8013_v21 }
 0x567   : > { %5018 = vmatpush3.msra.mxu1 %v6925_v40 }
 0x568   : > { %5019 = vmatprep.subr.mxu1 %v8013_v21 }
 0x569   : > { %5020 = vmatpush3.msra.mxu1 %v6929_v42 }
 0x56a   : > { %5021 = vmatprep.subr.mxu1 %v8013_v21 }
 0x56b   : > { %5022 = vmatpush3.msra.mxu1 %v6933_v43 }
 0x56c   : > { %5023 = vmatprep.subr.mxu1 %v8013_v21 }
 0x56d   : > { %5024 = vmatpush3.msra.mxu1 %v6937_v46 }
 0x56e   : > { %5025 = vmatprep.subr.mxu1 %v8013_v21 }
 0x5ea   : > { %v6862_v62 = vpop.f32.mrf.mxu1 }
 0x5eb   : > { %8135 = vst [vmem:[#allocation38_spill] sm:$0xff] %v6862_v62  ;;  %v6941_v48 = vpop.f32.mrf.mxu0  ;;  %v7008_v62 = vld [vmem:[#allocation14 + $0x68] sm:$0xff] }
 0x5ec   : > { %v6864_v63 = vpop.f32.mrf.mxu1  ;;  %8139 = vst [vmem:[#allocation42_spill] sm:$0xff] %v6941_v48  ;;  %v6996_v48 = vld [vmem:[#allocation14 + $0x98] sm:$0xff]  ;;  %8151 = vst [vmem:[#allocation54_spill] sm:$0xff] %v7008_v62 }
 0x5ed   : > { %8136 = vst [vmem:[#allocation39_spill] sm:$0xff] %v6864_v63  ;;  %v6943_v52 = vpop.f32.mrf.mxu0  ;;  %8147 = vst [vmem:[#allocation50_spill] sm:$0xff] %v6996_v48  ;;  %v6999_v63 = vld [vmem:[#allocation14 + $0x90] sm:$0xff] }
 0x5ee   : > { %v6866_v0 = vpop.f32.mrf.mxu1  ;;  %8140 = vst [vmem:[#allocation43_spill] sm:$0xff] %v6943_v52  ;;  %8148 = vst [vmem:[#allocation51_spill] sm:$0xff] %v6999_v63  ;;  %v7005_v52 = vld [vmem:[#allocation14 + $0x78] sm:$0xff] }
 0x5ef   : > { %8137 = vst [vmem:[#allocation40_spill] sm:$0xff] %v6866_v0  ;;  %v7002_v0 = vld [vmem:[#allocation14 + $0x80] sm:$0xff]  ;;  %8150 = vst [vmem:[#allocation53_spill] sm:$0xff] %v7005_v52 }
 0x5f0   : > { %v6868_v2 = vpop.f32.mrf.mxu1  ;;  %8149 = vst [vmem:[#allocation52_spill] sm:$0xff] %v7002_v0 }
 0x5f1   : > { %8138 = vst [vmem:[#allocation41_spill] sm:$0xff] %v6868_v2  ;;  %v6993_v2 = vld [vmem:[#allocation14 + $0xa8] sm:$0xff] }
 0x5f2   : > { %8146 = vst [vmem:[#allocation49_spill] sm:$0xff] %v6993_v2 }
 0x612   : > { %v1813_v3 = vpop.f32.mrf.mxu1 }
 0x613   : > { %v6873_v55 = vadd.f32 %v6870_v49, %v1813_v3 }
 0x614   : > { %v1815_v5 = vpop.f32.mrf.mxu1 }
 0x615   : > { %v1819_v23 = vmul.f32 %v6873_v55, %v6873_v55  ;;  %v6947_v5 = vld [vmem:[#allocation14 + $0x158] sm:$0xff] }
 0x616   : > { %v1816_v24 = vpop.f32.mrf.mxu1 }
 0x617   : > { %4988 = vmatmul.mubr.f32.vlgmr.msra.gmra.mxu0 %v1819_v23  ;;  %v6950_v23 = vld [vmem:[#allocation14 + $0x150] sm:$0xff]  ;;  %v6953_v24 = vld [vmem:[#allocation14 + $0x140] sm:$0xff] }
 0x618   : > { %v1817_v25 = vpop.f32.mrf.mxu1  ;;  %4991 = vmatpush3.msra.mxu0 %v6643_v50  ;;  %4994 = vmatprep.mubr.msk.f32.mxu0 %vm6002_vm8, %v8013_v21 }
 0x619   : > { %4992 = vmatprep.subr.mxu0 %v8013_v21  ;;  %v6957_v25 = vld [vmem:[#allocation14 + $0x138] sm:$0xff] }
 0x61a   : > { %4993 = vmatpush3.msra.mxu0 %v6645_v51 }
 0x61b   : > { %1973 = vmatprep.subr.mxu0 %v6882_v26 }
 0x6d7   : > { %v1886_v37 = vpop.f32.mrf.mxu0 }
 0x6d8   : > { %5511 = vrsqrt.f32 %v1886_v37  ;;  %vm1892_vm15 = vcmp.eq.f32.partialorder %v1886_v37, inf  ;;  %v1895_v56 = vand.u32 2147483648, %v1886_v37  ;;  %vm1894_vm0 = vcmp.eq.f32.partialorder %v1886_v37, 0.0 }
 0x6d9   : > { %v4989_v41 = vpop.f32.mrf.mxu0 }
 0x6da   : > { %v6963_v41 = vld [vmem:[#allocation14 + $0x120] sm:$0xff] }
 0x6e5   : > { %v5512_v53 = vpop.eup %5511 }
 0x6e6   : > { %v1891_v54 = vmul.f32 %v5512_v53, %v1886_v37  ;;  %v6966_v53 = vld [vmem:[#allocation14 + $0x110] sm:$0xff] }
 0x6e8   : > { %v1893_v57 = vsel %vm1892_vm15, %v1886_v37, %v1891_v54  ;;  %v6960_v37 = vld [vmem:[#allocation14 + $0x128] sm:$0xff] }
 0x6e9   : > { %v1896_v58 = vsel %vm1894_vm0, %v1895_v56, %v1893_v57  ;;  %v6969_v54 = vld [vmem:[#allocation14 + $0x108] sm:$0xff]  ;;  %v6972_v56 = vld [vmem:[#allocation14 + $0xf8] sm:$0xff]  ;;  %v6975_v57 = vld [vmem:[#allocation14 + $0xf0] sm:$0xff] }
 0x6ea   : > { %v1897_v59 = vadd.f32 1e-10, %v1896_v58  ;;  %v6978_v58 = vld [vmem:[#allocation14 + $0xe0] sm:$0xff] }
 0x6eb   : > { %8141 = vst [vmem:[#allocation44_spill] sm:$0xff] %v6978_v58 }
 0x6ec   : > { %5513 = vrcp.f32 %v1897_v59  ;;  %v6981_v59 = vld [vmem:[#allocation14 + $0xd8] sm:$0xff] }
 0x6ed   : > { %8142 = vst [vmem:[#allocation45_spill] sm:$0xff] %v6981_v59 }
 0x6f9   : > { %v5514_v3 = vpop.eup %5513 }
 0x6fa   : > { %4995 = vmatmul.mubr.msk.f32.vlgmr.msra.gmra.mxu0 %vm1382_vm14, %v5514_v3  ;;  %v6984_v3 = vld [vmem:[#allocation14 + $0xc8] sm:$0xff] }
 0x6fb   : > { %1974 = vmatpush1.msra.mxu0 %v6945_v61  ;;  %2037 = vmatprep.mubr.f32.mxu0 %v8013_v21  ;;  %8143 = vst [vmem:[#allocation46_spill] sm:$0xff] %v6984_v3  ;;  %v6990_v21 = vld [vmem:[#allocation14 + $0xb0] sm:$0xff] }
 0x6fc   : > { %1975 = vmatprep.subr.mxu0 %v6947_v5  ;;  %8145 = vst [vmem:[#allocation48_spill] sm:$0xff] %v6990_v21 }
 0x6fd   : > { %1976 = vmatpush1.msra.mxu0 %v6950_v23 }
 0x6fe   : > { %1977 = vmatprep.subr.mxu0 %v6953_v24 }
 0x6ff   : > { %1978 = vmatpush1.msra.mxu0 %v6957_v25 }
 0x700   : > { %1979 = vmatprep.subr.mxu0 %v6960_v37 }
 0x701   : > { %1980 = vmatpush1.msra.mxu0 %v6963_v41 }
 0x702   : > { %1981 = vmatprep.subr.mxu0 %v6966_v53 }
 0x703   : > { %1982 = vmatpush1.msra.mxu0 %v6969_v54 }
 0x704   : > { %1983 = vmatprep.subr.mxu0 %v6972_v56 }
 0x705   : > { %1984 = vmatpush1.msra.mxu0 %v6975_v57 }
 0x706   : > { %1985 = vmatprep.subr.mxu0 %v6978_v58  ;;  %v5474_v58 = vld [vmem:[#allocation17 + $0x30] sm:$0xff]  }
 0x707   : > { %1986 = vmatpush1.msra.mxu0 %v6981_v59 }
 0x708   : > { %1987 = vmatprep.subr.mxu0 %v6984_v3 }
 0x709   : > { %1988 = vmatpush1.msra.mxu0 %v6987_v1  ;;  %v5473_v1 = vld [vmem:[#allocation17 + $0x38] sm:$0xff]  }
 0x70a   : > { %1989 = vmatprep.subr.mxu0 %v6990_v21 }
 0x70b   : > { %1990 = vmatpush1.msra.mxu0 %v6993_v2 }
 0x70c   : > { %1991 = vmatprep.subr.mxu0 %v6996_v48  ;;  %v7020_v48 = vld [vmem:[#allocation14 + $0x38] sm:$0xff] }
 0x70d   : > { %1992 = vmatpush1.msra.mxu0 %v6999_v63  ;;  %8155 = vst [vmem:[#allocation58_spill] sm:$0xff] %v7020_v48  ;;  %v7023_v63 = vld [vmem:[#allocation14 + $0x30] sm:$0xff] }
 0x70e   : > { %1993 = vmatprep.subr.mxu0 %v7002_v0  ;;  %8156 = vst [vmem:[#allocation59_spill] sm:$0xff] %v7023_v63  ;;  %v7026_v0 = vld [vmem:[#allocation14 + $0x20] sm:$0xff] }
 0x70f   : > { %1994 = vmatpush1.msra.mxu0 %v7005_v52  ;;  %8157 = vst [vmem:[#allocation60_spill] sm:$0xff] %v7026_v0  ;;  %v7029_v52 = vld [vmem:[#allocation14 + $0x18] sm:$0xff] }
 0x710   : > { %1995 = vmatprep.subr.mxu0 %v7008_v62  ;;  %8158 = vst [vmem:[#allocation61_spill] sm:$0xff] %v7029_v52  ;;  %v7036_v62 = vld [vmem:[#allocation14 + $0x28] sm:$0xff] }
 0x711   : > { %1996 = vmatpush1.msra.mxu0 %v7011_v28  ;;  %v7034_v28 = vld [vmem:[#allocation14 + $0x8] sm:$0xff]  ;;  %5026 = vmatpush3.msra.mxu1 %v7036_v62 }
 0x712   : > { %1997 = vmatprep.subr.mxu0 %v7014_v27  ;;  %8159 = vst [vmem:[#allocation62_spill] sm:$0xff] %v7034_v28  ;;  %v7044_v27 = vld [vmem:[#allocation14 + $0x10] sm:$0xff] }
 0x713   : > { %1998 = vmatpush1.msra.mxu0 %v7017_v45  ;;  %v7040_v45 = vld [vmem:[#allocation14] sm:$0xff] }
 0x714   : > { %1999 = vmatprep.subr.mxu0 %v7020_v48  ;;  %8160 = vst [vmem:[#allocation63_spill] sm:$0xff] %v7040_v45  ;;  %v8161_v48 = vmov 0.0  }
 0x715   : > { %2000 = vmatpush1.msra.mxu0 %v7023_v63  ;;  %5027 = vmatprep.subr.mxu1 %v8161_v48 }
 0x716   : > { %2001 = vmatprep.subr.mxu0 %v7026_v0  ;;  %5028 = vmatpush3.msra.mxu1 %v7044_v27  ;;  %v8162_v0 = vmov 0  }
 0x717   : > { %2002 = vmatpush1.msra.mxu0 %v7029_v52  ;;  %5032 = vmatprep.subr.mxu1 %v8161_v48  ;;  %v2119_v52 = vpack.c.bf16 %v6633_v44, %v6609_v22 }
 0x718   : > { %2003 = vmatprep.subr.mxu0 %v7034_v28 }
 0x719   : > { %2004 = vmatpush1.msra.mxu0 %v7040_v45  ;;  %v2150_v28 = vshll.u32 %v2119_v52, 16  ;;  %v2148_v63 = vshrl.u32 %v2119_v52, 16  ;;  %v8177_v52 = vld [vmem:[#allocation58_spill] sm:$0xff] }
 0x71a   : > { %2218 = vmatprep.subr.bf16.mxu0 %v8162_v0 }
 0x71b   : > { %v2152_v2 = vrot.slane %v2150_v28, 1 }
 0x71d   : > { %v2153_v3 = vor.u32 %v2152_v2, %v2148_v63 }
 0x7ba   : > { %v1968_v21 = vpop.f32.mrf.mxu0 }
 0x7bb   : > { %v1972_v45 = vmul.f32 %v1968_v21, %v6873_v55  ;;  %v5475_v21 = vld [vmem:[#allocation17 + $0x28] sm:$0xff]  }
 0x7bc   : > { %v4996_v59 = vpop.f32.mrf.mxu0 }
 0x7bd   : > { %2038 = vmatmul.mubr.f32.vlgmr.msra.gmra.mxu0 %v1972_v45  ;;  %5030 = vmatmul.mubr.f32.vlgmr.msra.gmra.mxu1 %v1972_v45  ;;  %v7189_v59 = vld [vmem:[%s8131_s6 + $0x78] sm:$0xff] }
 0x7be   : > { %2219 = vmatpush1.bf16.msra.mxu0 %v5473_v1  ;;  %4597 = vmatprep.mubr.msk.bf16.mxu0 %vm866_vm6, %v2153_v3  ;;  %v5476_v1 = vld [vmem:[#allocation17 + $0x20] sm:$0xff]  }
 0x7bf   : > { %2220 = vmatprep.subr.bf16.mxu0 %v8162_v0  ;;  %5033 = vmatpush3.msra.mxu1 %v6499_v4  ;;  %v5477_v4 = vld [vmem:[#allocation17 + $0x18] sm:$0xff]  }
 0x7c0   : > { %5034 = vmatprep.subr.mxu1 %v8161_v48  ;;  %5064 = vmatprep.mubr.msk.f32.mxu1 %vm6002_vm8, %v8161_v48  ;;  %v7198_v3 = vld [vmem:[%s8131_s6 + $0x70] sm:$0xff] }
 0x7c1   : > { %5035 = vmatpush3.msra.mxu1 %v6505_v6  ;;  %v5478_v6 = vld [vmem:[#allocation17 + $0x10] sm:$0xff]  }
 0x7c2   : > { %2221 = vmatpush1.bf16.msra.mxu0 %v5474_v58  ;;  %5036 = vmatprep.subr.mxu1 %v8161_v48  ;;  %v5484_v58 = vld [vmem:[#allocation20 + $0x30] sm:$0xff]  }
 0x7c3   : > { %2222 = vmatprep.subr.bf16.mxu0 %v8162_v0  ;;  %5037 = vmatpush3.msra.mxu1 %v6512_v7  ;;  %v5479_v7 = vld [vmem:[#allocation17 + $0x8] sm:$0xff]  }
 0x7c4   : > { %5038 = vmatprep.subr.mxu1 %v8161_v48 }
 0x7c5   : > { %5039 = vmatpush3.msra.mxu1 %v6519_v8  ;;  %v2117_v8 = vsel %vm864_vm5, %v6464_v47, %v6633_v44  ;;  %v5481_v47 = vld [vmem:[#allocation17 + $0x48] sm:$0xff]  }
 0x7c6   : > { %2223 = vmatpush1.bf16.msra.mxu0 %v5475_v21  ;;  %5040 = vmatprep.subr.mxu1 %v8161_v48  ;;  %v5485_v21 = vld [vmem:[#allocation20 + $0x28] sm:$0xff]  }
 0x7c7   : > { %2224 = vmatprep.subr.bf16.mxu0 %v8162_v0  ;;  %5041 = vmatpush3.msra.mxu1 %v6528_v9  ;;  %v5480_v9 = vld [vmem:[#allocation17] sm:$0xff]  }
 0x7c8   : > { %5042 = vmatprep.subr.mxu1 %v8161_v48 }
 0x7c9   : > { %5043 = vmatpush3.msra.mxu1 %v6535_v10  ;;  %v2118_v10 = vpack.c.bf16 %v2117_v8, %v6855_v60  ;;  %v7228_v8 = vld [vmem:[%s8131_s6 + $0x50] sm:$0xff] }
 0x7ca   : > { %2225 = vmatpush1.bf16.msra.mxu0 %v5476_v1  ;;  %5044 = vmatprep.subr.mxu1 %v8161_v48  ;;  %v7206_v1 = vld [vmem:[%s8131_s6 + $0x68] sm:$0xff] }
 0x7cb   : > { %2226 = vmatprep.subr.bf16.mxu0 %v8162_v0  ;;  %5045 = vmatpush3.msra.mxu1 %v6540_v11  ;;  %v2143_v11 = vshll.u32 %v2118_v10, 16 }
 0x7cc   : > { %5046 = vmatprep.subr.mxu1 %v8161_v48 }
 0x7cd   : > { %5047 = vmatpush3.msra.mxu1 %v6547_v12  ;;  %v5482_v12 = vld [vmem:[#allocation17 + $0x40] sm:$0xff]  }
 0x7ce   : > { %2227 = vmatpush1.bf16.msra.mxu0 %v5477_v4  ;;  %5048 = vmatprep.subr.mxu1 %v8161_v48  ;;  %v7213_v4 = vld [vmem:[%s8131_s6 + $0x60] sm:$0xff] }
 0x7cf   : > { %2228 = vmatprep.subr.bf16.mxu0 %v8162_v0  ;;  %5049 = vmatpush3.msra.mxu1 %v6554_v13  ;;  %v2141_v13 = vshrl.u32 %v2118_v10, 16  ;;  %v7236_v10 = vld [vmem:[%s8131_s6 + $0x48] sm:$0xff] }
 0x7d0   : > { %5050 = vmatprep.subr.mxu1 %v8161_v48 }
 0x7d1   : > { %5051 = vmatpush3.msra.mxu1 %v6561_v14  ;;  %v2145_v14 = vrot.slane %v2143_v11, 1  ;;  %v5488_v11 = vld [vmem:[#allocation20 + $0x10] sm:$0xff]  }
 0x7d2   : > { %2229 = vmatpush1.bf16.msra.mxu0 %v5478_v6  ;;  %5052 = vmatprep.subr.mxu1 %v8161_v48  ;;  %v5486_v6 = vld [vmem:[#allocation20 + $0x20] sm:$0xff]  }
 0x7d3   : > { %2230 = vmatprep.subr.bf16.mxu0 %v8162_v0  ;;  %5053 = vmatpush3.msra.mxu1 %v6568_v15  ;;  %v2146_v15 = vor.u32 %v2145_v14, %v2141_v13  ;;  %v7258_v13 = vld [vmem:[%s8131_s6 + $0x30] sm:$0xff] }
 0x7d4   : > { %5054 = vmatprep.subr.mxu1 %v8161_v48  ;;  %v5489_v14 = vld [vmem:[#allocation20 + $0x8] sm:$0xff]  }
 0x7d5   : > { %5055 = vmatpush3.msra.mxu1 %v6575_v16 }
 0x7d6   : > { %2231 = vmatpush1.bf16.msra.mxu0 %v5479_v7  ;;  %5056 = vmatprep.subr.mxu1 %v8161_v48  ;;  %v7221_v7 = vld [vmem:[%s8131_s6 + $0x58] sm:$0xff] }
 0x7d7   : > { %2232 = vmatprep.subr.bf16.mxu0 %v8162_v0  ;;  %5057 = vmatpush3.msra.mxu1 %v6584_v17 }
 0x7d8   : > { %5058 = vmatprep.subr.mxu1 %v8161_v48 }
 0x7d9   : > { %5059 = vmatpush3.msra.mxu1 %v6591_v18 }
 0x7da   : > { %2233 = vmatpush1.bf16.msra.mxu0 %v5480_v9  ;;  %5060 = vmatprep.subr.mxu1 %v8161_v48  ;;  %v5487_v9 = vld [vmem:[#allocation20 + $0x18] sm:$0xff]  }
 0x7db   : > { %2246 = vmatprep.subr.bf16.mxu0 %v8162_v0  ;;  %5061 = vmatpush3.msra.mxu1 %v6598_v19 }
 0x7dc   : > { %5062 = vmatprep.subr.mxu1 %v8161_v48 }
 0x7dd   : > { %5063 = vmatpush3.msra.mxu1 %v6605_v20 }
 0x7de   : > { %2247 = vmatpush2.bf16.msra.mxu0 %v5481_v47  ;;  %5067 = vmatprep.subr.mxu1 %v8161_v48  ;;  %v7243_v47 = vld [vmem:[%s8131_s6 + $0x40] sm:$0xff] }
 0x7df   : > { %2248 = vmatprep.subr.bf16.mxu0 %v8162_v0 }
 0x7e2   : > { %2249 = vmatpush2.bf16.msra.mxu0 %v5482_v12  ;;  %v7251_v12 = vld [vmem:[%s8131_s6 + $0x38] sm:$0xff] }
 0x7e3   : > { %5074 = vmatprep.subr.mxu0 %v8161_v48 }
 0x7e5   : > { %2251 = vmatmul.mubr.bf16.vlgmr.msra.gmra.mxu0 %v2146_v15  ;;  %v7266_v15 = vld [vmem:[%s8131_s6 + $0x28] sm:$0xff] }
 0x7e6   : > { %5075 = vmatpush3.msra.mxu0 %v6885_v29  ;;  %5106 = vmatprep.mubr.msk.f32.mxu0 %vm6002_vm8, %v8161_v48 }
 0x7e7   : > { %5076 = vmatprep.subr.mxu0 %v8161_v48 }
 0x7e8   : > { %5077 = vmatpush3.msra.mxu0 %v6889_v30 }
 0x7e9   : > { %5078 = vmatprep.subr.mxu0 %v8161_v48 }
 0x7ea   : > { %5079 = vmatpush3.msra.mxu0 %v6893_v31  ;;  %v8165_v31 = vld [vmem:[#allocation46_spill] sm:$0xff] }
 0x7eb   : > { %5080 = vmatprep.subr.mxu0 %v8161_v48 }
 0x7ec   : > { %5081 = vmatpush3.msra.mxu0 %v6897_v32  ;;  %v8166_v32 = vld [vmem:[#allocation47_spill] sm:$0xff] }
 0x7ed   : > { %5082 = vmatprep.subr.mxu0 %v8161_v48 }
 0x7ee   : > { %5083 = vmatpush3.msra.mxu0 %v6901_v33  ;;  %v8167_v33 = vld [vmem:[#allocation48_spill] sm:$0xff] }
 0x7ef   : > { %5084 = vmatprep.subr.mxu0 %v8161_v48 }
 0x7f0   : > { %5085 = vmatpush3.msra.mxu0 %v6905_v34  ;;  %v8168_v34 = vld [vmem:[#allocation49_spill] sm:$0xff] }
 0x7f1   : > { %5086 = vmatprep.subr.mxu0 %v8161_v48 }
 0x7f2   : > { %5087 = vmatpush3.msra.mxu0 %v6909_v35  ;;  %v8169_v35 = vld [vmem:[#allocation50_spill] sm:$0xff] }
 0x7f3   : > { %5088 = vmatprep.subr.mxu0 %v8161_v48 }
 0x7f4   : > { %5089 = vmatpush3.msra.mxu0 %v6913_v36  ;;  %v8170_v36 = vld [vmem:[#allocation51_spill] sm:$0xff] }
 0x7f5   : > { %5090 = vmatprep.subr.mxu0 %v8161_v48 }
 0x7f6   : > { %5091 = vmatpush3.msra.mxu0 %v6917_v38  ;;  %v8171_v38 = vld [vmem:[#allocation52_spill] sm:$0xff] }
 0x7f7   : > { %5092 = vmatprep.subr.mxu0 %v8161_v48 }
 0x7f8   : > { %5093 = vmatpush3.msra.mxu0 %v6921_v39  ;;  %v8172_v39 = vld [vmem:[#allocation53_spill] sm:$0xff] }
 0x7f9   : > { %5094 = vmatprep.subr.mxu0 %v8161_v48 }
 0x7fa   : > { %5095 = vmatpush3.msra.mxu0 %v6925_v40  ;;  %v8173_v40 = vld [vmem:[#allocation54_spill] sm:$0xff] }
 0x7fb   : > { %5096 = vmatprep.subr.mxu0 %v8161_v48 }
 0x7fc   : > { %5097 = vmatpush3.msra.mxu0 %v6929_v42  ;;  %v8174_v42 = vld [vmem:[#allocation55_spill] sm:$0xff] }
 0x7fd   : > { %5098 = vmatprep.subr.mxu0 %v8161_v48 }
 0x7fe   : > { %5099 = vmatpush3.msra.mxu0 %v6933_v43  ;;  %v8175_v43 = vld [vmem:[#allocation56_spill] sm:$0xff] }
 0x7ff   : > { %5100 = vmatprep.subr.mxu0 %v8161_v48 }
 0x800   : > { %5101 = vmatpush3.msra.mxu0 %v6937_v46  ;;  %v8176_v46 = vld [vmem:[#allocation57_spill] sm:$0xff] }
 0x801   : > { %5102 = vmatprep.subr.mxu0 %v8161_v48 }
 0x802   : > { %5103 = vmatpush3.msra.mxu0 %v7036_v62 }
 0x803   : > { %5104 = vmatprep.subr.mxu0 %v8161_v48 }
 0x804   : > { %5105 = vmatpush3.msra.mxu0 %v7044_v27 }
 0x805   : > { %5109 = vmatprep.subr.mxu0 %v8161_v48 }
 0x87d   : > { %v7135_v16 = vpop.f32.mrf.mxu1  ;;  %v7137_v18 = vpop.f32.mrf.mxu0 }
 0x87f   : > { %v5031_v17 = vpop.f32.mrf.mxu1  ;;  %v7139_v19 = vpop.f32.mrf.mxu0 }
 0x880   : > { %v7273_v17 = vld [vmem:[%s8131_s6 + $0x20] sm:$0xff] }
 0x8a5   : > { %v2252_v20 = vpop.f32.mrf.mxu0 }
 0x8a6   : > { %v2253_v22 = vadd.f32 %v6870_v49, %v2252_v20  ;;  %v5490_v20 = vld [vmem:[#allocation20] sm:$0xff]  }
 0x8a7   : > { %v2254_v28 = vpop.f32.mrf.mxu0 }
 0x8a8   : > { %v2258_v44 = vmul.f32 %v2253_v22, %v2253_v22  ;;  %v7288_v28 = vld [vmem:[%s8131_s6 + $0x10] sm:$0xff] }
 0x8a9   : > { %v2255_v45 = vpop.f32.mrf.mxu0 }
 0x8aa   : > { %5065 = vmatmul.mubr.f32.vlgmr.msra.gmra.mxu1 %v2258_v44  ;;  %v5491_v44 = vld [vmem:[#allocation20 + $0x48] sm:$0xff]  }
 0x8ab   : > { %v2256_v60 = vpop.f32.mrf.mxu0  ;;  %5068 = vmatpush3.msra.mxu1 %v6643_v50  ;;  %5071 = vmatprep.mubr.msk.f32.mxu1 %vm6002_vm8, %v8161_v48  ;;  %v7296_v45 = vld [vmem:[%s8131_s6 + $0x8] sm:$0xff] }
 0x8ac   : > { %5069 = vmatprep.subr.mxu1 %v8161_v48  ;;  %v7303_v60 = vld [vmem:[%s8131_s6] sm:$0xff] }
 0x8ad   : > { %5070 = vmatpush3.msra.mxu1 %v6645_v51  ;;  %v8163_v51 = vld [vmem:[#allocation44_spill] sm:$0xff] }
 0x8ae   : > { %2412 = vmatprep.subr.mxu1 %v6882_v26  ;;  %v8164_v26 = vld [vmem:[#allocation45_spill] sm:$0xff] }
 0x96a   : > { %v2325_v27 = vpop.f32.mrf.mxu1 }
 0x96b   : > { %5515 = vrsqrt.f32 %v2325_v27  ;;  %vm2331_vm1 = vcmp.eq.f32.partialorder %v2325_v27, inf  ;;  %v2334_v49 = vand.u32 2147483648, %v2325_v27  ;;  %vm2333_vm2 = vcmp.eq.f32.partialorder %v2325_v27, 0.0 }
 0x96c   : > { %v5066_v62 = vpop.f32.mrf.mxu1 }
 0x96d   : > { %v8184_v62 = vld [vmem:[#allocation35_spill] sm:$0xff] }
 0x978   : > { %v5516_v63 = vpop.eup %5515 }
 0x979   : > { %v2330_v2 = vmul.f32 %v5516_v63, %v2325_v27 }
 0x97b   : > { %v2332_v55 = vsel %vm2331_vm1, %v2325_v27, %v2330_v2  ;;  %v5492_v27 = vld [vmem:[#allocation20 + $0x40] sm:$0xff]  }
 0x97c   : > { %v2335_v29 = vsel %vm2333_vm2, %v2334_v49, %v2332_v55 }
 0x97d   : > { %v2336_v50 = vadd.f32 1e-10, %v2335_v29 }
 0x97f   : > { %5517 = vrcp.f32 %v2336_v50 }
 0x98c   : > { %v5518_v30 = vpop.eup %5517 }
 0x98d   : > { %5072 = vmatmul.mubr.msk.f32.vlgmr.msra.gmra.mxu1 %vm1382_vm14, %v5518_v30  ;;  %v7327_v30 = vld [vmem:[%s7990_s15] ss:$0 sm:$0xff] }
 0x98e   : > { %2413 = vmatpush1.msra.mxu1 %v6945_v61  ;;  %2476 = vmatprep.mubr.f32.mxu1 %v8161_v48  ;;  %v8178_v61 = vld [vmem:[#allocation59_spill] sm:$0xff] }
 0x98f   : > { %2414 = vmatprep.subr.mxu1 %v6947_v5  ;;  %v8179_v5 = vld [vmem:[#allocation60_spill] sm:$0xff] }
 0x990   : > { %2415 = vmatpush1.msra.mxu1 %v6950_v23  ;;  %v8180_v23 = vld [vmem:[#allocation61_spill] sm:$0xff] }
 0x991   : > { %2416 = vmatprep.subr.mxu1 %v6953_v24  ;;  %v8181_v24 = vld [vmem:[#allocation62_spill] sm:$0xff] }
 0x992   : > { %2417 = vmatpush1.msra.mxu1 %v6957_v25  ;;  %v8182_v25 = vld [vmem:[#allocation63_spill] sm:$0xff] }
 0x993   : > { %2418 = vmatprep.subr.mxu1 %v6960_v37 }
 0x994   : > { %2419 = vmatpush1.msra.mxu1 %v6963_v41  ;;  %v5483_v41 = vld [vmem:[#allocation20 + $0x38] sm:$0xff]  }
 0x995   : > { %2420 = vmatprep.subr.mxu1 %v6966_v53 }
 0x996   : > { %2421 = vmatpush1.msra.mxu1 %v6969_v54  ;;  %v8183_v54 = vld [vmem:[#allocation37_spill] sm:$0xff] }
 0x997   : > { %2422 = vmatprep.subr.mxu1 %v6972_v56  ;;  %v2622_v56 = vpack.c.bf16 %v8183_v54, %v8183_v54  ;;  %v7311_v63 = vsel %vm864_vm5, %v8184_v62, %v8183_v54  ;;  %v7407_v62 = vld [vmem:[#allocation18 + $0x150] sm:$0xff] }
 0x998   : > { %2423 = vmatpush1.msra.mxu1 %v6975_v57  ;;  %v2621_v2 = vpack.c.bf16 %v7311_v63, %v7311_v63 }
 0x999   : > { %2424 = vmatprep.subr.mxu1 %v8163_v51 }
 0x99a   : > { %2425 = vmatpush1.msra.mxu1 %v8164_v26 }
 0x99b   : > { %2426 = vmatprep.subr.mxu1 %v8165_v31 }
 0x99c   : > { %2427 = vmatpush1.msra.mxu1 %v8166_v32 }
 0x99d   : > { %2428 = vmatprep.subr.mxu1 %v8167_v33 }
 0x99e   : > { %2429 = vmatpush1.msra.mxu1 %v8168_v34 }
 0x99f   : > { %2430 = vmatprep.subr.mxu1 %v8169_v35  ;;  %v7334_v35 = vld [vmem:[#allocation8 + $0x8] sm:$0xff] }
 0x9a0   : > { %2431 = vmatpush1.msra.mxu1 %v8170_v36  ;;  %v7340_v36 = vld [vmem:[#allocation8] sm:$0xff] }
 0x9a1   : > { %2432 = vmatprep.subr.mxu1 %v8171_v38  ;;  %v7343_v38 = vld [vmem:[#allocation18 + $0x170] sm:$0xff] }
 0x9a2   : > { %2433 = vmatpush1.msra.mxu1 %v8172_v39  ;;  %v7346_v39 = vld [vmem:[#allocation18 + $0x178] sm:$0xff] }
 0x9a3   : > { %2434 = vmatprep.subr.mxu1 %v8173_v40  ;;  %v7350_v40 = vld [vmem:[#allocation18 + $0x160] sm:$0xff] }
 0x9a4   : > { %2435 = vmatpush1.msra.mxu1 %v8174_v42  ;;  %v7354_v42 = vld [vmem:[#allocation18 + $0x148] sm:$0xff] }
 0x9a5   : > { %2436 = vmatprep.subr.mxu1 %v8175_v43  ;;  %v7358_v43 = vld [vmem:[#allocation18 + $0x130] sm:$0xff] }
 0x9a6   : > { %2437 = vmatpush1.msra.mxu1 %v8176_v46  ;;  %v7362_v46 = vld [vmem:[#allocation18 + $0x118] sm:$0xff] }
 0x9a7   : > { %2438 = vmatprep.subr.mxu1 %v8177_v52  ;;  %v7366_v52 = vld [vmem:[#allocation18 + $0x100] sm:$0xff] }
 0x9a8   : > { %2439 = vmatpush1.msra.mxu1 %v8178_v61  ;;  %v7370_v61 = vld [vmem:[#allocation18 + $0xe8] sm:$0xff] }
 0x9a9   : > { %2440 = vmatprep.subr.mxu1 %v8179_v5  ;;  %v7374_v5 = vld [vmem:[#allocation18 + $0xd0] sm:$0xff] }
 0x9aa   : > { %2441 = vmatpush1.msra.mxu1 %v8180_v23  ;;  %v7378_v23 = vld [vmem:[#allocation18 + $0xb8] sm:$0xff] }
 0x9ab   : > { %2442 = vmatprep.subr.mxu1 %v8181_v24  ;;  %v7382_v24 = vld [vmem:[#allocation18 + $0xa0] sm:$0xff] }
 0x9ac   : > { %2443 = vmatpush1.msra.mxu1 %v8182_v25  ;;  %v7386_v25 = vld [vmem:[#allocation18 + $0x88] sm:$0xff] }
 0x9ad   : > { %2712 = vmatprep.subr.bf16.mxu1 %v8162_v0 }
 0xa4d   : > { %v2407_v37 = vpop.f32.mrf.mxu1 }
 0xa4e   : > { %v2411_v53 = vmul.f32 %v2407_v37, %v2253_v22  ;;  %v7281_v22 = vld [vmem:[%s8131_s6 + $0x18] sm:$0xff] }
 0xa4f   : > { %v5073_v57 = vpop.f32.mrf.mxu1  ;;  %v7390_v37 = vld [vmem:[#allocation18 + $0x70] sm:$0xff] }
 0xa50   : > { %2477 = vmatmul.mubr.f32.vlgmr.msra.gmra.mxu1 %v2411_v53  ;;  %5107 = vmatmul.mubr.f32.vlgmr.msra.gmra.mxu0 %v2411_v53  ;;  %v7398_v53 = vld [vmem:[#allocation18 + $0x40] sm:$0xff] }
 0xa51   : > { %2713 = vmatpush1.bf16.msra.mxu1 %v5483_v41  ;;  %4610 = vmatprep.mubr.msk.bf16.mxu1 %vm866_vm6, %v2622_v56  ;;  %v7394_v41 = vld [vmem:[#allocation18 + $0x58] sm:$0xff] }
 0xa52   : > { %2714 = vmatprep.subr.bf16.mxu1 %v8162_v0  ;;  %5110 = vmatpush3.msra.mxu0 %v7189_v59 }
 0xa53   : > { %5111 = vmatprep.subr.mxu0 %v8161_v48  ;;  %5141 = vmatprep.mubr.msk.f32.mxu0 %vm6002_vm8, %v8161_v48 }
 0xa54   : > { %5112 = vmatpush3.msra.mxu0 %v7198_v3 }
 0xa55   : > { %2715 = vmatpush1.bf16.msra.mxu1 %v5484_v58  ;;  %5113 = vmatprep.subr.mxu0 %v8161_v48 }
 0xa56   : > { %2716 = vmatprep.subr.bf16.mxu1 %v8162_v0  ;;  %5114 = vmatpush3.msra.mxu0 %v7206_v1 }
 0xa57   : > { %5115 = vmatprep.subr.mxu0 %v8161_v48 }
 0xa58   : > { %5116 = vmatpush3.msra.mxu0 %v7213_v4 }
 0xa59   : > { %2717 = vmatpush1.bf16.msra.mxu1 %v5485_v21  ;;  %5117 = vmatprep.subr.mxu0 %v8161_v48 }
 0xa5a   : > { %2718 = vmatprep.subr.bf16.mxu1 %v8162_v0  ;;  %5118 = vmatpush3.msra.mxu0 %v7221_v7 }
 0xa5b   : > { %5119 = vmatprep.subr.mxu0 %v8161_v48 }
 0xa5c   : > { %5120 = vmatpush3.msra.mxu0 %v7228_v8 }
 0xa5d   : > { %2719 = vmatpush1.bf16.msra.mxu1 %v5486_v6  ;;  %5121 = vmatprep.subr.mxu0 %v8161_v48 }
 0xa5e   : > { %2720 = vmatprep.subr.bf16.mxu1 %v8162_v0  ;;  %5122 = vmatpush3.msra.mxu0 %v7236_v10 }
 0xa5f   : > { %5123 = vmatprep.subr.mxu0 %v8161_v48 }
 0xa60   : > { %5124 = vmatpush3.msra.mxu0 %v7243_v47 }
 0xa61   : > { %2721 = vmatpush1.bf16.msra.mxu1 %v5487_v9  ;;  %5125 = vmatprep.subr.mxu0 %v8161_v48 }
 0xa62   : > { %2722 = vmatprep.subr.bf16.mxu1 %v8162_v0  ;;  %5126 = vmatpush3.msra.mxu0 %v7251_v12 }
 0xa63   : > { %5127 = vmatprep.subr.mxu0 %v8161_v48 }
 0xa64   : > { %5128 = vmatpush3.msra.mxu0 %v7258_v13 }
 0xa65   : > { %2723 = vmatpush1.bf16.msra.mxu1 %v5488_v11  ;;  %5129 = vmatprep.subr.mxu0 %v8161_v48 }
 0xa66   : > { %2724 = vmatprep.subr.bf16.mxu1 %v8162_v0  ;;  %5130 = vmatpush3.msra.mxu0 %v7266_v15 }
 0xa67   : > { %5131 = vmatprep.subr.mxu0 %v8161_v48 }
 0xa68   : > { %5132 = vmatpush3.msra.mxu0 %v7273_v17 }
 0xa69   : > { %2725 = vmatpush1.bf16.msra.mxu1 %v5489_v14  ;;  %5133 = vmatprep.subr.mxu0 %v8161_v48 }
 0xa6a   : > { %2726 = vmatprep.subr.bf16.mxu1 %v8162_v0  ;;  %5134 = vmatpush3.msra.mxu0 %v7281_v22 }
 0xa6b   : > { %5135 = vmatprep.subr.mxu0 %v8161_v48 }
 0xa6c   : > { %5136 = vmatpush3.msra.mxu0 %v7288_v28 }
 0xa6d   : > { %2727 = vmatpush1.bf16.msra.mxu1 %v5490_v20  ;;  %5137 = vmatprep.subr.mxu0 %v8161_v48  ;;  %v7402_v20 = vld [vmem:[#allocation18 + $0x168] sm:$0xff] }
 0xa6e   : > { %2740 = vmatprep.subr.bf16.mxu1 %v8162_v0  ;;  %5138 = vmatpush3.msra.mxu0 %v7296_v45 }
 0xa6f   : > { %5139 = vmatprep.subr.mxu0 %v8161_v48 }
 0xa70   : > { %5140 = vmatpush3.msra.mxu0 %v7303_v60 }
 0xa71   : > { %2741 = vmatpush2.bf16.msra.mxu1 %v5491_v44  ;;  %5144 = vmatprep.subr.mxu0 %v8161_v48 }
 0xa72   : > { %2742 = vmatprep.subr.bf16.mxu1 %v8162_v0 }
 0xa75   : > { %2743 = vmatpush2.bf16.msra.mxu1 %v5492_v27  ;;  %v7404_v27 = vld [vmem:[#allocation18 + $0x158] sm:$0xff] }
 0xa76   : > { %5151 = vmatprep.subr.mxu1 %v8161_v48 }
 0xa78   : > { %2745 = vmatmul.mubr.bf16.vlgmr.msra.gmra.mxu1 %v2621_v2  ;;  %v7410_v2 = vld [vmem:[#allocation18 + $0x140] sm:$0xff] }
 0xa79   : > { %5183 = vmatprep.mubr.msk.f32.mxu1 %vm6002_vm8, %v8161_v48  ;;  %5152 = vmatpush3.msra.mxu1 %v7346_v39 }
 0xa7a   : > { %5153 = vmatprep.subr.mxu1 %v8161_v48 }
 0xa7b   : > { %5154 = vmatpush3.msra.mxu1 %v7350_v40 }
 0xa7c   : > { %5155 = vmatprep.subr.mxu1 %v8161_v48 }
 0xa7d   : > { %5156 = vmatpush3.msra.mxu1 %v7354_v42 }
 0xa7e   : > { %5157 = vmatprep.subr.mxu1 %v8161_v48 }
 0xa7f   : > { %5158 = vmatpush3.msra.mxu1 %v7358_v43 }
 0xa80   : > { %5159 = vmatprep.subr.mxu1 %v8161_v48 }
 0xa81   : > { %5160 = vmatpush3.msra.mxu1 %v7362_v46 }
 0xa82   : > { %5161 = vmatprep.subr.mxu1 %v8161_v48 }
 0xa83   : > { %5162 = vmatpush3.msra.mxu1 %v7366_v52 }
 0xa84   : > { %5163 = vmatprep.subr.mxu1 %v8161_v48 }
 0xa85   : > { %5164 = vmatpush3.msra.mxu1 %v7370_v61 }
 0xa86   : > { %5165 = vmatprep.subr.mxu1 %v8161_v48 }
 0xa87   : > { %5166 = vmatpush3.msra.mxu1 %v7374_v5 }
 0xa88   : > { %5167 = vmatprep.subr.mxu1 %v8161_v48 }
 0xa89   : > { %5168 = vmatpush3.msra.mxu1 %v7378_v23 }
 0xa8a   : > { %5169 = vmatprep.subr.mxu1 %v8161_v48 }
 0xa8b   : > { %5170 = vmatpush3.msra.mxu1 %v7382_v24 }
 0xa8c   : > { %5171 = vmatprep.subr.mxu1 %v8161_v48 }
 0xa8d   : > { %5172 = vmatpush3.msra.mxu1 %v7386_v25 }
 0xa8e   : > { %5173 = vmatprep.subr.mxu1 %v8161_v48 }
 0xa8f   : > { %5174 = vmatpush3.msra.mxu1 %v7390_v37 }
 0xa90   : > { %5175 = vmatprep.subr.mxu1 %v8161_v48 }
 0xa91   : > { %5176 = vmatpush3.msra.mxu1 %v7394_v41 }
 0xa92   : > { %5177 = vmatprep.subr.mxu1 %v8161_v48 }
 0xa93   : > { %5178 = vmatpush3.msra.mxu1 %v7398_v53 }
 0xa94   : > { %5179 = vmatprep.subr.mxu1 %v8161_v48 }
 0xb10   : > { %v7318_v49 = vpop.f32.mrf.mxu0  ;;  %v7320_v29 = vpop.f32.mrf.mxu1 }
 0xb11   : > { %8185 = vst [vmem:[#allocation44_spill] sm:$0xff] %v7318_v49  ;;  %8186 = vst [vmem:[#allocation45_spill] sm:$0xff] %v7320_v29  ;;  %v7462_v49 = vld [vmem:[#allocation18 + $0x78] sm:$0xff]  ;;  %v7465_v29 = vld [vmem:[#allocation18 + $0x68] sm:$0xff] }
 0xb12   : > { %v5108_v55 = vpop.f32.mrf.mxu0  ;;  %v7322_v50 = vpop.f32.mrf.mxu1  ;;  %8199 = vst [vmem:[#allocation58_spill] sm:$0xff] %v7462_v49  ;;  %8200 = vst [vmem:[#allocation59_spill] sm:$0xff] %v7465_v29 }
 0xb13   : > { %8187 = vst [vmem:[#allocation46_spill] sm:$0xff] %v7322_v50  ;;  %v7414_v55 = vld [vmem:[#allocation18 + $0x138] sm:$0xff]  ;;  %v7459_v50 = vld [vmem:[#allocation18 + $0x80] sm:$0xff] }
 0xb14   : > { %8198 = vst [vmem:[#allocation57_spill] sm:$0xff] %v7459_v50 }
 0xb38   : > { %v2746_v51 = vpop.f32.mrf.mxu1 }
 0xb39   : > { %v7330_v26 = vadd.f32 %v7327_v30, %v2746_v51  ;;  %v7417_v51 = vld [vmem:[#allocation18 + $0x128] sm:$0xff] }
 0xb3a   : > { %v2748_v31 = vpop.f32.mrf.mxu1 }
 0xb3b   : > { %v2752_v32 = vmul.f32 %v7330_v26, %v7330_v26  ;;  %v7420_v31 = vld [vmem:[#allocation18 + $0x120] sm:$0xff] }
 0xb3c   : > { %v2749_v33 = vpop.f32.mrf.mxu1 }
 0xb3d   : > { %5142 = vmatmul.mubr.f32.vlgmr.msra.gmra.mxu0 %v2752_v32  ;;  %v7423_v32 = vld [vmem:[#allocation18 + $0x110] sm:$0xff]  ;;  %v7426_v33 = vld [vmem:[#allocation18 + $0x108] sm:$0xff] }
 0xb3e   : > { %v2750_v34 = vpop.f32.mrf.mxu1  ;;  %5145 = vmatpush3.msra.mxu0 %v7334_v35  ;;  %5148 = vmatprep.mubr.msk.f32.mxu0 %vm6002_vm8, %v8161_v48 }
 0xb3f   : > { %5146 = vmatprep.subr.mxu0 %v8161_v48  ;;  %v7429_v34 = vld [vmem:[#allocation18 + $0xf8] sm:$0xff] }
 0xb40   : > { %5147 = vmatpush3.msra.mxu0 %v7340_v36  ;;  %8188 = vst [vmem:[#allocation47_spill] sm:$0xff] %v7429_v34 }
 0xb41   : > { %2906 = vmatprep.subr.mxu0 %v7343_v38 }
 0xbfd   : > { %v2819_v56 = vpop.f32.mrf.mxu0 }
 0xbfe   : > { %5519 = vrsqrt.f32 %v2819_v56  ;;  %vm2825_vm3 = vcmp.eq.f32.partialorder %v2819_v56, inf  ;;  %v2828_v6 = vand.u32 2147483648, %v2819_v56  ;;  %vm2827_vm4 = vcmp.eq.f32.partialorder %v2819_v56, 0.0 }
 0xbff   : > { %v5143_v57 = vpop.f32.mrf.mxu0 }
 0xc00   : > { %v7435_v57 = vld [vmem:[#allocation18 + $0xe0] sm:$0xff] }
 0xc01   : > { %8190 = vst [vmem:[#allocation49_spill] sm:$0xff] %v7435_v57 }
 0xc0b   : > { %v5520_v58 = vpop.eup %5519 }
 0xc0c   : > { %v2824_v21 = vmul.f32 %v5520_v58, %v2819_v56  ;;  %v7438_v58 = vld [vmem:[#allocation18 + $0xd8] sm:$0xff] }
 0xc0d   : > { %8191 = vst [vmem:[#allocation50_spill] sm:$0xff] %v7438_v58 }
 0xc0e   : > { %v2826_v9 = vsel %vm2825_vm3, %v2819_v56, %v2824_v21  ;;  %v7432_v56 = vld [vmem:[#allocation18 + $0xf0] sm:$0xff]  ;;  %v7441_v21 = vld [vmem:[#allocation18 + $0xc8] sm:$0xff] }
 0xc0f   : > { %v2829_v11 = vsel %vm2827_vm4, %v2828_v6, %v2826_v9  ;;  %8189 = vst [vmem:[#allocation48_spill] sm:$0xff] %v7432_v56  ;;  %8192 = vst [vmem:[#allocation51_spill] sm:$0xff] %v7441_v21  ;;  %v7444_v6 = vld [vmem:[#allocation18 + $0xc0] sm:$0xff]  ;;  %v7447_v9 = vld [vmem:[#allocation18 + $0xb0] sm:$0xff] }
 0xc10   : > { %v2830_v14 = vadd.f32 1e-10, %v2829_v11  ;;  %8193 = vst [vmem:[#allocation52_spill] sm:$0xff] %v7444_v6  ;;  %8194 = vst [vmem:[#allocation53_spill] sm:$0xff] %v7447_v9  ;;  %v7450_v11 = vld [vmem:[#allocation18 + $0xa8] sm:$0xff] }
 0xc11   : > { %8195 = vst [vmem:[#allocation54_spill] sm:$0xff] %v7450_v11 }
 0xc12   : > { %5521 = vrcp.f32 %v2830_v14  ;;  %v7453_v14 = vld [vmem:[#allocation18 + $0x98] sm:$0xff] }
 0xc13   : > { %8196 = vst [vmem:[#allocation55_spill] sm:$0xff] %v7453_v14 }
 0xc1f   : > { %v5522_v44 = vpop.eup %5521 }
 0xc20   : > { %5149 = vmatmul.mubr.msk.f32.vlgmr.msra.gmra.mxu0 %vm1382_vm14, %v5522_v44  ;;  %v7456_v44 = vld [vmem:[#allocation18 + $0x90] sm:$0xff] }
 0xc21   : > { %2907 = vmatpush1.msra.mxu0 %v7402_v20  ;;  %2970 = vmatprep.mubr.f32.mxu0 %v8161_v48  ;;  %8197 = vst [vmem:[#allocation56_spill] sm:$0xff] %v7456_v44 }
 0xc22   : > { %2908 = vmatprep.subr.mxu0 %v7404_v27 }
 0xc23   : > { %2909 = vmatpush1.msra.mxu0 %v7407_v62 }
 0xc24   : > { %2910 = vmatprep.subr.mxu0 %v7410_v2 }
 0xc25   : > { %2911 = vmatpush1.msra.mxu0 %v7414_v55 }
 0xc26   : > { %2912 = vmatprep.subr.mxu0 %v7417_v51 }
 0xc27   : > { %2913 = vmatpush1.msra.mxu0 %v7420_v31 }
 0xc28   : > { %2914 = vmatprep.subr.mxu0 %v7423_v32 }
 0xc29   : > { %2915 = vmatpush1.msra.mxu0 %v7426_v33 }
 0xc2a   : > { %2916 = vmatprep.subr.mxu0 %v7429_v34  ;;  %v5494_v34 = vld [vmem:[#allocation21 + $0x30] sm:$0xff]  }
 0xc2b   : > { %2917 = vmatpush1.msra.mxu0 %v7432_v56 }
 0xc2c   : > { %2918 = vmatprep.subr.mxu0 %v7435_v57 }
 0xc2d   : > { %2919 = vmatpush1.msra.mxu0 %v7438_v58  ;;  %v5493_v58 = vld [vmem:[#allocation21 + $0x38] sm:$0xff]  }
 0xc2e   : > { %2920 = vmatprep.subr.mxu0 %v7441_v21 }
 0xc2f   : > { %2921 = vmatpush1.msra.mxu0 %v7444_v6  ;;  %v7468_v6 = vld [vmem:[#allocation18 + $0x60] sm:$0xff] }
 0xc30   : > { %2922 = vmatprep.subr.mxu0 %v7447_v9  ;;  %8201 = vst [vmem:[#allocation60_spill] sm:$0xff] %v7468_v6  ;;  %v7471_v9 = vld [vmem:[#allocation18 + $0x50] sm:$0xff] }
 0xc31   : > { %2923 = vmatpush1.msra.mxu0 %v7450_v11  ;;  %8202 = vst [vmem:[#allocation61_spill] sm:$0xff] %v7471_v9  ;;  %v7474_v11 = vld [vmem:[#allocation18 + $0x48] sm:$0xff] }
 0xc32   : > { %2924 = vmatprep.subr.mxu0 %v7453_v14  ;;  %8203 = vst [vmem:[#allocation62_spill] sm:$0xff] %v7474_v11  ;;  %v7477_v14 = vld [vmem:[#allocation18 + $0x38] sm:$0xff] }
 0xc33   : > { %2925 = vmatpush1.msra.mxu0 %v7456_v44  ;;  %8204 = vst [vmem:[#allocation63_spill] sm:$0xff] %v7477_v14  ;;  %v7480_v44 = vld [vmem:[#allocation18 + $0x30] sm:$0xff] }
 0xc34   : > { %2926 = vmatprep.subr.mxu0 %v7459_v50  ;;  %8205 = vst [vmem:[#allocation37_spill] sm:$0xff] %v7480_v44  ;;  %v7483_v50 = vld [vmem:[#allocation18 + $0x20] sm:$0xff] }
 0xc35   : > { %2927 = vmatpush1.msra.mxu0 %v7462_v49  ;;  %8206 = vst [vmem:[#allocation35_spill] sm:$0xff] %v7483_v50  ;;  %v7486_v49 = vld [vmem:[#allocation18 + $0x18] sm:$0xff] }
 0xc36   : > { %2928 = vmatprep.subr.mxu0 %v7465_v29  ;;  %8207 = vst [vmem:[#allocation64_spill] sm:$0xff] %v7486_v49  ;;  %v7493_v29 = vld [vmem:[#allocation18 + $0x28] sm:$0xff] }
 0xc37   : > { %2929 = vmatpush1.msra.mxu0 %v7468_v6  ;;  %v7491_v6 = vld [vmem:[#allocation18 + $0x8] sm:$0xff]  ;;  %5180 = vmatpush3.msra.mxu1 %v7493_v29 }
 0xc38   : > { %2930 = vmatprep.subr.mxu0 %v7471_v9  ;;  %8208 = vst [vmem:[#allocation65_spill] sm:$0xff] %v7491_v6  ;;  %v7495_v9 = vld [vmem:[#allocation18] sm:$0xff]  ;;  %5181 = vmatprep.subr.mxu1 %v8161_v48 }
 0xc39   : > { %2931 = vmatpush1.msra.mxu0 %v7474_v11  ;;  %8209 = vst [vmem:[#allocation66_spill] sm:$0xff] %v7495_v9  ;;  %v7499_v11 = vld [vmem:[#allocation18 + $0x10] sm:$0xff] }
 0xc3a   : > { %2932 = vmatprep.subr.mxu0 %v7477_v14  ;;  %5182 = vmatpush3.msra.mxu1 %v7499_v11 }
 0xc3b   : > { %2933 = vmatpush1.msra.mxu0 %v7480_v44  ;;  %5186 = vmatprep.subr.mxu1 %v8161_v48 }
 0xc3c   : > { %2934 = vmatprep.subr.mxu0 %v7483_v50 }
 0xc3d   : > { %2935 = vmatpush1.msra.mxu0 %v7486_v49  ;;  %v3048_v49 = vpop.permute.xlu0 %3047 }
 0xc3e   : > { %2936 = vmatprep.subr.mxu0 %v7491_v6  ;;  %v3052_v50 = vpack.c.bf16 %v3048_v49, %v8183_v54  ;;  %v5495_v54 = vld [vmem:[#allocation21 + $0x28] sm:$0xff]  }
 0xc3f   : > { %2937 = vmatpush1.msra.mxu0 %v7495_v9 }
 0xc40   : > { %3151 = vmatprep.subr.bf16.mxu0 %v8162_v0  ;;  %v3083_v44 = vshll.u32 %v3052_v50, 16  ;;  %v3081_v6 = vshrl.u32 %v3052_v50, 16  ;;  %v4075_v50 = vrot.slane %v7137_v18, 2 }
 0xc42   : > { %v3085_v14 = vrot.slane %v3083_v44, 1  ;;  %v3684_v44 = vrot.slane %v7139_v19, 6 }
 0xc44   : > { %v3086_v9 = vor.u32 %v3085_v14, %v3081_v6  ;;  %v4175_v6 = vrot.slane %v7135_v16, 1  ;;  %v3583_v14 = vrot.slane %v7139_v19, 7 }
 0xce0   : > { %v2901_v21 = vpop.f32.mrf.mxu0 }
 0xce1   : > { %v2905_v57 = vmul.f32 %v2901_v21, %v7330_v26  ;;  %v4173_v26 = vrot.slane %v7137_v18, 1  ;;  %v3499_v21 = vlaneseq }
 0xce2   : > { %v5150_v56 = vpop.f32.mrf.mxu0 }
 0xce3   : > { %2971 = vmatmul.mubr.f32.vlgmr.msra.gmra.mxu0 %v2905_v57  ;;  %5184 = vmatmul.mubr.f32.vlgmr.msra.gmra.mxu1 %v2905_v57  ;;  %v4077_v56 = vrot.slane %v7135_v16, 2  ;;  %v6003_v57 = vmov 1966171168  }
 0xce4   : > { %3152 = vmatpush1.bf16.msra.mxu0 %v5493_v58  ;;  %4622 = vmatprep.mubr.msk.bf16.mxu0 %vm866_vm6, %v3086_v9  ;;  %v3497_v58 = vunpack.c.l.s4 %v6003_v57  ;;  %v8214_v9 = vld [vmem:[#allocation39_spill] sm:$0xff] }
 0xce5   : > { %3153 = vmatprep.subr.bf16.mxu0 %v8162_v0  ;;  %5187 = vmatpush3.msra.mxu1 %v7189_v59  ;;  %v5496_v59 = vld [vmem:[#allocation21 + $0x20] sm:$0xff]  }
 0xce6   : > { %5188 = vmatprep.subr.mxu1 %v8161_v48  ;;  %5218 = vmatprep.mubr.msk.f32.mxu1 %vm6002_vm8, %v8161_v48 }
 0xce7   : > { %5189 = vmatpush3.msra.mxu1 %v7198_v3  ;;  %v5497_v3 = vld [vmem:[#allocation21 + $0x18] sm:$0xff]  }
 0xce8   : > { %3154 = vmatpush1.bf16.msra.mxu0 %v5494_v34  ;;  %5190 = vmatprep.subr.mxu1 %v8161_v48  ;;  %v3979_v34 = vrot.slane %v7135_v16, 3 }
 0xce9   : > { %3155 = vmatprep.subr.bf16.mxu0 %v8162_v0  ;;  %5191 = vmatpush3.msra.mxu1 %v7206_v1  ;;  %v5498_v1 = vld [vmem:[#allocation21 + $0x10] sm:$0xff]  }
 0xcea   : > { %5192 = vmatprep.subr.mxu1 %v8161_v48 }
 0xceb   : > { %5193 = vmatpush3.msra.mxu1 %v7213_v4  ;;  %v5499_v4 = vld [vmem:[#allocation21 + $0x8] sm:$0xff]  }
 0xcec   : > { %3156 = vmatpush1.bf16.msra.mxu0 %v5495_v54  ;;  %5194 = vmatprep.subr.mxu1 %v8161_v48  ;;  %v3782_v54 = vrot.slane %v7139_v19, 5 }
 0xced   : > { %3157 = vmatprep.subr.bf16.mxu0 %v8162_v0  ;;  %5195 = vmatpush3.msra.mxu1 %v7221_v7  ;;  %v8210_v7 = vld [vmem:[#allocation36_spill] sm:$0xff] }
 0xcee   : > { %5196 = vmatprep.subr.mxu1 %v8161_v48 }
 0xcef   : > { %5197 = vmatpush3.msra.mxu1 %v7228_v8  ;;  %v3050_v8 = vsel %vm864_vm5, %v8210_v7, %v3048_v49  ;;  %v3977_v49 = vrot.slane %v7137_v18, 3  ;;  %vm7663_vm5 = vcmp.lt.s32.totalorder %v3499_v21, 384 }
 0xcf0   : > { %3158 = vmatpush1.bf16.msra.mxu0 %v5496_v59  ;;  %5198 = vmatprep.subr.mxu1 %v8161_v48  ;;  %v3882_v59 = vrot.slane %v7139_v19, 4 }
 0xcf1   : > { %3159 = vmatprep.subr.bf16.mxu0 %v8162_v0  ;;  %5199 = vmatpush3.msra.mxu1 %v7236_v10  ;;  %v5500_v10 = vld [vmem:[#allocation21] sm:$0xff]  }
 0xcf2   : > { %5200 = vmatprep.subr.mxu1 %v8161_v48 }
 0xcf3   : > { %5201 = vmatpush3.msra.mxu1 %v7243_v47  ;;  %v3051_v47 = vpack.c.bf16 %v3050_v8, %v7311_v63  ;;  %v3881_v63 = vrot.slane %v7137_v18, 4  ;;  %v4174_v8 = vrot.slane %v7139_v19, 1 }
 0xcf4   : > { %3160 = vmatpush1.bf16.msra.mxu0 %v5497_v3  ;;  %5202 = vmatprep.subr.mxu1 %v8161_v48  ;;  %v3978_v3 = vrot.slane %v7139_v19, 3 }
 0xcf5   : > { %3161 = vmatprep.subr.bf16.mxu0 %v8162_v0  ;;  %5203 = vmatpush3.msra.mxu1 %v7251_v12  ;;  %v5501_v12 = vld [vmem:[#allocation21 + $0x48] sm:$0xff]  }
 0xcf6   : > { %5204 = vmatprep.subr.mxu1 %v8161_v48 }
 0xcf7   : > { %5205 = vmatpush3.msra.mxu1 %v7258_v13  ;;  %v3076_v13 = vshll.u32 %v3051_v47, 16 }
 0xcf8   : > { %3162 = vmatpush1.bf16.msra.mxu0 %v5498_v1  ;;  %5206 = vmatprep.subr.mxu1 %v8161_v48  ;;  %v4076_v1 = vrot.slane %v7139_v19, 2 }
 0xcf9   : > { %3163 = vmatprep.subr.bf16.mxu0 %v8162_v0  ;;  %5207 = vmatpush3.msra.mxu1 %v7266_v15  ;;  %v5502_v15 = vld [vmem:[#allocation21 + $0x40] sm:$0xff]  }
 0xcfa   : > { %5208 = vmatprep.subr.mxu1 %v8161_v48 }
 0xcfb   : > { %5209 = vmatpush3.msra.mxu1 %v7273_v17  ;;  %v3078_v17 = vrot.slane %v3076_v13, 1  ;;  %v3498_v13 = vunpack.c.0.s8 %v3497_v58 }
 0xcfc   : > { %3164 = vmatpush1.bf16.msra.mxu0 %v5499_v4  ;;  %5210 = vmatprep.subr.mxu1 %v8161_v48 }
 0xcfd   : > { %3165 = vmatprep.subr.bf16.mxu0 %v8162_v0  ;;  %5211 = vmatpush3.msra.mxu1 %v7281_v22  ;;  %v3074_v22 = vshrl.u32 %v3051_v47, 16 }
 0xcfe   : > { %5212 = vmatprep.subr.mxu1 %v8161_v48 }
 0xcff   : > { %5213 = vmatpush3.msra.mxu1 %v7288_v28  ;;  %v3079_v28 = vor.u32 %v3078_v17, %v3074_v22 }
 0xd00   : > { %3166 = vmatpush1.bf16.msra.mxu0 %v5500_v10  ;;  %5214 = vmatprep.subr.mxu1 %v8161_v48  ;;  %v8215_v10 = vld [vmem:[#allocation42_spill] sm:$0xff] }
 0xd01   : > { %3179 = vmatprep.subr.bf16.mxu0 %v8162_v0  ;;  %5215 = vmatpush3.msra.mxu1 %v7296_v45  ;;  %v3683_v45 = vrot.slane %v7137_v18, 6  ;;  %v4083_v17 = vadd.f32 %v8215_v10, %v4077_v56  ;;  %v4181_v22 = vadd.f32 %v8215_v10, %v4175_v6 }
 0xd02   : > { %5216 = vmatprep.subr.mxu1 %v8161_v48 }
 0xd03   : > { %5217 = vmatpush3.msra.mxu1 %v7303_v60  ;;  %v3781_v60 = vrot.slane %v7137_v18, 5 }
 0xd04   : > { %3180 = vmatpush2.bf16.msra.mxu0 %v5501_v12  ;;  %5221 = vmatprep.subr.mxu1 %v8161_v48  ;;  %v3985_v12 = vadd.f32 %v8215_v10, %v3979_v34 }
 0xd05   : > { %3181 = vmatprep.subr.bf16.mxu0 %v8162_v0  ;;  %v3582_v0 = vrot.slane %v7137_v18, 7 }
 0xd08   : > { %3182 = vmatpush2.bf16.msra.mxu0 %v5502_v15  ;;  %v3500_v15 = vshrl.u32 %v3499_v21, 7 }
 0xd09   : > { %5228 = vmatprep.subr.mxu0 %v8161_v48 }
 0xd0a   : > { %v7651_v58 = vsub.s32 %v3498_v13, %v3500_v15 }
 0xd0b   : > { %3184 = vmatmul.mubr.bf16.vlgmr.msra.gmra.mxu0 %v3079_v28  ;;  %v3589_v28 = vadd.f32 %v3583_v14, %v8214_v9 }
 0xd0c   : > { %5229 = vmatpush3.msra.mxu0 %v7346_v39  ;;  %5260 = vmatprep.mubr.msk.f32.mxu0 %vm6002_vm8, %v8161_v48  ;;  %v8211_v39 = vld [vmem:[#allocation38_spill] sm:$0xff] }
 0xd0d   : > { %5230 = vmatprep.subr.mxu0 %v8161_v48 }
 0xd0e   : > { %5231 = vmatpush3.msra.mxu0 %v7350_v40  ;;  %v3588_v40 = vadd.f32 %v3582_v0, %v8211_v39  ;;  %v7634_v0 = vadd.f32 %v3684_v44, %v8214_v9 }
 0xd0f   : > { %5232 = vmatprep.subr.mxu0 %v8161_v48 }
 0xd10   : > { %5233 = vmatpush3.msra.mxu0 %v7354_v42  ;;  %v3689_v42 = vadd.f32 %v3683_v45, %v8211_v39  ;;  %v7637_v45 = vadd.f32 %v3782_v54, %v8214_v9 }
 0xd11   : > { %5234 = vmatprep.subr.mxu0 %v8161_v48 }
 0xd12   : > { %5235 = vmatpush3.msra.mxu0 %v7358_v43  ;;  %v3787_v43 = vadd.f32 %v3781_v60, %v8211_v39  ;;  %v8216_v60 = vld [vmem:[#allocation41_spill] sm:$0xff] }
 0xd13   : > { %5236 = vmatprep.subr.mxu0 %v8161_v48 }
 0xd14   : > { %5237 = vmatpush3.msra.mxu0 %v7362_v46  ;;  %v8212_v46 = vld [vmem:[#allocation43_spill] sm:$0xff] }
 0xd15   : > { %5238 = vmatprep.subr.mxu0 %v8161_v48 }
 0xd16   : > { %5239 = vmatpush3.msra.mxu0 %v7366_v52  ;;  %v3488_v52 = vadd.f32 %v7135_v16, %v8212_v46 }
 0xd17   : > { %5240 = vmatprep.subr.mxu0 %v8161_v48 }
 0xd18   : > { %5241 = vmatpush3.msra.mxu0 %v7370_v61  ;;  %v8213_v61 = vld [vmem:[#allocation40_spill] sm:$0xff] }
 0xd19   : > { %5242 = vmatprep.subr.mxu0 %v8161_v48 }
 0xd1a   : > { %5243 = vmatpush3.msra.mxu0 %v7374_v5  ;;  %v3887_v5 = vadd.f32 %v3881_v63, %v8213_v61  ;;  %v7643_v63 = vadd.f32 %v3978_v3, %v8216_v60 }
 0xd1b   : > { %5244 = vmatprep.subr.mxu0 %v8161_v48 }
 0xd1c   : > { %5245 = vmatpush3.msra.mxu0 %v7378_v23  ;;  %v3983_v23 = vadd.f32 %v3977_v49, %v8213_v61  ;;  %v7646_v49 = vadd.f32 %v4076_v1, %v8216_v60 }
 0xd1d   : > { %5246 = vmatprep.subr.mxu0 %v8161_v48 }
 0xd1e   : > { %5247 = vmatpush3.msra.mxu0 %v7382_v24  ;;  %v4081_v24 = vadd.f32 %v4075_v50, %v8213_v61 }
 0xd1f   : > { %5248 = vmatprep.subr.mxu0 %v8161_v48 }
 0xd20   : > { %5249 = vmatpush3.msra.mxu0 %v7386_v25  ;;  %v7607_v25 = vadd.f32 %v4173_v26, %v8213_v61 }
 0xd21   : > { %5250 = vmatprep.subr.mxu0 %v8161_v48 }
 0xd22   : > { %5251 = vmatpush3.msra.mxu0 %v7390_v37  ;;  %v3685_v37 = vrot.slane %v7135_v16, 6 }
 0xd23   : > { %5252 = vmatprep.subr.mxu0 %v8161_v48 }
 0xd24   : > { %5253 = vmatpush3.msra.mxu0 %v7394_v41  ;;  %v3783_v41 = vrot.slane %v7135_v16, 5  ;;  %v3691_v7 = vadd.f32 %v3685_v37, %v8212_v46 }
 0xd25   : > { %5254 = vmatprep.subr.mxu0 %v8161_v48 }
 0xd26   : > { %5255 = vmatpush3.msra.mxu0 %v7398_v53  ;;  %v3883_v53 = vrot.slane %v7135_v16, 4 }
 0xd27   : > { %5256 = vmatprep.subr.mxu0 %v8161_v48 }
 0xd28   : > { %5257 = vmatpush3.msra.mxu0 %v7493_v29  ;;  %v3486_v29 = vadd.f32 %v7137_v18, %v8211_v39  ;;  %v3584_v18 = vrot.slane %v7135_v16, 7  ;;  %v3789_v16 = vadd.f32 %v3783_v41, %v8212_v46  ;;  %v3889_v47 = vadd.f32 %v8215_v10, %v3883_v53 }
 0xd29   : > { %5258 = vmatprep.subr.mxu0 %v8161_v48 }
 0xd2a   : > { %5259 = vmatpush3.msra.mxu0 %v7499_v11  ;;  %v3487_v11 = vadd.f32 %v7139_v19, %v8214_v9  ;;  %v3590_v4 = vadd.f32 %v3584_v18, %v8212_v46  ;;  %v7640_v19 = vadd.f32 %v3882_v59, %v8216_v60  ;;  %v7649_v18 = vadd.f32 %v4174_v8, %v8216_v60 }
 0xda3   : > { %v2972_v50 = vpop.f32.mrf.mxu0  ;;  %v3043_v26 = vpop.f32.mrf.mxu1 }
 0xda4   : > { %v3594_v37 = vrot.slane %v2972_v50, 7  ;;  %v3692_v41 = vrot.slane %v2972_v50, 6  ;;  %v3790_v53 = vrot.slane %v2972_v50, 5  ;;  %v3890_v34 = vrot.slane %v2972_v50, 4 }
 0xda5   : > { %v3986_v56 = vrot.slane %v2972_v50, 3  ;;  %v4084_v57 = vrot.slane %v2972_v50, 2  ;;  %v5185_v6 = vpop.f32.mrf.mxu1  ;;  %v3489_v14 = vadd.f32 %v3486_v29, %v2972_v50  ;;  %v4182_v59 = vrot.slane %v2972_v50, 1  ;;  %v2974_v9 = vpop.f32.mrf.mxu0 }
 0xda6   : > { %v3600_v44 = vadd.f32 %v3594_v37, %v3588_v40  ;;  %v7653_v54 = vadd.f32 %v3692_v41, %v3689_v42  ;;  %v7655_v3 = vadd.f32 %v3790_v53, %v3787_v43  ;;  %v7657_v1 = vadd.f32 %v3890_v34, %v3887_v5 }
 0xda7   : > { %v7659_v8 = vadd.f32 %v3986_v56, %v3983_v23  ;;  %v3491_v60 = vadd.f32 %v3488_v52, %v3043_v26  ;;  %v7661_v10 = vadd.f32 %v4084_v57, %v4081_v24  ;;  %v3596_v46 = vrot.slane %v3043_v26, 7 }
 0xda8   : > { %v3694_v61 = vrot.slane %v3043_v26, 6  ;;  %v3792_v13 = vrot.slane %v3043_v26, 5  ;;  %v3892_v15 = vrot.slane %v3043_v26, 4  ;;  %v3988_v6 = vrot.slane %v3043_v26, 3 }
 0xda9   : > { %v4086_v29 = vrot.slane %v3043_v26, 2  ;;  %v4184_v40 = vrot.slane %v3043_v26, 1  ;;  %v3602_v43 = vadd.f32 %v3596_v46, %v3590_v4  ;;  %v3490_v50 = vadd.f32 %v3487_v11, %v2974_v9 }
 0xdaa   : > { %v3700_v5 = vadd.f32 %v3694_v61, %v3691_v7  ;;  %v3798_v23 = vadd.f32 %v3792_v13, %v3789_v16  ;;  %v3898_v52 = vadd.f32 %v3892_v15, %v3889_v47  ;;  %v3994_v37 = vadd.f32 %v3988_v6, %v3985_v12 }
 0xdab   : > { %v4092_v24 = vadd.f32 %v4086_v29, %v4083_v17  ;;  %v4190_v41 = vadd.f32 %v4184_v40, %v4181_v22  ;;  %v4188_v53 = vadd.f32 %v4182_v59, %v7607_v25  ;;  %v3495_v57 = vcombine.low %v3489_v14, %v3490_v50 }
 0xdac   : > { %v3705_v34 = vcombine.high %v3700_v5, %v3700_v5  ;;  %v3803_v56 = vcombine.high %v3798_v23, %v3798_v23  ;;  %v3509_v26 = vrot.slane %v3491_v60, %v7651_v58  ;;  %v3620_v21 = vrot.slane %v3602_v43, %v7651_v58 }
 0xdad   : > { %v3916_v39 = vrot.slane %v3898_v52, %v7651_v58  ;;  %v4012_v46 = vrot.slane %v3994_v37, %v7651_v58  ;;  %v4097_v61 = vcombine.high %v4092_v24, %v4092_v24  ;;  %v4195_v11 = vcombine.high %v4190_v41, %v4190_v41 }
 0xdae   : > { %v3502_v4 = vrot.slane %v3495_v57, %v7651_v58  ;;  %v3595_v7 = vrot.slane %v2974_v9, 7  ;;  %v3719_v16 = vrot.slane %v3705_v34, %v7651_v58  ;;  %v3817_v25 = vrot.slane %v3803_v56, %v7651_v58 }
 0xdaf   : > { %v3693_v47 = vrot.slane %v2974_v9, 6  ;;  %v3791_v12 = vrot.slane %v2974_v9, 5  ;;  %v3891_v60 = vrot.slane %v2974_v9, 4  ;;  %v3987_v14 = vrot.slane %v2974_v9, 3 }
 0xdb0   : > { %v3510_v17 = vcombine.low %v3502_v4, %v3509_v26  ;;  %v3601_v22 = vadd.f32 %v3595_v7, %v3589_v28  ;;  %v4085_v15 = vrot.slane %v2974_v9, 2  ;;  %v4183_v6 = vrot.slane %v2974_v9, 1 }
 0xdb1   : > { %v3699_v59 = vadd.f32 %v3693_v47, %v7634_v0  ;;  %v3797_v13 = vadd.f32 %v3791_v12, %v7637_v45  ;;  %v3897_v43 = vadd.f32 %v3891_v60, %v7640_v19  ;;  %v3993_v5 = vadd.f32 %v3987_v14, %v7643_v63 }
 0xdb2   : > { %v3517_v29 = vrot.slane %v3510_v17, %v7651_v58  ;;  %v3606_v40 = vcombine.low %v3600_v44, %v3601_v22  ;;  %v4091_v28 = vadd.f32 %v4085_v15, %v7646_v49  ;;  %v4189_v52 = vadd.f32 %v4183_v6, %v7649_v18 }
 0xdb3   : > { %v3704_v23 = vcombine.high %v7653_v54, %v3699_v59  ;;  %v3802_v50 = vcombine.high %v7655_v3, %v3797_v13  ;;  %v4111_v0 = vrot.slane %v4097_v61, %v7651_v58  ;;  %v3902_v45 = vcombine.low %v7657_v1, %v3897_v43 }
 0xdb4   : > { %3523 = vst.msk [vmem:[%s7686_s30] ss:$8 sm:$0x7] %vm7663_vm5, %v3517_v29  ;;  %v3613_v9 = vrot.slane %v3606_v40, %v7651_v58  ;;  %v3998_v19 = vcombine.low %v7659_v8, %v3993_v5  ;;  %v4096_v18 = vcombine.high %v7661_v10, %v4091_v28  ;;  %v4194_v44 = vcombine.high %v4188_v53, %v4189_v52  ;;  %v8233_v28 = vld [vmem:[#allocation61_spill] sm:$0xff]  ;;  %v8234_v52 = vld [vmem:[#allocation62_spill] sm:$0xff] }
 0xdb5   : > { %v3712_v63 = vrot.slane %v3704_v23, %v7651_v58  ;;  %v3810_v49 = vrot.slane %v3802_v50, %v7651_v58  ;;  %v4209_v54 = vrot.slane %v4195_v11, %v7651_v58  ;;  %v3909_v37 = vrot.slane %v3902_v45, %v7651_v58  ;;  %v8231_v23 = vld [vmem:[#allocation59_spill] sm:$0xff]  ;;  %v8232_v50 = vld [vmem:[#allocation60_spill] sm:$0xff] }
 0xdb6   : > { %v3621_v3 = vcombine.low %v3613_v9, %v3620_v21  ;;  %v4005_v24 = vrot.slane %v3998_v19, %v7651_v58  ;;  %v4104_v1 = vrot.slane %v4096_v18, %v7651_v58  ;;  %v4202_v8 = vrot.slane %v4194_v44, %v7651_v58  ;;  %v8236_v9 = vld [vmem:[#allocation37_spill] sm:$0xff]  ;;  %v8237_v45 = vld [vmem:[#allocation35_spill] sm:$0xff]  ;;  %v8238_v19 = vld [vmem:[#allocation64_spill] sm:$0xff] }
 0xdb7   : > { %v3720_v41 = vcombine.low %v3712_v63, %v3719_v16  ;;  %v3818_v34 = vcombine.low %v3810_v49, %v3817_v25  ;;  %v3917_v10 = vcombine.low %v3909_v37, %v3916_v39  ;;  %v8239_v63 = vld [vmem:[#allocation65_spill] sm:$0xff]  ;;  %v8240_v49 = vld [vmem:[#allocation66_spill] sm:$0xff] }
 0xdb8   : > { %v3628_v56 = vrot.slane %v3621_v3, %v7651_v58  ;;  %v4013_v53 = vcombine.low %v4005_v24, %v4012_v46  ;;  %v4112_v21 = vcombine.low %v4104_v1, %v4111_v0  ;;  %v4210_v61 = vcombine.low %v4202_v8, %v4209_v54  ;;  %v8235_v0 = vld [vmem:[#allocation63_spill] sm:$0xff] }
 0xdb9   : > { %v3727_v57 = vrot.slane %v3720_v41, %v7651_v58  ;;  %v3825_v26 = vrot.slane %v3818_v34, %v7651_v58  ;;  %v3924_v4 = vrot.slane %v3917_v10, %v7651_v58 }
 0xdba   : > { %v3629_v11 = vcombine.high %v3628_v56, %v3628_v56  ;;  %v4020_v7 = vrot.slane %v4013_v53, %v7651_v58  ;;  %v4119_v46 = vrot.slane %v4112_v21, %v7651_v58  ;;  %v4217_v16 = vrot.slane %v4210_v61, %v7651_v58 }
 0xdbb   : > { %4627 = vst.msk [vmem:[%s7686_s30 + $0x4] ss:$8 sm:$0x7] %vm7663_vm5, %v3727_v57  ;;  %v3826_v39 = vcombine.high %v3825_v26, %v3825_v26  ;;  %4631 = vst.msk [vmem:[%s7686_s30 + $0x18] ss:$8 sm:$0x7] %vm7663_vm5, %v3924_v4 }
 0xdbc   : > { %4625 = vst.msk [vmem:[%s7686_s30 + $0x2] ss:$8 sm:$0x7] %vm7663_vm5, %v3629_v11  ;;  %v4021_v25 = vcombine.high %v4020_v7, %v4020_v7  ;;  %4635 = vst.msk [vmem:[%s7686_s30 + $0x1c] ss:$8 sm:$0x7] %vm7663_vm5, %v4119_v46  ;;  %v4218_v47 = vcombine.high %v4217_v16, %v4217_v16 }
 0xdbd   : > { %4629 = vst.msk [vmem:[%s7686_s30 + $0x6] ss:$8 sm:$0x7] %vm7663_vm5, %v3826_v39 }
 0xdbe   : > { %4633 = vst.msk [vmem:[%s7686_s30 + $0x1a] ss:$8 sm:$0x7] %vm7663_vm5, %v4021_v25  ;;  %4637 = vst.msk [vmem:[%s7686_s30 + $0x1e] ss:$8 sm:$0x7] %vm7663_vm5, %v4218_v47 }
 0xdcb   : > { %v3185_v12 = vpop.f32.mrf.mxu0 }
 0xdcc   : > { %v3186_v17 = vadd.f32 %v7327_v30, %v3185_v12 }
 0xdcd   : > { %v3187_v22 = vpop.f32.mrf.mxu0 }
 0xdce   : > { %v3191_v60 = vmul.f32 %v3186_v17, %v3186_v17 }
 0xdcf   : > { %v3188_v14 = vpop.f32.mrf.mxu0 }
 0xdd0   : > { %5219 = vmatmul.mubr.f32.vlgmr.msra.gmra.mxu1 %v3191_v60 }
 0xdd1   : > { %v3189_v59 = vpop.f32.mrf.mxu0  ;;  %5222 = vmatpush3.msra.mxu1 %v7334_v35  ;;  %5225 = vmatprep.mubr.msk.f32.mxu1 %vm6002_vm8, %v8161_v48 }
 0xdd2   : > { %5223 = vmatprep.subr.mxu1 %v8161_v48 }
 0xdd3   : > { %5224 = vmatpush3.msra.mxu1 %v7340_v36  ;;  %v8219_v36 = vld [vmem:[#allocation47_spill] sm:$0xff] }
 0xdd4   : > { %3345 = vmatprep.subr.mxu1 %v7343_v38  ;;  %v8220_v38 = vld [vmem:[#allocation48_spill] sm:$0xff] }
 0xe90   : > { %v3258_v13 = vpop.f32.mrf.mxu1 }
 0xe91   : > { %5523 = vrsqrt.f32 %v3258_v13  ;;  %vm3264_vm6 = vcmp.eq.f32.partialorder %v3258_v13, inf  ;;  %v3267_v29 = vand.u32 2147483648, %v3258_v13  ;;  %vm3266_vm7 = vcmp.eq.f32.partialorder %v3258_v13, 0.0 }
 0xe92   : > { %v5220_v15 = vpop.f32.mrf.mxu1 }
 0xe9e   : > { %v5524_v30 = vpop.eup %5523 }
 0xe9f   : > { %v3263_v6 = vmul.f32 %v5524_v30, %v3258_v13 }
 0xea1   : > { %v3265_v40 = vsel %vm3264_vm6, %v3258_v13, %v3263_v6 }
 0xea2   : > { %v3268_v43 = vsel %vm3266_vm7, %v3267_v29, %v3265_v40 }
 0xea3   : > { %v3269_v35 = vadd.f32 1e-10, %v3268_v43 }
 0xea5   : > { %5525 = vrcp.f32 %v3269_v35 }
 0xeb2   : > { %v5526_v5 = vpop.eup %5525 }
 0xeb3   : > { %5226 = vmatmul.mubr.msk.f32.vlgmr.msra.gmra.mxu1 %vm1382_vm14, %v5526_v5 }
 0xeb4   : > { %3346 = vmatpush1.msra.mxu1 %v7402_v20  ;;  %3409 = vmatprep.mubr.f32.mxu1 %v8161_v48  ;;  %v8221_v48 = vld [vmem:[#allocation49_spill] sm:$0xff]  ;;  %v8222_v20 = vld [vmem:[#allocation50_spill] sm:$0xff] }
 0xeb5   : > { %3347 = vmatprep.subr.mxu1 %v7404_v27  ;;  %v8223_v27 = vld [vmem:[#allocation51_spill] sm:$0xff] }
 0xeb6   : > { %3348 = vmatpush1.msra.mxu1 %v7407_v62  ;;  %v8224_v62 = vld [vmem:[#allocation52_spill] sm:$0xff] }
 0xeb7   : > { %3349 = vmatprep.subr.mxu1 %v7410_v2  ;;  %v8225_v2 = vld [vmem:[#allocation53_spill] sm:$0xff] }
 0xeb8   : > { %3350 = vmatpush1.msra.mxu1 %v7414_v55  ;;  %v8226_v55 = vld [vmem:[#allocation54_spill] sm:$0xff] }
 0xeb9   : > { %3351 = vmatprep.subr.mxu1 %v7417_v51  ;;  %v8227_v51 = vld [vmem:[#allocation55_spill] sm:$0xff] }
 0xeba   : > { %3352 = vmatpush1.msra.mxu1 %v7420_v31  ;;  %v8228_v31 = vld [vmem:[#allocation56_spill] sm:$0xff] }
 0xebb   : > { %3353 = vmatprep.subr.mxu1 %v7423_v32  ;;  %v8229_v32 = vld [vmem:[#allocation57_spill] sm:$0xff] }
 0xebc   : > { %3354 = vmatpush1.msra.mxu1 %v7426_v33  ;;  %v8230_v33 = vld [vmem:[#allocation58_spill] sm:$0xff] }
 0xebd   : > { %3355 = vmatprep.subr.mxu1 %v8219_v36 }
 0xebe   : > { %3356 = vmatpush1.msra.mxu1 %v8220_v38 }
 0xebf   : > { %3357 = vmatprep.subr.mxu1 %v8221_v48 }
 0xec0   : > { %3358 = vmatpush1.msra.mxu1 %v8222_v20 }
 0xec1   : > { %3359 = vmatprep.subr.mxu1 %v8223_v27 }
 0xec2   : > { %3360 = vmatpush1.msra.mxu1 %v8224_v62 }
 0xec3   : > { %3361 = vmatprep.subr.mxu1 %v8225_v2 }
 0xec4   : > { %3362 = vmatpush1.msra.mxu1 %v8226_v55 }
 0xec5   : > { %3363 = vmatprep.subr.mxu1 %v8227_v51 }
 0xec6   : > { %3364 = vmatpush1.msra.mxu1 %v8228_v31 }
 0xec7   : > { %3365 = vmatprep.subr.mxu1 %v8229_v32 }
 0xec8   : > { %3366 = vmatpush1.msra.mxu1 %v8230_v33 }
 0xec9   : > { %3367 = vmatprep.subr.mxu1 %v8231_v23 }
 0xeca   : > { %3368 = vmatpush1.msra.mxu1 %v8232_v50 }
 0xecb   : > { %3369 = vmatprep.subr.mxu1 %v8233_v28 }
 0xecc   : > { %3370 = vmatpush1.msra.mxu1 %v8234_v52 }
 0xecd   : > { %3371 = vmatprep.subr.mxu1 %v8235_v0 }
 0xece   : > { %3372 = vmatpush1.msra.mxu1 %v8236_v9 }
 0xecf   : > { %3373 = vmatprep.subr.mxu1 %v8237_v45 }
 0xed0   : > { %3374 = vmatpush1.msra.mxu1 %v8238_v19 }
 0xed1   : > { %3375 = vmatprep.subr.mxu1 %v8239_v63 }
 0xed2   : > { %3376 = vmatpush1.msra.mxu1 %v8240_v49 }
 0xf73   : > { %v3340_v18 = vpop.f32.mrf.mxu1 }
 0xf74   : > { %v3344_v44 = vmul.f32 %v3340_v18, %v3186_v17 }
 0xf75   : > { %v5227_v54 = vpop.f32.mrf.mxu1 }
 0xf76   : > { %3410 = vmatmul.mubr.f32.vlgmr.msra.gmra.mxu1 %v3344_v44  ;;  %5261 = vmatmul.mubr.f32.vlgmr.msra.gmra.mxu0 %v3344_v44 }
 0xf77   : > { %5872 = shalt.err (!%p5869_p0)
}
 0xf78   : > { %s5873_s25 = scalar_lea.hbm %s4294_s11, 128  ;;  %s5877_s14 = scalar_lea.hbm %s8241_s16, 256 }
 0xf79   : > { %p5874_p2 = scmp.ne.s32.totalorder %s4294_s11, %s5873_s25  ;;  %p5878_p12 = scmp.lt.s32.totalorder %s4294_s11, %s8241_s16 }
 0xf7a   : > { %p5879_p1 = scmp.lt.s32.totalorder %s5877_s14, %s5873_s25 }
 0xf7b   : > { %p5875_p8 = pnand %p5874_p2, %p8242_p5 }
 0xf7c   : > { %p5880_p3 = por %p5879_p1, %p5878_p12 }
 0xf7d   : > { %p5876_p9 = pneg %p5875_p8 }
 0xf7f   : > { %p5881_p6 = pnand %p5880_p3, %p5876_p9 }
 0xf81   : > { %5884 = shalt.err (!%p5881_p6)
}
 0xf82   : > { %5312 = dma.vmem_to_hbm [thread:$0]  (%p8242_p5), %s4297_s10, 128, %s4294_s11, %s4267_s27   ;;  %v8243_v3 = vld [vmem:[#allocation45_spill] sm:$0xff]  ;;  %v8244_v10 = vld [vmem:[#allocation38_spill] sm:$0xff]  ;;  %v8245_v21 = vld [vmem:[#allocation40_spill] sm:$0xff] }
 0xf83   : > { %v3528_v37 = vrot.slane %v8243_v3, 7  ;;  %v3634_v24 = vrot.slane %v8243_v3, 6  ;;  %v3732_v41 = vrot.slane %v8243_v3, 5  ;;  %v3831_v34 = vrot.slane %v8243_v3, 4  ;;  %v8246_v39 = vld [vmem:[#allocation44_spill] sm:$0xff]  ;;  %v8247_v60 = vld [vmem:[#allocation46_spill] sm:$0xff] }
 0xf84   : > { %v3929_v1 = vrot.slane %v8243_v3, 3  ;;  %v4026_v8 = vrot.slane %v8243_v3, 2  ;;  %v4124_v56 = vrot.slane %v8243_v3, 1  ;;  %v7806_v61 = vadd.f32 %v8243_v3, %v8245_v21  ;;  %v8248_v29 = vld [vmem:[#allocation43_spill] sm:$0xff]  ;;  %v8249_v43 = vld [vmem:[#allocation42_spill] sm:$0xff]  ;;  %v8251_v28 = vld [vmem:[#allocation41_spill] sm:$0xff] }
 0xf85   : > { %v7796_v53 = vadd.f32 %v3528_v37, %v8244_v10  ;;  %v7799_v57 = vadd.f32 %v3634_v24, %v8244_v10  ;;  %v7802_v26 = vadd.f32 %v3732_v41, %v8244_v10  ;;  %v7809_v11 = vadd.f32 %v3831_v34, %v8244_v10  ;;  %v8250_v55 = vld [vmem:[#allocation39_spill] sm:$0xff]  ;;  %s5264_s6 = smul.u32 768, %s6137_s26  ;;  %s4280_s7 = sshll.u32 %s7686_s30, 4  ;;  %s7929_s7 = int_to_ptr.vmem [resolvable:$true] %s4280_s7 }
 0xf86   : > { %v7812_v4 = vadd.f32 %v3929_v1, %v8245_v21  ;;  %v7815_v7 = vadd.f32 %v4026_v8, %v8245_v21  ;;  %v3530_v46 = vrot.slane %v8246_v39, 7  ;;  %v3636_v16 = vrot.slane %v8246_v39, 6  ;;  %s8252_s27 = sld [smem:[#allocation81_spill]]  ;;  %s4262_s26 = scalar_lea.sflag [#allocation5], %s6326_s12 }
 0xf87   : > { %v3734_v25 = vrot.slane %v8246_v39, 5  ;;  %v3833_v47 = vrot.slane %v8246_v39, 4  ;;  %v3931_v12 = vrot.slane %v8246_v39, 3  ;;  %v4028_v17 = vrot.slane %v8246_v39, 2  ;;  %s5885_s0 = scalar_lea.vmem %s7929_s7, 768  ;;  %s6005_s4 = smov [#allocation23]  }
 0xf88   : > { %v4126_v22 = vrot.slane %v8246_v39, 1  ;;  %v3529_v14 = vrot.slane %v8247_v60, 7  ;;  %v3635_v59 = vrot.slane %v8247_v60, 6  ;;  %v7827_v13 = vadd.f32 %v4124_v56, %v8245_v21  ;;  %p5886_p10 = scmp.ne.s32.totalorder %s7929_s7, %s5885_s0  ;;  %s5889_s19 = sshll.u32 %s6005_s4, 4  ;;  %s5890_s19 = int_to_ptr.vmem [resolvable:$false] %s5889_s19 }
 0xf89   : > { %v3733_v15 = vrot.slane %v8247_v60, 5  ;;  %v3832_v30 = vrot.slane %v8247_v60, 4  ;;  %v3930_v6 = vrot.slane %v8247_v60, 3  ;;  %v3536_v40 = vadd.f32 %v3530_v46, %v8248_v29  ;;  %s5891_s25 = scalar_lea.vmem %s5890_s19, 1536  ;;  %p5892_p4 = scmp.lt.s32.totalorder %s7929_s7, %s5890_s19 }
 0xf8a   : > { %v4225_v35 = vadd.f32 %v8249_v43, %v8246_v39  ;;  %v4027_v5 = vrot.slane %v8247_v60, 2  ;;  %v4125_v36 = vrot.slane %v8247_v60, 1  ;;  %v3642_v38 = vadd.f32 %v3636_v16, %v8248_v29  ;;  %p5887_p11 = pnand %p5886_p10, %p8242_p5  ;;  %p5893_p13 = scmp.lt.s32.totalorder %s5891_s25, %s5885_s0 }
 0xf8b   : > { %v3740_v48 = vadd.f32 %v3734_v25, %v8248_v29  ;;  %v3839_v20 = vadd.f32 %v3833_v47, %v8248_v29  ;;  %v3937_v27 = vadd.f32 %v8249_v43, %v3931_v12  ;;  %v4034_v62 = vadd.f32 %v8249_v43, %v4028_v17 }
 0xf8c   : > { %v4132_v2 = vadd.f32 %v8249_v43, %v4126_v22  ;;  %v3535_v51 = vadd.f32 %v3529_v14, %v8250_v55  ;;  %v3641_v31 = vadd.f32 %v3635_v59, %v8250_v55  ;;  %v3739_v23 = vadd.f32 %v3733_v15, %v8250_v55  ;;  %s7927_s8 = scalar_lea.hbm %s8252_s27, %s5264_s6  ;;  %p5888_p7 = pneg %p5887_p11 }
 0xf8d   : > { %v3838_v50 = vadd.f32 %v3832_v30, %v8250_v55  ;;  %v3936_v52 = vadd.f32 %v3930_v6, %v8251_v28  ;;  %v7852_v0 = vadd.f32 %v8247_v60, %v8251_v28  ;;  %v4033_v19 = vadd.f32 %v4027_v5, %v8251_v28  ;;  %p5894_p0 = por %p5893_p13, %p5892_p4 }
 0xf8e   : > { %v4131_v63 = vadd.f32 %v4125_v36, %v8251_v28 }
 0xf8f   : > { %p5895_p2 = pnand %p5894_p0, %p5888_p7 }
0x1036   : > { %v7845_v32 = vpop.f32.mrf.mxu1  ;;  %v3482_v33 = vpop.f32.mrf.mxu0 }
0x1037   : > { %v3540_v9 = vrot.slane %v7845_v32, 7  ;;  %v3643_v45 = vrot.slane %v7845_v32, 6  ;;  %v3741_v49 = vrot.slane %v7845_v32, 5  ;;  %v3840_v18 = vrot.slane %v7845_v32, 4 }
0x1038   : > { %v3938_v44 = vrot.slane %v7845_v32, 3  ;;  %v3542_v54 = vrot.slane %v3482_v33, 7  ;;  %v5262_v3 = vpop.f32.mrf.mxu0  ;;  %v3645_v37 = vrot.slane %v3482_v33, 6  ;;  %v3743_v24 = vrot.slane %v3482_v33, 5  ;;  %v3413_v25 = vpop.f32.mrf.mxu1 }
0x1039   : > { %v3842_v41 = vrot.slane %v3482_v33, 4  ;;  %v3940_v34 = vrot.slane %v3482_v33, 3  ;;  %v4037_v8 = vrot.slane %v3482_v33, 2  ;;  %v4135_v56 = vrot.slane %v3482_v33, 1 }
0x103a   : > { %v3548_v1 = vadd.f32 %v3542_v54, %v3536_v40  ;;  %v7861_v10 = vadd.f32 %v4225_v35, %v3482_v33  ;;  %v3651_v21 = vadd.f32 %v3645_v37, %v3642_v38  ;;  %v3749_v39 = vadd.f32 %v3743_v24, %v3740_v48 }
0x103b   : > { %v3848_v46 = vadd.f32 %v3842_v41, %v3839_v20  ;;  %v3946_v16 = vadd.f32 %v3940_v34, %v3937_v27  ;;  %v4035_v47 = vrot.slane %v7845_v32, 2  ;;  %v4133_v12 = vrot.slane %v7845_v32, 1 }
0x103c   : > { %v4043_v17 = vadd.f32 %v4037_v8, %v4034_v62  ;;  %v4141_v22 = vadd.f32 %v4135_v56, %v4132_v2  ;;  %v3566_v60 = vrot.slane %v3548_v1, %v7651_v58  ;;  %v3754_v14 = vcombine.high %v3749_v39, %v3749_v39 }
0x103d   : > { %v3853_v59 = vcombine.high %v3848_v46, %v3848_v46  ;;  %v4233_v15 = vcombine.high %v7861_v10, %v7861_v10  ;;  %v3669_v30 = vrot.slane %v3651_v21, %v7651_v58  ;;  %v3964_v6 = vrot.slane %v3946_v16, %v7651_v58 }
0x103e   : > { %v4061_v29 = vrot.slane %v4043_v17, %v7651_v58  ;;  %v3541_v40 = vrot.slane %v3413_v25, 7  ;;  %v3768_v43 = vrot.slane %v3754_v14, %v7651_v58  ;;  %v4146_v5 = vcombine.high %v4141_v22, %v4141_v22 }
0x103f   : > { %v3867_v35 = vrot.slane %v3853_v59, %v7651_v58  ;;  %v3644_v36 = vrot.slane %v3413_v25, 6  ;;  %v3546_v38 = vadd.f32 %v3540_v9, %v7796_v53  ;;  %v3649_v20 = vadd.f32 %v3643_v45, %v7799_v57 }
0x1040   : > { %v3547_v48 = vadd.f32 %v3541_v40, %v3535_v51  ;;  %v3742_v27 = vrot.slane %v3413_v25, 5  ;;  %v3747_v2 = vadd.f32 %v3741_v49, %v7802_v26  ;;  %v3841_v55 = vrot.slane %v3413_v25, 4 }
0x1041   : > { %v3650_v62 = vadd.f32 %v3644_v36, %v3641_v31  ;;  %v3846_v33 = vadd.f32 %v3840_v18, %v7809_v11  ;;  %v3939_v3 = vrot.slane %v3413_v25, 3  ;;  %v3944_v37 = vadd.f32 %v3938_v44, %v7812_v4 }
0x1042   : > { %v3552_v28 = vcombine.low %v3546_v38, %v3547_v48  ;;  %v3748_v54 = vadd.f32 %v3742_v27, %v3739_v23  ;;  %v3847_v41 = vadd.f32 %v3841_v55, %v3838_v50  ;;  %v4036_v34 = vrot.slane %v3413_v25, 2 }
0x1043   : > { %v3655_v24 = vcombine.low %v3649_v20, %v3650_v62  ;;  %v4041_v53 = vadd.f32 %v4035_v47, %v7815_v7  ;;  %v3945_v9 = vadd.f32 %v3939_v3, %v3936_v52  ;;  %v4134_v31 = vrot.slane %v3413_v25, 1 }
0x1044   : > { %v3559_v51 = vrot.slane %v3552_v28, %v7651_v58  ;;  %v3753_v57 = vcombine.high %v3747_v2, %v3748_v54  ;;  %v3852_v45 = vcombine.high %v3846_v33, %v3847_v41  ;;  %v4042_v49 = vadd.f32 %v4036_v34, %v4033_v19 }
0x1045   : > { %v3662_v26 = vrot.slane %v3655_v24, %v7651_v58  ;;  %v4139_v11 = vadd.f32 %v4133_v12, %v7827_v13  ;;  %v3950_v4 = vcombine.low %v3944_v37, %v3945_v9  ;;  %v4140_v50 = vadd.f32 %v4134_v31, %v4131_v63 }
0x1046   : > { %v3567_v23 = vcombine.high %v3559_v51, %v3566_v60  ;;  %v3761_v18 = vrot.slane %v3753_v57, %v7651_v58  ;;  %v3860_v7 = vrot.slane %v3852_v45, %v7651_v58  ;;  %v4047_v1 = vcombine.low %v4041_v53, %v4042_v49 }
0x1047   : > { %v3670_v44 = vcombine.high %v3662_v26, %v3669_v30  ;;  %v4226_v52 = vadd.f32 %v7806_v61, %v7845_v32  ;;  %v3957_v19 = vrot.slane %v3950_v4, %v7651_v58  ;;  %v4145_v13 = vcombine.high %v4139_v11, %v4140_v50 }
0x1048   : > { %v3574_v8 = vrot.slane %v3567_v23, %v7651_v58  ;;  %v3769_v56 = vcombine.high %v3761_v18, %v3768_v43  ;;  %v3868_v21 = vcombine.high %v3860_v7, %v3867_v35  ;;  %v4054_v63 = vrot.slane %v4047_v1, %v7651_v58 }
0x1049   : > { %v3677_v10 = vrot.slane %v3670_v44, %v7651_v58  ;;  %v4227_v39 = vadd.f32 %v7852_v0, %v3413_v25  ;;  %v4160_v46 = vrot.slane %v4146_v5, %v7651_v58  ;;  %v3965_v32 = vcombine.high %v3957_v19, %v3964_v6 }
0x104a   : > { %4624 = vst.msk [vmem:[%s7686_s30 + $0x1] ss:$8 sm:$0x7] %vm7663_vm5, %v3574_v8  ;;  %v3776_v61 = vrot.slane %v3769_v56, %v7651_v58  ;;  %v4153_v16 = vrot.slane %v4145_v13, %v7651_v58  ;;  %v3875_v12 = vrot.slane %v3868_v21, %v7651_v58  ;;  %v4062_v17 = vcombine.high %v4054_v63, %v4061_v29 }
0x104b   : > { %v3678_v47 = vcombine.high %v3677_v10, %v3677_v10  ;;  %v4232_v22 = vcombine.high %v4226_v52, %v4227_v39  ;;  %v3972_v0 = vrot.slane %v3965_v32, %v7651_v58  ;;  %v4247_v60 = vrot.slane %v4233_v15, %v7651_v58 }
0x104c   : > { %4628 = vst.msk [vmem:[%s7686_s30 + $0x5] ss:$8 sm:$0x7] %vm7663_vm5, %v3776_v61  ;;  %v4161_v25 = vcombine.high %v4153_v16, %v4160_v46  ;;  %v3876_v14 = vcombine.high %v3875_v12, %v3875_v12  ;;  %v4069_v59 = vrot.slane %v4062_v17, %v7651_v58 }
0x104d   : > { %4626 = vst.msk [vmem:[%s7686_s30 + $0x3] ss:$8 sm:$0x7] %vm7663_vm5, %v3678_v47  ;;  %v4240_v30 = vrot.slane %v4232_v22, %v7651_v58  ;;  %4632 = vst.msk [vmem:[%s7686_s30 + $0x19] ss:$8 sm:$0x7] %vm7663_vm5, %v3972_v0 }
0x104e   : > { %v4168_v6 = vrot.slane %v4161_v25, %v7651_v58  ;;  %4630 = vst.msk [vmem:[%s7686_s30 + $0x7] ss:$8 sm:$0x7] %vm7663_vm5, %v3876_v14  ;;  %v4070_v15 = vcombine.high %v4069_v59, %v4069_v59 }
0x104f   : > { %v4248_v29 = vcombine.high %v4240_v30, %v4247_v60 }
0x1050   : > { %4636 = vst.msk [vmem:[%s7686_s30 + $0x1d] ss:$8 sm:$0x7] %vm7663_vm5, %v4168_v6  ;;  %4634 = vst.msk [vmem:[%s7686_s30 + $0x1b] ss:$8 sm:$0x7] %vm7663_vm5, %v4070_v15 }
0x1051   : > { %v4255_v40 = vrot.slane %v4248_v29, %v7651_v58 }
0x1053   : > { %v4256_v43 = vcombine.high %v4255_v40, %v4255_v40 }
0x1055   : > { %4638 = vst.msk [vmem:[%s7686_s30 + $0x1f] ss:$8 sm:$0x7] %vm7663_vm5, %v4256_v43 }
0x1056   : > { %5898 = shalt.err (!%p5895_p2)
}
0x1057   : > { %s5899_s30 = scalar_lea.hbm %s7927_s8, 768  ;;  %s5903_s14 = scalar_lea.hbm %s8252_s27, 1536 }
0x1058   : > { %p5900_p8 = scmp.ne.s32.totalorder %s7927_s8, %s5899_s30  ;;  %p5904_p1 = scmp.lt.s32.totalorder %s7927_s8, %s8252_s27 }
0x1059   : > { %p5905_p3 = scmp.lt.s32.totalorder %s5903_s14, %s5899_s30 }
0x105a   : > { %p5901_p9 = pnand %p5900_p8, %p8242_p5 }
0x105b   : > { %p5906_p6 = por %p5905_p3, %p5904_p1 }
0x105c   : > { %p5902_p12 = pneg %p5901_p9 }
0x105e   : > { %p5907_p10 = pnand %p5906_p6, %p5902_p12 }
0x1060   : > { %5910 = shalt.err (!%p5907_p10)
}
0x1061   : > { %s6006_s11 = smov 384   ;;  %s6007_s0 = smov 24  }
0x1062   : > { %5311 = dma.vmem_to_hbm [thread:$0]  (%p8242_p5), %s7929_s7, 768, %s7927_s8, %s4262_s26, %s6006_s11, %s6006_s11, %s6007_s0  }
0x1063 PF: > { %s4308_s4 = sand.u32 1, %s5965_s23   ;;  %p8253_p11 = scmp.ne.s32.totalorder %s8111_s3, 0 }
0x1064   : > { %p8254_p7 = scmp.ge.s32.totalorder %s5977_s5, 2  ;;  %s4309_s19 = scalar_lea.sflag [#allocation5], %s4308_s4 }
0x1066   : > { %p5354_p4 = pnand %p8254_p7, %p8253_p11 }
0x1068   : > { %p5355_p13 = pneg %p5354_p4 }
0x106a   : > { %5956 = dma.done.wait (%p5355_p13), %s4309_s19, 768  }
0x106b   : > { %5958 = vsyncadd (%p5355_p13), %s4309_s19, 4294966528  ;;  %s4318_s25 = scalar_lea.sflag [#allocation25], %s4308_s4 }
0x106c   : > { %5960 = dma.done.wait (%p5355_p13), %s4318_s25, 128  }
0x106d   : > { %5962 = vsyncadd (%p5355_p13), %s4318_s25, 4294967168  ;;  %p45_p5 = scmp.ge.s32.totalorder %s6269_s21, 4   ;;  %s8255_s23 = smov %s5969_s24 }
0x106e   : > { %s8256_s24 = smov %s5973_s2  ;;  %s8257_s2 = smov %s6281_s29 }
0x106f   : > { %s8258_s5 = smov %s6269_s21  ;;  %47 = sbr.rel (!%p45_p5) target bundleno = 30 (0x1e), region = 220 }
0x1074   :  { %4323 = vsyncpa [#allocation4], 1 }
0x1075   :  { %4325 = vsyncpa [#allocation4 + $0x1], 1 }
0x1076   :  { %4326 = vsyncpa [#allocation7], 1 }
0x1077   :  { %4327 = vsyncpa [#allocation10], 1 }
0x1078   :  { %4328 = vsyncpa [#allocation13], 1 }
0x1079   :  { %4329 = vsyncpa [#allocation16], 1 }
0x107a   :  { %4330 = vsyncpa [#allocation19], 1 }
0x107b   :  { %4331 = vsyncpa [#allocation22], 1 }
0x107c   :  { %4332 = vsyncpa [#allocation5], 1 }
0x107d   :  { %4334 = vsyncpa [#allocation5 + $0x1], 1 }
0x107e   :  { %4335 = vsyncpa [#allocation25], 1 }
0x107f   :  { %4337 = vsyncpa [#allocation25 + $0x1], 1 }

</bundles_post_ra>
